<compile_context>
chip_gen: v7x
topology: tpu7x:2x2x1
jax: 0.10.0
libtpu: 0.0.40
codegen_flags: <defaults>
</compile_context>

<pallas_src>
import functools
import math

import jax
import jax.numpy as jnp
from jax.experimental import pallas as pl
from jax.experimental.pallas import tpu as pltpu

LN_EPS = 1e-5
NEG_BIG = -1e30   # block-diagonal batch mask value (exp() underflows to 0)


# ----------------------------- fused kernel ----------------------------------

def _ppd_kernel(w_ref, b_ref, xtr_ref, xte_ref, out_ref, att_ref, *,
                wmap, bmap, B, S_train, S_test, H, L, D, C):
    dh = D // H

    def W(name):
        r, din, dout = wmap[name]
        return w_ref[r:r + din, :dout]                     # bf16 [din, dout]

    def Bv(name):
        r, dout = bmap[name]
        return b_ref[r:r + 1, :dout]                       # f32  [1, dout]

    def dot(a, w):
        # bf16 MXU path, f32 accumulation.
        return jnp.dot(a.astype(jnp.bfloat16), w.astype(jnp.bfloat16),
                       preferred_element_type=jnp.float32)

    def dot_nt(a, bm):
        # a [M,K] x b [N,K] contracted over K -> [M,N]; no explicit transpose.
        return jax.lax.dot_general(a.astype(jnp.bfloat16), bm.astype(jnp.bfloat16),
                                   (((1,), (1,)), ((), ())),
                                   preferred_element_type=jnp.float32)

    def layernorm(h, g, b):
        mu = jnp.mean(h, axis=-1, keepdims=True)
        d = h - mu
        var = jnp.mean(d * d, axis=-1, keepdims=True)
        return d * jax.lax.rsqrt(var + LN_EPS) * g + b

    def mish(x):
        sp = jnp.maximum(x, 0.0) + jnp.log1p(jnp.exp(-jnp.abs(x)))
        return x * jnp.tanh(sp)

    def batch_mask(sq, sk):
        # 0 inside per-batch diagonal blocks, NEG_BIG elsewhere (kills
        # cross-batch attention so the full-batch softmax equals per-batch).
        r = jax.lax.broadcasted_iota(jnp.int32, (B * sq, B * sk), 0)
        c = jax.lax.broadcasted_iota(jnp.int32, (B * sq, B * sk), 1)
        same = jnp.zeros((B * sq, B * sk), jnp.bool_)
        for b in range(B):                                  # tiny static unroll
            same = same | ((r >= b * sq) & (r < (b + 1) * sq) &
                           (c >= b * sk) & (c < (b + 1) * sk))
        return jnp.where(same, 0.0, NEG_BIG).astype(jnp.float32)

    # Hoisted: identical for every layer.
    mask_enc = batch_mask(S_train, S_train)
    mask_ca = batch_mask(S_test, S_train)

    def attention(q, k, v, mask, n_q):
        # q [B*sq, D], k/v [B*sk, D]; scale already folded into q's projection.
        for h in range(H):                                  # static unroll (tiny H)
            sl = slice(h * dh, (h + 1) * dh)
            s = dot_nt(q[:, sl], k[:, sl]) + mask
            s = s - jnp.max(s, axis=-1, keepdims=True)
            p = jnp.exp(s)
            p = p * pl.reciprocal(jnp.sum(p, axis=-1, keepdims=True), approx=True)
            # Place this head's output directly at its lane offset — avoids a
            # lane-dim concatenate of 8-wide tiles.
            att_ref[0:n_q, sl] = dot(p, v[:, sl])
        return att_ref[0:n_q, :]

    # ----- encoder (src mask is all zeros -> unmasked attention) -----
    mem = xtr_ref[...].astype(jnp.float32)                  # [B*S_train, D]
    for l in range(L):
        qkv = dot(mem, W(f"e_qkv{l}")) + Bv(f"e_bqkv{l}")   # fused [D,3D] proj
        att = attention(qkv[:, 0:D], qkv[:, D:2 * D], qkv[:, 2 * D:3 * D],
                        mask_enc, B * S_train)
        sa = dot(att, W(f"e_wo{l}")) + Bv(f"e_bo{l}")
        x = layernorm(mem + sa, Bv(f"e_ln1g{l}"), Bv(f"e_ln1b{l}"))
        ff = dot(mish(dot(x, W(f"e_w1{l}")) + Bv(f"e_b1{l}")),
                 W(f"e_w2{l}")) + Bv(f"e_b2{l}")
        mem = layernorm(x + ff, Bv(f"e_ln2g{l}"), Bv(f"e_ln2b{l}"))

    # ----- decoder -----
    out = xte_ref[...].astype(jnp.float32)                  # [B*S_test, D]
    for l in range(L):
        # Masked self-attention with diagonal-only tgt mask == out_proj(v_proj(x)),
        # pre-folded host-side into a single matmul.
        sa = dot(out, W(f"d_sa{l}")) + Bv(f"d_sab{l}")
        x = layernorm(out + sa, Bv(f"d_ln1g{l}"), Bv(f"d_ln1b{l}"))
        # Cross-attention to encoder memory (no mask); fused K/V projection.
        q = dot(x, W(f"d_wq{l}")) + Bv(f"d_bq{l}")          # scale pre-folded
        kv = dot(mem, W(f"d_wkv{l}")) + Bv(f"d_bkv{l}")
        ca = attention(q, kv[:, 0:D], kv[:, D:2 * D], mask_ca, B * S_test)
        ca = dot(ca, W(f"d_wo{l}")) + Bv(f"d_bo{l}")
        x2 = layernorm(x + ca, Bv(f"d_ln2g{l}"), Bv(f"d_ln2b{l}"))
        ff = dot(mish(dot(x2, W(f"d_w1{l}")) + Bv(f"d_b1{l}")),
                 W(f"d_w2{l}")) + Bv(f"d_b2{l}")
        out = layernorm(x2 + ff, Bv(f"d_ln3g{l}"), Bv(f"d_ln3b{l}"))

    # ----- classifier head -----
    out_ref[...] = (dot(out, W("wc")) + Bv("bc")).astype(out_ref.dtype)


# ------------------------------ host-side packing -----------------------------

def _pack_mats(named):
    """Pack [Din, Dout] matrices into one bf16 [rows, 128] slab (static offsets)."""
    wmap, slabs, off = {}, [], 0
    for name, w in named:
        din, dout = w.shape
        assert dout <= 128, f"{name}: Dout={dout} > 128 lanes not supported"
        din_pad = -(-din // 16) * 16           # keep bf16 sublane packing aligned
        wmap[name] = (off, din, dout)
        slabs.append(jnp.pad(w.astype(jnp.float32),
                             ((0, din_pad - din), (0, 128 - dout))))
        off += din_pad
    return jnp.concatenate(slabs, axis=0).astype(jnp.bfloat16), wmap


def _pack_vecs(named):
    """Pack bias / LN vectors as rows of one f32 [n, 128] slab."""
    bmap, rows = {}, []
    for i, (name, v) in enumerate(named):
        dout = int(v.shape[-1])
        assert dout <= 128
        bmap[name] = (i, dout)
        rows.append(jnp.pad(v.reshape(1, dout).astype(jnp.float32),
                            ((0, 0), (0, 128 - dout))))
    return jnp.concatenate(rows, axis=0), bmap


def pack_params(params, nheads):
    """Fold constants (decoder SA projection, softmax scale) and pack everything
    into two slabs + static layout maps."""
    L, D, _ = params["e_wqkv"].shape
    scale = 1.0 / math.sqrt(D // nheads)

    mats, vecs = [], []
    for l in range(L):
        wqkv = params["e_wqkv"][l].at[:, :D].multiply(scale)   # fold Q scale
        bqkv = params["e_bqkv"][l].at[:D].multiply(scale)
        mats += [(f"e_qkv{l}", wqkv), (f"e_wo{l}", params["e_wo"][l]),
                 (f"e_w1{l}", params["e_w1"][l]), (f"e_w2{l}", params["e_w2"][l])]
        vecs += [(f"e_bqkv{l}", bqkv), (f"e_bo{l}", params["e_bo"][l]),
                 (f"e_b1{l}", params["e_b1"][l]), (f"e_b2{l}", params["e_b2"][l]),
                 (f"e_ln1g{l}", params["e_ln1g"][l]), (f"e_ln1b{l}", params["e_ln1b"][l]),
                 (f"e_ln2g{l}", params["e_ln2g"][l]), (f"e_ln2b{l}", params["e_ln2b"][l])]
    for l in range(L):
        # Decoder self-attn with diagonal tgt mask: fold v_proj and out_proj.
        w_sa = params["d_sa_wv"][l] @ params["d_sa_wo"][l]
        b_sa = params["d_sa_bv"][l] @ params["d_sa_wo"][l] + params["d_sa_bo"][l]
        wq = params["d_ca_wq"][l] * scale                       # fold Q scale
        bq = params["d_ca_bq"][l] * scale
        mats += [(f"d_sa{l}", w_sa), (f"d_wq{l}", wq),
                 (f"d_wkv{l}", params["d_ca_wkv"][l]), (f"d_wo{l}", params["d_ca_wo"][l]),
                 (f"d_w1{l}", params["d_w1"][l]), (f"d_w2{l}", params["d_w2"][l])]
        vecs += [(f"d_sab{l}", b_sa), (f"d_bq{l}", bq),
                 (f"d_bkv{l}", params["d_ca_bkv"][l]), (f"d_bo{l}", params["d_ca_bo"][l]),
                 (f"d_b1{l}", params["d_b1"][l]), (f"d_b2{l}", params["d_b2"][l]),
                 (f"d_ln1g{l}", params["d_ln1g"][l]), (f"d_ln1b{l}", params["d_ln1b"][l]),
                 (f"d_ln2g{l}", params["d_ln2g"][l]), (f"d_ln2b{l}", params["d_ln2b"][l]),
                 (f"d_ln3g{l}", params["d_ln3g"][l]), (f"d_ln3b{l}", params["d_ln3b"][l])]
    mats.append(("wc", params["wc"]))
    vecs.append(("bc", params["bc"]))

    w_pack, wmap = _pack_mats(mats)
    b_pack, bmap = _pack_vecs(vecs)
    return w_pack, b_pack, wmap, bmap


# ------------------------------ host wrapper ----------------------------------

def build_ppd_forward(wmap, bmap, *, B, S_train, S_test, H, L, D, C):
    kernel = functools.partial(_ppd_kernel, wmap=wmap, bmap=bmap,
                               B=B, S_train=S_train, S_test=S_test,
                               H=H, L=L, D=D, C=C)
    n_rows = B * max(S_train, S_test)

    def forward(w_pack, b_pack, x_train, x_test):
        xtr = x_train.reshape(B * S_train, D)
        xte = x_test.reshape(B * S_test, D)
        # Single ungridded call: only 4 input DMAs, everything VMEM-resident.
        # Working set <0.5 MiB — far under the scoped VMEM limit on v5e/v6e/v7x,
        # so no vmem_limit_bytes tuning or capacity tiling is needed.
        logits = pl.pallas_call(
            kernel,
            out_shape=jax.ShapeDtypeStruct((B * S_test, C), jnp.float32),
            in_specs=[pl.BlockSpec(memory_space=pltpu.MemorySpace.VMEM)] * 4,
            out_specs=pl.BlockSpec(memory_space=pltpu.MemorySpace.VMEM),
            scratch_shapes=[pltpu.VMEM((n_rows, D), jnp.float32)],
        )(w_pack, b_pack, xtr, xte)
        return logits.reshape(B, S_test, C)

    return jax.jit(forward)


# ------------------------------ param init ------------------------------------

def init_ppd(key, model_dim, hidden_dim, num_layers, nb_class):
    D, HID, L, C = model_dim, hidden_dim, num_layers, nb_class
    ks = jax.random.split(key, 24)
    s, sb = 0.05, 0.02

    def n(k, *sh):
        return jax.random.normal(k, sh, jnp.float32)

    def z(*sh):
        return jnp.zeros(sh, jnp.float32)

    def o(*sh):
        return jnp.ones(sh, jnp.float32)

    # NOTE: decoder self-attention q/k projections are omitted on purpose —
    # with the diagonal-only tgt mask they cannot affect the output.
    return {
        # encoder layers (stacked over L)
        "e_wqkv": n(ks[0], L, D, 3 * D) * s, "e_bqkv": n(ks[1], L, 3 * D) * sb,
        "e_wo": n(ks[2], L, D, D) * s, "e_bo": n(ks[3], L, D) * sb,
        "e_w1": n(ks[4], L, D, HID) * s, "e_b1": n(ks[5], L, HID) * sb,
        "e_w2": n(ks[6], L, HID, D) * s, "e_b2": n(ks[7], L, D) * sb,
        "e_ln1g": o(L, D), "e_ln1b": z(L, D),
        "e_ln2g": o(L, D), "e_ln2b": z(L, D),
        # decoder layers (stacked over L)
        "d_sa_wv": n(ks[8], L, D, D) * s, "d_sa_bv": n(ks[9], L, D) * sb,
        "d_sa_wo": n(ks[10], L, D, D) * s, "d_sa_bo": n(ks[11], L, D) * sb,
        "d_ca_wq": n(ks[12], L, D, D) * s, "d_ca_bq": n(ks[13], L, D) * sb,
        "d_ca_wkv": n(ks[14], L, D, 2 * D) * s, "d_ca_bkv": n(ks[15], L, 2 * D) * sb,
        "d_ca_wo": n(ks[16], L, D, D) * s, "d_ca_bo": n(ks[17], L, D) * sb,
        "d_w1": n(ks[18], L, D, HID) * s, "d_b1": n(ks[19], L, HID) * sb,
        "d_w2": n(ks[20], L, HID, D) * s, "d_b2": n(ks[21], L, D) * sb,
        "d_ln1g": o(L, D), "d_ln1b": z(L, D),
        "d_ln2g": o(L, D), "d_ln2b": z(L, D),
        "d_ln3g": o(L, D), "d_ln3b": z(L, D),
        # classifier head
        "wc": n(ks[22], D, C) * s, "bc": n(ks[23], C) * sb,
    }


# --------------------------------- main ----------------------------------------

if __name__ == "__main__":
    MODEL_DIM = 32
    HIDDEN_DIM = 64
    NHEADS = 4
    NUM_LAYERS = 2
    NB_CLASS = 3
    BATCH = 2
    SEQ_TRAIN = 8
    SEQ_TEST = 8

    root = jax.random.PRNGKey(0)
    k_params, k_train, k_test = jax.random.split(root, 3)

    params = init_ppd(k_params, MODEL_DIM, HIDDEN_DIM, NUM_LAYERS, NB_CLASS)
    x_train = jax.random.normal(k_train, (BATCH, SEQ_TRAIN, MODEL_DIM), jnp.float32)
    x_test = jax.random.normal(k_test, (BATCH, SEQ_TEST, MODEL_DIM), jnp.float32)

    # Host-side: fold constants + pack all params into 2 buffers (done once).
    w_pack, b_pack, wmap, bmap = pack_params(params, NHEADS)

    fwd = build_ppd_forward(wmap, bmap, B=BATCH, S_train=SEQ_TRAIN, S_test=SEQ_TEST,
                            H=NHEADS, L=NUM_LAYERS, D=MODEL_DIM, C=NB_CLASS)
    out = jax.block_until_ready(fwd(w_pack, b_pack, x_train, x_test))

    assert out.shape == (BATCH, SEQ_TEST, NB_CLASS), out.shape
    assert bool(jnp.all(jnp.isfinite(out))), "non-finite output"
    print("KERNEL_OK")
</pallas_src>

<mosaic_0001>
module attributes {stable_mosaic.version = 11 : i64} {
  func.func @_ppd_kernel(%arg0: memref<800x128xbf16, #tpu.memory_space<vmem>>, %arg1: memref<41x128xf32, #tpu.memory_space<vmem>>, %arg2: memref<16x32xf32, #tpu.memory_space<vmem>>, %arg3: memref<16x32xf32, #tpu.memory_space<vmem>>, %arg4: memref<16x3xf32, #tpu.memory_space<vmem>>, %arg5: memref<16x32xf32, #tpu.memory_space<vmem>>) attributes {dimension_semantics = [], scalar_prefetch = 0 : i64, scratch_operands = 1 : i64, tpu.core_type = #tpu.core_type<tc>} {
    %0 = tpu.iota {dimensions = array<i32: 0>} : vector<16x16xi32>
    %1 = tpu.iota {dimensions = array<i32: 1>} : vector<16x16xi32>
    %false = arith.constant false
    %2 = vector.broadcast %false : i1 to vector<16x16xi1>
    %c0_i32 = arith.constant 0 : i32
    %3 = vector.broadcast %c0_i32 : i32 to vector<16x16xi32>
    %4 = arith.cmpi sge, %0, %3 : vector<16x16xi32>
    %c8_i32 = arith.constant 8 : i32
    %5 = vector.broadcast %c8_i32 : i32 to vector<16x16xi32>
    %6 = arith.cmpi slt, %0, %5 : vector<16x16xi32>
    %7 = arith.andi %4, %6 : vector<16x16xi1>
    %c0_i32_0 = arith.constant 0 : i32
    %8 = vector.broadcast %c0_i32_0 : i32 to vector<16x16xi32>
    %9 = arith.cmpi sge, %1, %8 : vector<16x16xi32>
    %10 = arith.andi %7, %9 : vector<16x16xi1>
    %c8_i32_1 = arith.constant 8 : i32
    %11 = vector.broadcast %c8_i32_1 : i32 to vector<16x16xi32>
    %12 = arith.cmpi slt, %1, %11 : vector<16x16xi32>
    %13 = arith.andi %10, %12 : vector<16x16xi1>
    %14 = arith.ori %2, %13 : vector<16x16xi1>
    %c8_i32_2 = arith.constant 8 : i32
    %15 = vector.broadcast %c8_i32_2 : i32 to vector<16x16xi32>
    %16 = arith.cmpi sge, %0, %15 : vector<16x16xi32>
    %c16_i32 = arith.constant 16 : i32
    %17 = vector.broadcast %c16_i32 : i32 to vector<16x16xi32>
    %18 = arith.cmpi slt, %0, %17 : vector<16x16xi32>
    %19 = arith.andi %16, %18 : vector<16x16xi1>
    %c8_i32_3 = arith.constant 8 : i32
    %20 = vector.broadcast %c8_i32_3 : i32 to vector<16x16xi32>
    %21 = arith.cmpi sge, %1, %20 : vector<16x16xi32>
    %22 = arith.andi %19, %21 : vector<16x16xi1>
    %c16_i32_4 = arith.constant 16 : i32
    %23 = vector.broadcast %c16_i32_4 : i32 to vector<16x16xi32>
    %24 = arith.cmpi slt, %1, %23 : vector<16x16xi32>
    %25 = arith.andi %22, %24 : vector<16x16xi1>
    %26 = arith.ori %14, %25 : vector<16x16xi1>
    %cst = arith.constant 0.000000e+00 : f32
    %cst_5 = arith.constant -1.000000e+30 : f32
    %27 = vector.broadcast %cst : f32 to vector<16x16xf32>
    %28 = vector.broadcast %cst_5 : f32 to vector<16x16xf32>
    %29 = arith.select %26, %27, %28 : vector<16x16xi1>, vector<16x16xf32>
    %30 = tpu.iota {dimensions = array<i32: 0>} : vector<16x16xi32>
    %31 = tpu.iota {dimensions = array<i32: 1>} : vector<16x16xi32>
    %false_6 = arith.constant false
    %32 = vector.broadcast %false_6 : i1 to vector<16x16xi1>
    %c0_i32_7 = arith.constant 0 : i32
    %33 = vector.broadcast %c0_i32_7 : i32 to vector<16x16xi32>
    %34 = arith.cmpi sge, %30, %33 : vector<16x16xi32>
    %c8_i32_8 = arith.constant 8 : i32
    %35 = vector.broadcast %c8_i32_8 : i32 to vector<16x16xi32>
    %36 = arith.cmpi slt, %30, %35 : vector<16x16xi32>
    %37 = arith.andi %34, %36 : vector<16x16xi1>
    %c0_i32_9 = arith.constant 0 : i32
    %38 = vector.broadcast %c0_i32_9 : i32 to vector<16x16xi32>
    %39 = arith.cmpi sge, %31, %38 : vector<16x16xi32>
    %40 = arith.andi %37, %39 : vector<16x16xi1>
    %c8_i32_10 = arith.constant 8 : i32
    %41 = vector.broadcast %c8_i32_10 : i32 to vector<16x16xi32>
    %42 = arith.cmpi slt, %31, %41 : vector<16x16xi32>
    %43 = arith.andi %40, %42 : vector<16x16xi1>
    %44 = arith.ori %32, %43 : vector<16x16xi1>
    %c8_i32_11 = arith.constant 8 : i32
    %45 = vector.broadcast %c8_i32_11 : i32 to vector<16x16xi32>
    %46 = arith.cmpi sge, %30, %45 : vector<16x16xi32>
    %c16_i32_12 = arith.constant 16 : i32
    %47 = vector.broadcast %c16_i32_12 : i32 to vector<16x16xi32>
    %48 = arith.cmpi slt, %30, %47 : vector<16x16xi32>
    %49 = arith.andi %46, %48 : vector<16x16xi1>
    %c8_i32_13 = arith.constant 8 : i32
    %50 = vector.broadcast %c8_i32_13 : i32 to vector<16x16xi32>
    %51 = arith.cmpi sge, %31, %50 : vector<16x16xi32>
    %52 = arith.andi %49, %51 : vector<16x16xi1>
    %c16_i32_14 = arith.constant 16 : i32
    %53 = vector.broadcast %c16_i32_14 : i32 to vector<16x16xi32>
    %54 = arith.cmpi slt, %31, %53 : vector<16x16xi32>
    %55 = arith.andi %52, %54 : vector<16x16xi1>
    %56 = arith.ori %44, %55 : vector<16x16xi1>
    %cst_15 = arith.constant 0.000000e+00 : f32
    %cst_16 = arith.constant -1.000000e+30 : f32
    %57 = vector.broadcast %cst_15 : f32 to vector<16x16xf32>
    %58 = vector.broadcast %cst_16 : f32 to vector<16x16xf32>
    %59 = arith.select %56, %57, %58 : vector<16x16xi1>, vector<16x16xf32>
    %c0 = arith.constant 0 : index
    %c0_17 = arith.constant 0 : index
    %60 = vector.load %arg2[%c0, %c0_17] : memref<16x32xf32, #tpu.memory_space<vmem>>, vector<16x32xf32>
    %c0_18 = arith.constant 0 : index
    %c0_19 = arith.constant 0 : index
    %61 = vector.load %arg0[%c0_18, %c0_19] : memref<800x128xbf16, #tpu.memory_space<vmem>>, vector<32x96xbf16>
    %62 = arith.truncf %60 : vector<16x32xf32> to vector<16x32xbf16>
    %cst_20 = arith.constant dense<0.000000e+00> : vector<16x96xf32>
    %63 = tpu.matmul %62, %61, %cst_20 {dimension_numbers = #tpu.dot_dimension_numbers<[1], [0], [0], [1], [0, 0, 1, 1], [], []>} : vector<16x32xbf16>, vector<32x96xbf16>, vector<16x96xf32> -> vector<16x96xf32>
    %c0_21 = arith.constant 0 : index
    %c0_22 = arith.constant 0 : index
    %64 = vector.load %arg1[%c0_21, %c0_22] : memref<41x128xf32, #tpu.memory_space<vmem>>, vector<1x96xf32>
    %65 = vector.broadcast %64 : vector<1x96xf32> to vector<16x96xf32>
    %66 = arith.addf %63, %65 : vector<16x96xf32>
    %67 = vector.extract_strided_slice %66 {offsets = [0, 0], sizes = [16, 32], strides = [1, 1]} : vector<16x96xf32> to vector<16x32xf32>
    %68 = vector.extract_strided_slice %66 {offsets = [0, 32], sizes = [16, 32], strides = [1, 1]} : vector<16x96xf32> to vector<16x32xf32>
    %69 = vector.extract_strided_slice %66 {offsets = [0, 64], sizes = [16, 32], strides = [1, 1]} : vector<16x96xf32> to vector<16x32xf32>
    %70 = vector.extract_strided_slice %67 {offsets = [0, 0], sizes = [16, 8], strides = [1, 1]} : vector<16x32xf32> to vector<16x8xf32>
    %71 = vector.extract_strided_slice %68 {offsets = [0, 0], sizes = [16, 8], strides = [1, 1]} : vector<16x32xf32> to vector<16x8xf32>
    %72 = arith.truncf %70 : vector<16x8xf32> to vector<16x8xbf16>
    %73 = arith.truncf %71 : vector<16x8xf32> to vector<16x8xbf16>
    %cst_23 = arith.constant dense<0.000000e+00> : vector<16x16xf32>
    %74 = tpu.matmul %72, %73, %cst_23 {dimension_numbers = #tpu.dot_dimension_numbers<[1], [1], [0], [0], [0, 0, 1, 0], [], []>} : vector<16x8xbf16>, vector<16x8xbf16>, vector<16x16xf32> -> vector<16x16xf32>
    %75 = arith.addf %74, %29 : vector<16x16xf32>
    %cst_24 = arith.constant dense<0xFF800000> : vector<16xf32>
    %76 = vector.multi_reduction <maximumf>, %75, %cst_24 [1] : vector<16x16xf32> to vector<16xf32>
    %77 = vector.shape_cast %76 : vector<16xf32> to vector<16x1xf32>
    %78 = vector.broadcast %77 : vector<16x1xf32> to vector<16x16xf32>
    %79 = arith.subf %75, %78 : vector<16x16xf32>
    %80 = math.exp %79 : vector<16x16xf32>
    %cst_25 = arith.constant dense<0.000000e+00> : vector<16xf32>
    %81 = vector.multi_reduction <add>, %80, %cst_25 [1] : vector<16x16xf32> to vector<16xf32>
    %82 = vector.shape_cast %81 : vector<16xf32> to vector<16x1xf32>
    %83 = tpu.reciprocal %82 {approx = true} : vector<16x1xf32> -> vector<16x1xf32>
    %84 = vector.broadcast %83 : vector<16x1xf32> to vector<16x16xf32>
    %85 = arith.mulf %80, %84 : vector<16x16xf32>
    %86 = vector.extract_strided_slice %69 {offsets = [0, 0], sizes = [16, 8], strides = [1, 1]} : vector<16x32xf32> to vector<16x8xf32>
    %87 = arith.truncf %85 : vector<16x16xf32> to vector<16x16xbf16>
    %88 = arith.truncf %86 : vector<16x8xf32> to vector<16x8xbf16>
    %cst_26 = arith.constant dense<0.000000e+00> : vector<16x8xf32>
    %89 = tpu.matmul %87, %88, %cst_26 {dimension_numbers = #tpu.dot_dimension_numbers<[1], [0], [0], [1], [0, 0, 1, 1], [], []>} : vector<16x16xbf16>, vector<16x8xbf16>, vector<16x8xf32> -> vector<16x8xf32>
    %c0_27 = arith.constant 0 : index
    %c0_28 = arith.constant 0 : index
    %90 = vector.load %arg5[%c0_27, %c0_28] : memref<16x32xf32, #tpu.memory_space<vmem>>, vector<16x8xf32>
    tpu.vector_store %arg5[%c0_27, %c0_28], %89 {strides = array<i32>} : memref<16x32xf32, #tpu.memory_space<vmem>>, vector<16x8xf32>,
    %91 = vector.extract_strided_slice %67 {offsets = [0, 8], sizes = [16, 8], strides = [1, 1]} : vector<16x32xf32> to vector<16x8xf32>
    %92 = vector.extract_strided_slice %68 {offsets = [0, 8], sizes = [16, 8], strides = [1, 1]} : vector<16x32xf32> to vector<16x8xf32>
    %93 = arith.truncf %91 : vector<16x8xf32> to vector<16x8xbf16>
    %94 = arith.truncf %92 : vector<16x8xf32> to vector<16x8xbf16>
    %cst_29 = arith.constant dense<0.000000e+00> : vector<16x16xf32>
    %95 = tpu.matmul %93, %94, %cst_29 {dimension_numbers = #tpu.dot_dimension_numbers<[1], [1], [0], [0], [0, 0, 1, 0], [], []>} : vector<16x8xbf16>, vector<16x8xbf16>, vector<16x16xf32> -> vector<16x16xf32>
    %96 = arith.addf %95, %29 : vector<16x16xf32>
    %cst_30 = arith.constant dense<0xFF800000> : vector<16xf32>
    %97 = vector.multi_reduction <maximumf>, %96, %cst_30 [1] : vector<16x16xf32> to vector<16xf32>
    %98 = vector.shape_cast %97 : vector<16xf32> to vector<16x1xf32>
    %99 = vector.broadcast %98 : vector<16x1xf32> to vector<16x16xf32>
    %100 = arith.subf %96, %99 : vector<16x16xf32>
    %101 = math.exp %100 : vector<16x16xf32>
    %cst_31 = arith.constant dense<0.000000e+00> : vector<16xf32>
    %102 = vector.multi_reduction <add>, %101, %cst_31 [1] : vector<16x16xf32> to vector<16xf32>
    %103 = vector.shape_cast %102 : vector<16xf32> to vector<16x1xf32>
    %104 = tpu.reciprocal %103 {approx = true} : vector<16x1xf32> -> vector<16x1xf32>
    %105 = vector.broadcast %104 : vector<16x1xf32> to vector<16x16xf32>
    %106 = arith.mulf %101, %105 : vector<16x16xf32>
    %107 = vector.extract_strided_slice %69 {offsets = [0, 8], sizes = [16, 8], strides = [1, 1]} : vector<16x32xf32> to vector<16x8xf32>
    %108 = arith.truncf %106 : vector<16x16xf32> to vector<16x16xbf16>
    %109 = arith.truncf %107 : vector<16x8xf32> to vector<16x8xbf16>
    %cst_32 = arith.constant dense<0.000000e+00> : vector<16x8xf32>
    %110 = tpu.matmul %108, %109, %cst_32 {dimension_numbers = #tpu.dot_dimension_numbers<[1], [0], [0], [1], [0, 0, 1, 1], [], []>} : vector<16x16xbf16>, vector<16x8xbf16>, vector<16x8xf32> -> vector<16x8xf32>
    %c0_33 = arith.constant 0 : index
    %c8 = arith.constant 8 : index
    %111 = vector.load %arg5[%c0_33, %c8] : memref<16x32xf32, #tpu.memory_space<vmem>>, vector<16x8xf32>
    tpu.vector_store %arg5[%c0_33, %c8], %110 {strides = array<i32>} : memref<16x32xf32, #tpu.memory_space<vmem>>, vector<16x8xf32>,
    %112 = vector.extract_strided_slice %67 {offsets = [0, 16], sizes = [16, 8], strides = [1, 1]} : vector<16x32xf32> to vector<16x8xf32>
    %113 = vector.extract_strided_slice %68 {offsets = [0, 16], sizes = [16, 8], strides = [1, 1]} : vector<16x32xf32> to vector<16x8xf32>
    %114 = arith.truncf %112 : vector<16x8xf32> to vector<16x8xbf16>
    %115 = arith.truncf %113 : vector<16x8xf32> to vector<16x8xbf16>
    %cst_34 = arith.constant dense<0.000000e+00> : vector<16x16xf32>
    %116 = tpu.matmul %114, %115, %cst_34 {dimension_numbers = #tpu.dot_dimension_numbers<[1], [1], [0], [0], [0, 0, 1, 0], [], []>} : vector<16x8xbf16>, vector<16x8xbf16>, vector<16x16xf32> -> vector<16x16xf32>
    %117 = arith.addf %116, %29 : vector<16x16xf32>
    %cst_35 = arith.constant dense<0xFF800000> : vector<16xf32>
    %118 = vector.multi_reduction <maximumf>, %117, %cst_35 [1] : vector<16x16xf32> to vector<16xf32>
    %119 = vector.shape_cast %118 : vector<16xf32> to vector<16x1xf32>
    %120 = vector.broadcast %119 : vector<16x1xf32> to vector<16x16xf32>
    %121 = arith.subf %117, %120 : vector<16x16xf32>
    %122 = math.exp %121 : vector<16x16xf32>
    %cst_36 = arith.constant dense<0.000000e+00> : vector<16xf32>
    %123 = vector.multi_reduction <add>, %122, %cst_36 [1] : vector<16x16xf32> to vector<16xf32>
    %124 = vector.shape_cast %123 : vector<16xf32> to vector<16x1xf32>
    %125 = tpu.reciprocal %124 {approx = true} : vector<16x1xf32> -> vector<16x1xf32>
    %126 = vector.broadcast %125 : vector<16x1xf32> to vector<16x16xf32>
    %127 = arith.mulf %122, %126 : vector<16x16xf32>
    %128 = vector.extract_strided_slice %69 {offsets = [0, 16], sizes = [16, 8], strides = [1, 1]} : vector<16x32xf32> to vector<16x8xf32>
    %129 = arith.truncf %127 : vector<16x16xf32> to vector<16x16xbf16>
    %130 = arith.truncf %128 : vector<16x8xf32> to vector<16x8xbf16>
    %cst_37 = arith.constant dense<0.000000e+00> : vector<16x8xf32>
    %131 = tpu.matmul %129, %130, %cst_37 {dimension_numbers = #tpu.dot_dimension_numbers<[1], [0], [0], [1], [0, 0, 1, 1], [], []>} : vector<16x16xbf16>, vector<16x8xbf16>, vector<16x8xf32> -> vector<16x8xf32>
    %c0_38 = arith.constant 0 : index
    %c16 = arith.constant 16 : index
    %132 = vector.load %arg5[%c0_38, %c16] : memref<16x32xf32, #tpu.memory_space<vmem>>, vector<16x8xf32>
    tpu.vector_store %arg5[%c0_38, %c16], %131 {strides = array<i32>} : memref<16x32xf32, #tpu.memory_space<vmem>>, vector<16x8xf32>,
    %133 = vector.extract_strided_slice %67 {offsets = [0, 24], sizes = [16, 8], strides = [1, 1]} : vector<16x32xf32> to vector<16x8xf32>
    %134 = vector.extract_strided_slice %68 {offsets = [0, 24], sizes = [16, 8], strides = [1, 1]} : vector<16x32xf32> to vector<16x8xf32>
    %135 = arith.truncf %133 : vector<16x8xf32> to vector<16x8xbf16>
    %136 = arith.truncf %134 : vector<16x8xf32> to vector<16x8xbf16>
    %cst_39 = arith.constant dense<0.000000e+00> : vector<16x16xf32>
    %137 = tpu.matmul %135, %136, %cst_39 {dimension_numbers = #tpu.dot_dimension_numbers<[1], [1], [0], [0], [0, 0, 1, 0], [], []>} : vector<16x8xbf16>, vector<16x8xbf16>, vector<16x16xf32> -> vector<16x16xf32>
    %138 = arith.addf %137, %29 : vector<16x16xf32>
    %cst_40 = arith.constant dense<0xFF800000> : vector<16xf32>
    %139 = vector.multi_reduction <maximumf>, %138, %cst_40 [1] : vector<16x16xf32> to vector<16xf32>
    %140 = vector.shape_cast %139 : vector<16xf32> to vector<16x1xf32>
    %141 = vector.broadcast %140 : vector<16x1xf32> to vector<16x16xf32>
    %142 = arith.subf %138, %141 : vector<16x16xf32>
    %143 = math.exp %142 : vector<16x16xf32>
    %cst_41 = arith.constant dense<0.000000e+00> : vector<16xf32>
    %144 = vector.multi_reduction <add>, %143, %cst_41 [1] : vector<16x16xf32> to vector<16xf32>
    %145 = vector.shape_cast %144 : vector<16xf32> to vector<16x1xf32>
    %146 = tpu.reciprocal %145 {approx = true} : vector<16x1xf32> -> vector<16x1xf32>
    %147 = vector.broadcast %146 : vector<16x1xf32> to vector<16x16xf32>
    %148 = arith.mulf %143, %147 : vector<16x16xf32>
    %149 = vector.extract_strided_slice %69 {offsets = [0, 24], sizes = [16, 8], strides = [1, 1]} : vector<16x32xf32> to vector<16x8xf32>
    %150 = arith.truncf %148 : vector<16x16xf32> to vector<16x16xbf16>
    %151 = arith.truncf %149 : vector<16x8xf32> to vector<16x8xbf16>
    %cst_42 = arith.constant dense<0.000000e+00> : vector<16x8xf32>
    %152 = tpu.matmul %150, %151, %cst_42 {dimension_numbers = #tpu.dot_dimension_numbers<[1], [0], [0], [1], [0, 0, 1, 1], [], []>} : vector<16x16xbf16>, vector<16x8xbf16>, vector<16x8xf32> -> vector<16x8xf32>
    %c0_43 = arith.constant 0 : index
    %c24 = arith.constant 24 : index
    %153 = vector.load %arg5[%c0_43, %c24] : memref<16x32xf32, #tpu.memory_space<vmem>>, vector<16x8xf32>
    tpu.vector_store %arg5[%c0_43, %c24], %152 {strides = array<i32>} : memref<16x32xf32, #tpu.memory_space<vmem>>, vector<16x8xf32>,
    %c0_44 = arith.constant 0 : index
    %c0_45 = arith.constant 0 : index
    %154 = vector.load %arg5[%c0_44, %c0_45] : memref<16x32xf32, #tpu.memory_space<vmem>>, vector<16x32xf32>
    %c32 = arith.constant 32 : index
    %c0_46 = arith.constant 0 : index
    %155 = vector.load %arg0[%c32, %c0_46] : memref<800x128xbf16, #tpu.memory_space<vmem>>, vector<32x32xbf16>
    %156 = arith.truncf %154 : vector<16x32xf32> to vector<16x32xbf16>
    %cst_47 = arith.constant dense<0.000000e+00> : vector<16x32xf32>
    %157 = tpu.matmul %156, %155, %cst_47 {dimension_numbers = #tpu.dot_dimension_numbers<[1], [0], [0], [1], [0, 0, 1, 1], [], []>} : vector<16x32xbf16>, vector<32x32xbf16>, vector<16x32xf32> -> vector<16x32xf32>
    %c1 = arith.constant 1 : index
    %c0_48 = arith.constant 0 : index
    %158 = vector.load %arg1[%c1, %c0_48] : memref<41x128xf32, #tpu.memory_space<vmem>>, vector<1x32xf32>
    %159 = vector.broadcast %158 : vector<1x32xf32> to vector<16x32xf32>
    %160 = arith.addf %157, %159 : vector<16x32xf32>
    %161 = arith.addf %60, %160 : vector<16x32xf32>
    %c4 = arith.constant 4 : index
    %c0_49 = arith.constant 0 : index
    %162 = vector.load %arg1[%c4, %c0_49] : memref<41x128xf32, #tpu.memory_space<vmem>>, vector<1x32xf32>
    %c5 = arith.constant 5 : index
    %c0_50 = arith.constant 0 : index
    %163 = vector.load %arg1[%c5, %c0_50] : memref<41x128xf32, #tpu.memory_space<vmem>>, vector<1x32xf32>
    %cst_51 = arith.constant dense<0.000000e+00> : vector<16xf32>
    %164 = vector.multi_reduction <add>, %161, %cst_51 [1] : vector<16x32xf32> to vector<16xf32>
    %165 = vector.shape_cast %164 : vector<16xf32> to vector<16x1xf32>
    %cst_52 = arith.constant 3.200000e+01 : f32
    %166 = vector.broadcast %cst_52 : f32 to vector<16x1xf32>
    %167 = arith.divf %165, %166 : vector<16x1xf32>
    %168 = vector.broadcast %167 : vector<16x1xf32> to vector<16x32xf32>
    %169 = arith.subf %161, %168 : vector<16x32xf32>
    %170 = arith.mulf %169, %169 : vector<16x32xf32>
    %cst_53 = arith.constant dense<0.000000e+00> : vector<16xf32>
    %171 = vector.multi_reduction <add>, %170, %cst_53 [1] : vector<16x32xf32> to vector<16xf32>
    %172 = vector.shape_cast %171 : vector<16xf32> to vector<16x1xf32>
    %cst_54 = arith.constant 3.200000e+01 : f32
    %173 = vector.broadcast %cst_54 : f32 to vector<16x1xf32>
    %174 = arith.divf %172, %173 : vector<16x1xf32>
    %cst_55 = arith.constant 9.99999974E-6 : f32
    %175 = vector.broadcast %cst_55 : f32 to vector<16x1xf32>
    %176 = arith.addf %174, %175 : vector<16x1xf32>
    %177 = math.rsqrt %176 : vector<16x1xf32>
    %178 = vector.broadcast %177 : vector<16x1xf32> to vector<16x32xf32>
    %179 = arith.mulf %169, %178 : vector<16x32xf32>
    %180 = vector.broadcast %162 : vector<1x32xf32> to vector<16x32xf32>
    %181 = arith.mulf %179, %180 : vector<16x32xf32>
    %182 = vector.broadcast %163 : vector<1x32xf32> to vector<16x32xf32>
    %183 = arith.addf %181, %182 : vector<16x32xf32>
    %c64 = arith.constant 64 : index
    %c0_56 = arith.constant 0 : index
    %184 = vector.load %arg0[%c64, %c0_56] : memref<800x128xbf16, #tpu.memory_space<vmem>>, vector<32x64xbf16>
    %185 = arith.truncf %183 : vector<16x32xf32> to vector<16x32xbf16>
    %cst_57 = arith.constant dense<0.000000e+00> : vector<16x64xf32>
    %186 = tpu.matmul %185, %184, %cst_57 {dimension_numbers = #tpu.dot_dimension_numbers<[1], [0], [0], [1], [0, 0, 1, 1], [], []>} : vector<16x32xbf16>, vector<32x64xbf16>, vector<16x64xf32> -> vector<16x64xf32>
    %c2 = arith.constant 2 : index
    %c0_58 = arith.constant 0 : index
    %187 = vector.load %arg1[%c2, %c0_58] : memref<41x128xf32, #tpu.memory_space<vmem>>, vector<1x64xf32>
    %188 = vector.broadcast %187 : vector<1x64xf32> to vector<16x64xf32>
    %189 = arith.addf %186, %188 : vector<16x64xf32>
    %cst_59 = arith.constant 0.000000e+00 : f32
    %190 = vector.broadcast %cst_59 : f32 to vector<16x64xf32>
    %191 = arith.maximumf %189, %190 : vector<16x64xf32>
    %192 = math.absf %189 : vector<16x64xf32>
    %cst_60 = arith.constant 0.000000e+00 : f32
    %193 = vector.broadcast %cst_60 : f32 to vector<16x64xf32>
    %194 = arith.subf %193, %192 : vector<16x64xf32>
    %195 = math.exp %194 : vector<16x64xf32>
    %196 = math.log1p %195 : vector<16x64xf32>
    %197 = arith.addf %191, %196 : vector<16x64xf32>
    %198 = math.tanh %197 : vector<16x64xf32>
    %199 = arith.mulf %189, %198 : vector<16x64xf32>
    %c96 = arith.constant 96 : index
    %c0_61 = arith.constant 0 : index
    %200 = vector.load %arg0[%c96, %c0_61] : memref<800x128xbf16, #tpu.memory_space<vmem>>, vector<64x32xbf16>
    %201 = arith.truncf %199 : vector<16x64xf32> to vector<16x64xbf16>
    %cst_62 = arith.constant dense<0.000000e+00> : vector<16x32xf32>
    %202 = tpu.matmul %201, %200, %cst_62 {dimension_numbers = #tpu.dot_dimension_numbers<[1], [0], [0], [1], [0, 0, 1, 1], [], []>} : vector<16x64xbf16>, vector<64x32xbf16>, vector<16x32xf32> -> vector<16x32xf32>
    %c3 = arith.constant 3 : index
    %c0_63 = arith.constant 0 : index
    %203 = vector.load %arg1[%c3, %c0_63] : memref<41x128xf32, #tpu.memory_space<vmem>>, vector<1x32xf32>
    %204 = vector.broadcast %203 : vector<1x32xf32> to vector<16x32xf32>
    %205 = arith.addf %202, %204 : vector<16x32xf32>
    %206 = arith.addf %183, %205 : vector<16x32xf32>
    %c6 = arith.constant 6 : index
    %c0_64 = arith.constant 0 : index
    %207 = vector.load %arg1[%c6, %c0_64] : memref<41x128xf32, #tpu.memory_space<vmem>>, vector<1x32xf32>
    %c7 = arith.constant 7 : index
    %c0_65 = arith.constant 0 : index
    %208 = vector.load %arg1[%c7, %c0_65] : memref<41x128xf32, #tpu.memory_space<vmem>>, vector<1x32xf32>
    %cst_66 = arith.constant dense<0.000000e+00> : vector<16xf32>
    %209 = vector.multi_reduction <add>, %206, %cst_66 [1] : vector<16x32xf32> to vector<16xf32>
    %210 = vector.shape_cast %209 : vector<16xf32> to vector<16x1xf32>
    %cst_67 = arith.constant 3.200000e+01 : f32
    %211 = vector.broadcast %cst_67 : f32 to vector<16x1xf32>
    %212 = arith.divf %210, %211 : vector<16x1xf32>
    %213 = vector.broadcast %212 : vector<16x1xf32> to vector<16x32xf32>
    %214 = arith.subf %206, %213 : vector<16x32xf32>
    %215 = arith.mulf %214, %214 : vector<16x32xf32>
    %cst_68 = arith.constant dense<0.000000e+00> : vector<16xf32>
    %216 = vector.multi_reduction <add>, %215, %cst_68 [1] : vector<16x32xf32> to vector<16xf32>
    %217 = vector.shape_cast %216 : vector<16xf32> to vector<16x1xf32>
    %cst_69 = arith.constant 3.200000e+01 : f32
    %218 = vector.broadcast %cst_69 : f32 to vector<16x1xf32>
    %219 = arith.divf %217, %218 : vector<16x1xf32>
    %cst_70 = arith.constant 9.99999974E-6 : f32
    %220 = vector.broadcast %cst_70 : f32 to vector<16x1xf32>
    %221 = arith.addf %219, %220 : vector<16x1xf32>
    %222 = math.rsqrt %221 : vector<16x1xf32>
    %223 = vector.broadcast %222 : vector<16x1xf32> to vector<16x32xf32>
    %224 = arith.mulf %214, %223 : vector<16x32xf32>
    %225 = vector.broadcast %207 : vector<1x32xf32> to vector<16x32xf32>
    %226 = arith.mulf %224, %225 : vector<16x32xf32>
    %227 = vector.broadcast %208 : vector<1x32xf32> to vector<16x32xf32>
    %228 = arith.addf %226, %227 : vector<16x32xf32>
    %c160 = arith.constant 160 : index
    %c0_71 = arith.constant 0 : index
    %229 = vector.load %arg0[%c160, %c0_71] : memref<800x128xbf16, #tpu.memory_space<vmem>>, vector<32x96xbf16>
    %230 = arith.truncf %228 : vector<16x32xf32> to vector<16x32xbf16>
    %cst_72 = arith.constant dense<0.000000e+00> : vector<16x96xf32>
    %231 = tpu.matmul %230, %229, %cst_72 {dimension_numbers = #tpu.dot_dimension_numbers<[1], [0], [0], [1], [0, 0, 1, 1], [], []>} : vector<16x32xbf16>, vector<32x96xbf16>, vector<16x96xf32> -> vector<16x96xf32>
    %c8_73 = arith.constant 8 : index
    %c0_74 = arith.constant 0 : index
    %232 = vector.load %arg1[%c8_73, %c0_74] : memref<41x128xf32, #tpu.memory_space<vmem>>, vector<1x96xf32>
    %233 = vector.broadcast %232 : vector<1x96xf32> to vector<16x96xf32>
    %234 = arith.addf %231, %233 : vector<16x96xf32>
    %235 = vector.extract_strided_slice %234 {offsets = [0, 0], sizes = [16, 32], strides = [1, 1]} : vector<16x96xf32> to vector<16x32xf32>
    %236 = vector.extract_strided_slice %234 {offsets = [0, 32], sizes = [16, 32], strides = [1, 1]} : vector<16x96xf32> to vector<16x32xf32>
    %237 = vector.extract_strided_slice %234 {offsets = [0, 64], sizes = [16, 32], strides = [1, 1]} : vector<16x96xf32> to vector<16x32xf32>
    %238 = vector.extract_strided_slice %235 {offsets = [0, 0], sizes = [16, 8], strides = [1, 1]} : vector<16x32xf32> to vector<16x8xf32>
    %239 = vector.extract_strided_slice %236 {offsets = [0, 0], sizes = [16, 8], strides = [1, 1]} : vector<16x32xf32> to vector<16x8xf32>
    %240 = arith.truncf %238 : vector<16x8xf32> to vector<16x8xbf16>
    %241 = arith.truncf %239 : vector<16x8xf32> to vector<16x8xbf16>
    %cst_75 = arith.constant dense<0.000000e+00> : vector<16x16xf32>
    %242 = tpu.matmul %240, %241, %cst_75 {dimension_numbers = #tpu.dot_dimension_numbers<[1], [1], [0], [0], [0, 0, 1, 0], [], []>} : vector<16x8xbf16>, vector<16x8xbf16>, vector<16x16xf32> -> vector<16x16xf32>
    %243 = arith.addf %242, %29 : vector<16x16xf32>
    %cst_76 = arith.constant dense<0xFF800000> : vector<16xf32>
    %244 = vector.multi_reduction <maximumf>, %243, %cst_76 [1] : vector<16x16xf32> to vector<16xf32>
    %245 = vector.shape_cast %244 : vector<16xf32> to vector<16x1xf32>
    %246 = vector.broadcast %245 : vector<16x1xf32> to vector<16x16xf32>
    %247 = arith.subf %243, %246 : vector<16x16xf32>
    %248 = math.exp %247 : vector<16x16xf32>
    %cst_77 = arith.constant dense<0.000000e+00> : vector<16xf32>
    %249 = vector.multi_reduction <add>, %248, %cst_77 [1] : vector<16x16xf32> to vector<16xf32>
    %250 = vector.shape_cast %249 : vector<16xf32> to vector<16x1xf32>
    %251 = tpu.reciprocal %250 {approx = true} : vector<16x1xf32> -> vector<16x1xf32>
    %252 = vector.broadcast %251 : vector<16x1xf32> to vector<16x16xf32>
    %253 = arith.mulf %248, %252 : vector<16x16xf32>
    %254 = vector.extract_strided_slice %237 {offsets = [0, 0], sizes = [16, 8], strides = [1, 1]} : vector<16x32xf32> to vector<16x8xf32>
    %255 = arith.truncf %253 : vector<16x16xf32> to vector<16x16xbf16>
    %256 = arith.truncf %254 : vector<16x8xf32> to vector<16x8xbf16>
    %cst_78 = arith.constant dense<0.000000e+00> : vector<16x8xf32>
    %257 = tpu.matmul %255, %256, %cst_78 {dimension_numbers = #tpu.dot_dimension_numbers<[1], [0], [0], [1], [0, 0, 1, 1], [], []>} : vector<16x16xbf16>, vector<16x8xbf16>, vector<16x8xf32> -> vector<16x8xf32>
    %c0_79 = arith.constant 0 : index
    %c0_80 = arith.constant 0 : index
    %258 = vector.load %arg5[%c0_79, %c0_80] : memref<16x32xf32, #tpu.memory_space<vmem>>, vector<16x8xf32>
    tpu.vector_store %arg5[%c0_79, %c0_80], %257 {strides = array<i32>} : memref<16x32xf32, #tpu.memory_space<vmem>>, vector<16x8xf32>,
    %259 = vector.extract_strided_slice %235 {offsets = [0, 8], sizes = [16, 8], strides = [1, 1]} : vector<16x32xf32> to vector<16x8xf32>
    %260 = vector.extract_strided_slice %236 {offsets = [0, 8], sizes = [16, 8], strides = [1, 1]} : vector<16x32xf32> to vector<16x8xf32>
    %261 = arith.truncf %259 : vector<16x8xf32> to vector<16x8xbf16>
    %262 = arith.truncf %260 : vector<16x8xf32> to vector<16x8xbf16>
    %cst_81 = arith.constant dense<0.000000e+00> : vector<16x16xf32>
    %263 = tpu.matmul %261, %262, %cst_81 {dimension_numbers = #tpu.dot_dimension_numbers<[1], [1], [0], [0], [0, 0, 1, 0], [], []>} : vector<16x8xbf16>, vector<16x8xbf16>, vector<16x16xf32> -> vector<16x16xf32>
    %264 = arith.addf %263, %29 : vector<16x16xf32>
    %cst_82 = arith.constant dense<0xFF800000> : vector<16xf32>
    %265 = vector.multi_reduction <maximumf>, %264, %cst_82 [1] : vector<16x16xf32> to vector<16xf32>
    %266 = vector.shape_cast %265 : vector<16xf32> to vector<16x1xf32>
    %267 = vector.broadcast %266 : vector<16x1xf32> to vector<16x16xf32>
    %268 = arith.subf %264, %267 : vector<16x16xf32>
    %269 = math.exp %268 : vector<16x16xf32>
    %cst_83 = arith.constant dense<0.000000e+00> : vector<16xf32>
    %270 = vector.multi_reduction <add>, %269, %cst_83 [1] : vector<16x16xf32> to vector<16xf32>
    %271 = vector.shape_cast %270 : vector<16xf32> to vector<16x1xf32>
    %272 = tpu.reciprocal %271 {approx = true} : vector<16x1xf32> -> vector<16x1xf32>
    %273 = vector.broadcast %272 : vector<16x1xf32> to vector<16x16xf32>
    %274 = arith.mulf %269, %273 : vector<16x16xf32>
    %275 = vector.extract_strided_slice %237 {offsets = [0, 8], sizes = [16, 8], strides = [1, 1]} : vector<16x32xf32> to vector<16x8xf32>
    %276 = arith.truncf %274 : vector<16x16xf32> to vector<16x16xbf16>
    %277 = arith.truncf %275 : vector<16x8xf32> to vector<16x8xbf16>
    %cst_84 = arith.constant dense<0.000000e+00> : vector<16x8xf32>
    %278 = tpu.matmul %276, %277, %cst_84 {dimension_numbers = #tpu.dot_dimension_numbers<[1], [0], [0], [1], [0, 0, 1, 1], [], []>} : vector<16x16xbf16>, vector<16x8xbf16>, vector<16x8xf32> -> vector<16x8xf32>
    %c0_85 = arith.constant 0 : index
    %c8_86 = arith.constant 8 : index
    %279 = vector.load %arg5[%c0_85, %c8_86] : memref<16x32xf32, #tpu.memory_space<vmem>>, vector<16x8xf32>
    tpu.vector_store %arg5[%c0_85, %c8_86], %278 {strides = array<i32>} : memref<16x32xf32, #tpu.memory_space<vmem>>, vector<16x8xf32>,
    %280 = vector.extract_strided_slice %235 {offsets = [0, 16], sizes = [16, 8], strides = [1, 1]} : vector<16x32xf32> to vector<16x8xf32>
    %281 = vector.extract_strided_slice %236 {offsets = [0, 16], sizes = [16, 8], strides = [1, 1]} : vector<16x32xf32> to vector<16x8xf32>
    %282 = arith.truncf %280 : vector<16x8xf32> to vector<16x8xbf16>
    %283 = arith.truncf %281 : vector<16x8xf32> to vector<16x8xbf16>
    %cst_87 = arith.constant dense<0.000000e+00> : vector<16x16xf32>
    %284 = tpu.matmul %282, %283, %cst_87 {dimension_numbers = #tpu.dot_dimension_numbers<[1], [1], [0], [0], [0, 0, 1, 0], [], []>} : vector<16x8xbf16>, vector<16x8xbf16>, vector<16x16xf32> -> vector<16x16xf32>
    %285 = arith.addf %284, %29 : vector<16x16xf32>
    %cst_88 = arith.constant dense<0xFF800000> : vector<16xf32>
    %286 = vector.multi_reduction <maximumf>, %285, %cst_88 [1] : vector<16x16xf32> to vector<16xf32>
    %287 = vector.shape_cast %286 : vector<16xf32> to vector<16x1xf32>
    %288 = vector.broadcast %287 : vector<16x1xf32> to vector<16x16xf32>
    %289 = arith.subf %285, %288 : vector<16x16xf32>
    %290 = math.exp %289 : vector<16x16xf32>
    %cst_89 = arith.constant dense<0.000000e+00> : vector<16xf32>
    %291 = vector.multi_reduction <add>, %290, %cst_89 [1] : vector<16x16xf32> to vector<16xf32>
    %292 = vector.shape_cast %291 : vector<16xf32> to vector<16x1xf32>
    %293 = tpu.reciprocal %292 {approx = true} : vector<16x1xf32> -> vector<16x1xf32>
    %294 = vector.broadcast %293 : vector<16x1xf32> to vector<16x16xf32>
    %295 = arith.mulf %290, %294 : vector<16x16xf32>
    %296 = vector.extract_strided_slice %237 {offsets = [0, 16], sizes = [16, 8], strides = [1, 1]} : vector<16x32xf32> to vector<16x8xf32>
    %297 = arith.truncf %295 : vector<16x16xf32> to vector<16x16xbf16>
    %298 = arith.truncf %296 : vector<16x8xf32> to vector<16x8xbf16>
    %cst_90 = arith.constant dense<0.000000e+00> : vector<16x8xf32>
    %299 = tpu.matmul %297, %298, %cst_90 {dimension_numbers = #tpu.dot_dimension_numbers<[1], [0], [0], [1], [0, 0, 1, 1], [], []>} : vector<16x16xbf16>, vector<16x8xbf16>, vector<16x8xf32> -> vector<16x8xf32>
    %c0_91 = arith.constant 0 : index
    %c16_92 = arith.constant 16 : index
    %300 = vector.load %arg5[%c0_91, %c16_92] : memref<16x32xf32, #tpu.memory_space<vmem>>, vector<16x8xf32>
    tpu.vector_store %arg5[%c0_91, %c16_92], %299 {strides = array<i32>} : memref<16x32xf32, #tpu.memory_space<vmem>>, vector<16x8xf32>,
    %301 = vector.extract_strided_slice %235 {offsets = [0, 24], sizes = [16, 8], strides = [1, 1]} : vector<16x32xf32> to vector<16x8xf32>
    %302 = vector.extract_strided_slice %236 {offsets = [0, 24], sizes = [16, 8], strides = [1, 1]} : vector<16x32xf32> to vector<16x8xf32>
    %303 = arith.truncf %301 : vector<16x8xf32> to vector<16x8xbf16>
    %304 = arith.truncf %302 : vector<16x8xf32> to vector<16x8xbf16>
    %cst_93 = arith.constant dense<0.000000e+00> : vector<16x16xf32>
    %305 = tpu.matmul %303, %304, %cst_93 {dimension_numbers = #tpu.dot_dimension_numbers<[1], [1], [0], [0], [0, 0, 1, 0], [], []>} : vector<16x8xbf16>, vector<16x8xbf16>, vector<16x16xf32> -> vector<16x16xf32>
    %306 = arith.addf %305, %29 : vector<16x16xf32>
    %cst_94 = arith.constant dense<0xFF800000> : vector<16xf32>
    %307 = vector.multi_reduction <maximumf>, %306, %cst_94 [1] : vector<16x16xf32> to vector<16xf32>
    %308 = vector.shape_cast %307 : vector<16xf32> to vector<16x1xf32>
    %309 = vector.broadcast %308 : vector<16x1xf32> to vector<16x16xf32>
    %310 = arith.subf %306, %309 : vector<16x16xf32>
    %311 = math.exp %310 : vector<16x16xf32>
    %cst_95 = arith.constant dense<0.000000e+00> : vector<16xf32>
    %312 = vector.multi_reduction <add>, %311, %cst_95 [1] : vector<16x16xf32> to vector<16xf32>
    %313 = vector.shape_cast %312 : vector<16xf32> to vector<16x1xf32>
    %314 = tpu.reciprocal %313 {approx = true} : vector<16x1xf32> -> vector<16x1xf32>
    %315 = vector.broadcast %314 : vector<16x1xf32> to vector<16x16xf32>
    %316 = arith.mulf %311, %315 : vector<16x16xf32>
    %317 = vector.extract_strided_slice %237 {offsets = [0, 24], sizes = [16, 8], strides = [1, 1]} : vector<16x32xf32> to vector<16x8xf32>
    %318 = arith.truncf %316 : vector<16x16xf32> to vector<16x16xbf16>
    %319 = arith.truncf %317 : vector<16x8xf32> to vector<16x8xbf16>
    %cst_96 = arith.constant dense<0.000000e+00> : vector<16x8xf32>
    %320 = tpu.matmul %318, %319, %cst_96 {dimension_numbers = #tpu.dot_dimension_numbers<[1], [0], [0], [1], [0, 0, 1, 1], [], []>} : vector<16x16xbf16>, vector<16x8xbf16>, vector<16x8xf32> -> vector<16x8xf32>
    %c0_97 = arith.constant 0 : index
    %c24_98 = arith.constant 24 : index
    %321 = vector.load %arg5[%c0_97, %c24_98] : memref<16x32xf32, #tpu.memory_space<vmem>>, vector<16x8xf32>
    tpu.vector_store %arg5[%c0_97, %c24_98], %320 {strides = array<i32>} : memref<16x32xf32, #tpu.memory_space<vmem>>, vector<16x8xf32>,
    %c0_99 = arith.constant 0 : index
    %c0_100 = arith.constant 0 : index
    %322 = vector.load %arg5[%c0_99, %c0_100] : memref<16x32xf32, #tpu.memory_space<vmem>>, vector<16x32xf32>
    %c192 = arith.constant 192 : index
    %c0_101 = arith.constant 0 : index
    %323 = vector.load %arg0[%c192, %c0_101] : memref<800x128xbf16, #tpu.memory_space<vmem>>, vector<32x32xbf16>
    %324 = arith.truncf %322 : vector<16x32xf32> to vector<16x32xbf16>
    %cst_102 = arith.constant dense<0.000000e+00> : vector<16x32xf32>
    %325 = tpu.matmul %324, %323, %cst_102 {dimension_numbers = #tpu.dot_dimension_numbers<[1], [0], [0], [1], [0, 0, 1, 1], [], []>} : vector<16x32xbf16>, vector<32x32xbf16>, vector<16x32xf32> -> vector<16x32xf32>
    %c9 = arith.constant 9 : index
    %c0_103 = arith.constant 0 : index
    %326 = vector.load %arg1[%c9, %c0_103] : memref<41x128xf32, #tpu.memory_space<vmem>>, vector<1x32xf32>
    %327 = vector.broadcast %326 : vector<1x32xf32> to vector<16x32xf32>
    %328 = arith.addf %325, %327 : vector<16x32xf32>
    %329 = arith.addf %228, %328 : vector<16x32xf32>
    %c12 = arith.constant 12 : index
    %c0_104 = arith.constant 0 : index
    %330 = vector.load %arg1[%c12, %c0_104] : memref<41x128xf32, #tpu.memory_space<vmem>>, vector<1x32xf32>
    %c13 = arith.constant 13 : index
    %c0_105 = arith.constant 0 : index
    %331 = vector.load %arg1[%c13, %c0_105] : memref<41x128xf32, #tpu.memory_space<vmem>>, vector<1x32xf32>
    %cst_106 = arith.constant dense<0.000000e+00> : vector<16xf32>
    %332 = vector.multi_reduction <add>, %329, %cst_106 [1] : vector<16x32xf32> to vector<16xf32>
    %333 = vector.shape_cast %332 : vector<16xf32> to vector<16x1xf32>
    %cst_107 = arith.constant 3.200000e+01 : f32
    %334 = vector.broadcast %cst_107 : f32 to vector<16x1xf32>
    %335 = arith.divf %333, %334 : vector<16x1xf32>
    %336 = vector.broadcast %335 : vector<16x1xf32> to vector<16x32xf32>
    %337 = arith.subf %329, %336 : vector<16x32xf32>
    %338 = arith.mulf %337, %337 : vector<16x32xf32>
    %cst_108 = arith.constant dense<0.000000e+00> : vector<16xf32>
    %339 = vector.multi_reduction <add>, %338, %cst_108 [1] : vector<16x32xf32> to vector<16xf32>
    %340 = vector.shape_cast %339 : vector<16xf32> to vector<16x1xf32>
    %cst_109 = arith.constant 3.200000e+01 : f32
    %341 = vector.broadcast %cst_109 : f32 to vector<16x1xf32>
    %342 = arith.divf %340, %341 : vector<16x1xf32>
    %cst_110 = arith.constant 9.99999974E-6 : f32
    %343 = vector.broadcast %cst_110 : f32 to vector<16x1xf32>
    %344 = arith.addf %342, %343 : vector<16x1xf32>
    %345 = math.rsqrt %344 : vector<16x1xf32>
    %346 = vector.broadcast %345 : vector<16x1xf32> to vector<16x32xf32>
    %347 = arith.mulf %337, %346 : vector<16x32xf32>
    %348 = vector.broadcast %330 : vector<1x32xf32> to vector<16x32xf32>
    %349 = arith.mulf %347, %348 : vector<16x32xf32>
    %350 = vector.broadcast %331 : vector<1x32xf32> to vector<16x32xf32>
    %351 = arith.addf %349, %350 : vector<16x32xf32>
    %c224 = arith.constant 224 : index
    %c0_111 = arith.constant 0 : index
    %352 = vector.load %arg0[%c224, %c0_111] : memref<800x128xbf16, #tpu.memory_space<vmem>>, vector<32x64xbf16>
    %353 = arith.truncf %351 : vector<16x32xf32> to vector<16x32xbf16>
    %cst_112 = arith.constant dense<0.000000e+00> : vector<16x64xf32>
    %354 = tpu.matmul %353, %352, %cst_112 {dimension_numbers = #tpu.dot_dimension_numbers<[1], [0], [0], [1], [0, 0, 1, 1], [], []>} : vector<16x32xbf16>, vector<32x64xbf16>, vector<16x64xf32> -> vector<16x64xf32>
    %c10 = arith.constant 10 : index
    %c0_113 = arith.constant 0 : index
    %355 = vector.load %arg1[%c10, %c0_113] : memref<41x128xf32, #tpu.memory_space<vmem>>, vector<1x64xf32>
    %356 = vector.broadcast %355 : vector<1x64xf32> to vector<16x64xf32>
    %357 = arith.addf %354, %356 : vector<16x64xf32>
    %cst_114 = arith.constant 0.000000e+00 : f32
    %358 = vector.broadcast %cst_114 : f32 to vector<16x64xf32>
    %359 = arith.maximumf %357, %358 : vector<16x64xf32>
    %360 = math.absf %357 : vector<16x64xf32>
    %cst_115 = arith.constant 0.000000e+00 : f32
    %361 = vector.broadcast %cst_115 : f32 to vector<16x64xf32>
    %362 = arith.subf %361, %360 : vector<16x64xf32>
    %363 = math.exp %362 : vector<16x64xf32>
    %364 = math.log1p %363 : vector<16x64xf32>
    %365 = arith.addf %359, %364 : vector<16x64xf32>
    %366 = math.tanh %365 : vector<16x64xf32>
    %367 = arith.mulf %357, %366 : vector<16x64xf32>
    %c256 = arith.constant 256 : index
    %c0_116 = arith.constant 0 : index
    %368 = vector.load %arg0[%c256, %c0_116] : memref<800x128xbf16, #tpu.memory_space<vmem>>, vector<64x32xbf16>
    %369 = arith.truncf %367 : vector<16x64xf32> to vector<16x64xbf16>
    %cst_117 = arith.constant dense<0.000000e+00> : vector<16x32xf32>
    %370 = tpu.matmul %369, %368, %cst_117 {dimension_numbers = #tpu.dot_dimension_numbers<[1], [0], [0], [1], [0, 0, 1, 1], [], []>} : vector<16x64xbf16>, vector<64x32xbf16>, vector<16x32xf32> -> vector<16x32xf32>
    %c11 = arith.constant 11 : index
    %c0_118 = arith.constant 0 : index
    %371 = vector.load %arg1[%c11, %c0_118] : memref<41x128xf32, #tpu.memory_space<vmem>>, vector<1x32xf32>
    %372 = vector.broadcast %371 : vector<1x32xf32> to vector<16x32xf32>
    %373 = arith.addf %370, %372 : vector<16x32xf32>
    %374 = arith.addf %351, %373 : vector<16x32xf32>
    %c14 = arith.constant 14 : index
    %c0_119 = arith.constant 0 : index
    %375 = vector.load %arg1[%c14, %c0_119] : memref<41x128xf32, #tpu.memory_space<vmem>>, vector<1x32xf32>
    %c15 = arith.constant 15 : index
    %c0_120 = arith.constant 0 : index
    %376 = vector.load %arg1[%c15, %c0_120] : memref<41x128xf32, #tpu.memory_space<vmem>>, vector<1x32xf32>
    %cst_121 = arith.constant dense<0.000000e+00> : vector<16xf32>
    %377 = vector.multi_reduction <add>, %374, %cst_121 [1] : vector<16x32xf32> to vector<16xf32>
    %378 = vector.shape_cast %377 : vector<16xf32> to vector<16x1xf32>
    %cst_122 = arith.constant 3.200000e+01 : f32
    %379 = vector.broadcast %cst_122 : f32 to vector<16x1xf32>
    %380 = arith.divf %378, %379 : vector<16x1xf32>
    %381 = vector.broadcast %380 : vector<16x1xf32> to vector<16x32xf32>
    %382 = arith.subf %374, %381 : vector<16x32xf32>
    %383 = arith.mulf %382, %382 : vector<16x32xf32>
    %cst_123 = arith.constant dense<0.000000e+00> : vector<16xf32>
    %384 = vector.multi_reduction <add>, %383, %cst_123 [1] : vector<16x32xf32> to vector<16xf32>
    %385 = vector.shape_cast %384 : vector<16xf32> to vector<16x1xf32>
    %cst_124 = arith.constant 3.200000e+01 : f32
    %386 = vector.broadcast %cst_124 : f32 to vector<16x1xf32>
    %387 = arith.divf %385, %386 : vector<16x1xf32>
    %cst_125 = arith.constant 9.99999974E-6 : f32
    %388 = vector.broadcast %cst_125 : f32 to vector<16x1xf32>
    %389 = arith.addf %387, %388 : vector<16x1xf32>
    %390 = math.rsqrt %389 : vector<16x1xf32>
    %391 = vector.broadcast %390 : vector<16x1xf32> to vector<16x32xf32>
    %392 = arith.mulf %382, %391 : vector<16x32xf32>
    %393 = vector.broadcast %375 : vector<1x32xf32> to vector<16x32xf32>
    %394 = arith.mulf %392, %393 : vector<16x32xf32>
    %395 = vector.broadcast %376 : vector<1x32xf32> to vector<16x32xf32>
    %396 = arith.addf %394, %395 : vector<16x32xf32>
    %c0_126 = arith.constant 0 : index
    %c0_127 = arith.constant 0 : index
    %397 = vector.load %arg3[%c0_126, %c0_127] : memref<16x32xf32, #tpu.memory_space<vmem>>, vector<16x32xf32>
    %c320 = arith.constant 320 : index
    %c0_128 = arith.constant 0 : index
    %398 = vector.load %arg0[%c320, %c0_128] : memref<800x128xbf16, #tpu.memory_space<vmem>>, vector<32x32xbf16>
    %399 = arith.truncf %397 : vector<16x32xf32> to vector<16x32xbf16>
    %cst_129 = arith.constant dense<0.000000e+00> : vector<16x32xf32>
    %400 = tpu.matmul %399, %398, %cst_129 {dimension_numbers = #tpu.dot_dimension_numbers<[1], [0], [0], [1], [0, 0, 1, 1], [], []>} : vector<16x32xbf16>, vector<32x32xbf16>, vector<16x32xf32> -> vector<16x32xf32>
    %c16_130 = arith.constant 16 : index
    %c0_131 = arith.constant 0 : index
    %401 = vector.load %arg1[%c16_130, %c0_131] : memref<41x128xf32, #tpu.memory_space<vmem>>, vector<1x32xf32>
    %402 = vector.broadcast %401 : vector<1x32xf32> to vector<16x32xf32>
    %403 = arith.addf %400, %402 : vector<16x32xf32>
    %404 = arith.addf %397, %403 : vector<16x32xf32>
    %c22 = arith.constant 22 : index
    %c0_132 = arith.constant 0 : index
    %405 = vector.load %arg1[%c22, %c0_132] : memref<41x128xf32, #tpu.memory_space<vmem>>, vector<1x32xf32>
    %c23 = arith.constant 23 : index
    %c0_133 = arith.constant 0 : index
    %406 = vector.load %arg1[%c23, %c0_133] : memref<41x128xf32, #tpu.memory_space<vmem>>, vector<1x32xf32>
    %cst_134 = arith.constant dense<0.000000e+00> : vector<16xf32>
    %407 = vector.multi_reduction <add>, %404, %cst_134 [1] : vector<16x32xf32> to vector<16xf32>
    %408 = vector.shape_cast %407 : vector<16xf32> to vector<16x1xf32>
    %cst_135 = arith.constant 3.200000e+01 : f32
    %409 = vector.broadcast %cst_135 : f32 to vector<16x1xf32>
    %410 = arith.divf %408, %409 : vector<16x1xf32>
    %411 = vector.broadcast %410 : vector<16x1xf32> to vector<16x32xf32>
    %412 = arith.subf %404, %411 : vector<16x32xf32>
    %413 = arith.mulf %412, %412 : vector<16x32xf32>
    %cst_136 = arith.constant dense<0.000000e+00> : vector<16xf32>
    %414 = vector.multi_reduction <add>, %413, %cst_136 [1] : vector<16x32xf32> to vector<16xf32>
    %415 = vector.shape_cast %414 : vector<16xf32> to vector<16x1xf32>
    %cst_137 = arith.constant 3.200000e+01 : f32
    %416 = vector.broadcast %cst_137 : f32 to vector<16x1xf32>
    %417 = arith.divf %415, %416 : vector<16x1xf32>
    %cst_138 = arith.constant 9.99999974E-6 : f32
    %418 = vector.broadcast %cst_138 : f32 to vector<16x1xf32>
    %419 = arith.addf %417, %418 : vector<16x1xf32>
    %420 = math.rsqrt %419 : vector<16x1xf32>
    %421 = vector.broadcast %420 : vector<16x1xf32> to vector<16x32xf32>
    %422 = arith.mulf %412, %421 : vector<16x32xf32>
    %423 = vector.broadcast %405 : vector<1x32xf32> to vector<16x32xf32>
    %424 = arith.mulf %422, %423 : vector<16x32xf32>
    %425 = vector.broadcast %406 : vector<1x32xf32> to vector<16x32xf32>
    %426 = arith.addf %424, %425 : vector<16x32xf32>
    %c352 = arith.constant 352 : index
    %c0_139 = arith.constant 0 : index
    %427 = vector.load %arg0[%c352, %c0_139] : memref<800x128xbf16, #tpu.memory_space<vmem>>, vector<32x32xbf16>
    %428 = arith.truncf %426 : vector<16x32xf32> to vector<16x32xbf16>
    %cst_140 = arith.constant dense<0.000000e+00> : vector<16x32xf32>
    %429 = tpu.matmul %428, %427, %cst_140 {dimension_numbers = #tpu.dot_dimension_numbers<[1], [0], [0], [1], [0, 0, 1, 1], [], []>} : vector<16x32xbf16>, vector<32x32xbf16>, vector<16x32xf32> -> vector<16x32xf32>
    %c17 = arith.constant 17 : index
    %c0_141 = arith.constant 0 : index
    %430 = vector.load %arg1[%c17, %c0_141] : memref<41x128xf32, #tpu.memory_space<vmem>>, vector<1x32xf32>
    %431 = vector.broadcast %430 : vector<1x32xf32> to vector<16x32xf32>
    %432 = arith.addf %429, %431 : vector<16x32xf32>
    %c384 = arith.constant 384 : index
    %c0_142 = arith.constant 0 : index
    %433 = vector.load %arg0[%c384, %c0_142] : memref<800x128xbf16, #tpu.memory_space<vmem>>, vector<32x64xbf16>
    %434 = arith.truncf %396 : vector<16x32xf32> to vector<16x32xbf16>
    %cst_143 = arith.constant dense<0.000000e+00> : vector<16x64xf32>
    %435 = tpu.matmul %434, %433, %cst_143 {dimension_numbers = #tpu.dot_dimension_numbers<[1], [0], [0], [1], [0, 0, 1, 1], [], []>} : vector<16x32xbf16>, vector<32x64xbf16>, vector<16x64xf32> -> vector<16x64xf32>
    %c18 = arith.constant 18 : index
    %c0_144 = arith.constant 0 : index
    %436 = vector.load %arg1[%c18, %c0_144] : memref<41x128xf32, #tpu.memory_space<vmem>>, vector<1x64xf32>
    %437 = vector.broadcast %436 : vector<1x64xf32> to vector<16x64xf32>
    %438 = arith.addf %435, %437 : vector<16x64xf32>
    %439 = vector.extract_strided_slice %438 {offsets = [0, 0], sizes = [16, 32], strides = [1, 1]} : vector<16x64xf32> to vector<16x32xf32>
    %440 = vector.extract_strided_slice %438 {offsets = [0, 32], sizes = [16, 32], strides = [1, 1]} : vector<16x64xf32> to vector<16x32xf32>
    %441 = vector.extract_strided_slice %432 {offsets = [0, 0], sizes = [16, 8], strides = [1, 1]} : vector<16x32xf32> to vector<16x8xf32>
    %442 = vector.extract_strided_slice %439 {offsets = [0, 0], sizes = [16, 8], strides = [1, 1]} : vector<16x32xf32> to vector<16x8xf32>
    %443 = arith.truncf %441 : vector<16x8xf32> to vector<16x8xbf16>
    %444 = arith.truncf %442 : vector<16x8xf32> to vector<16x8xbf16>
    %cst_145 = arith.constant dense<0.000000e+00> : vector<16x16xf32>
    %445 = tpu.matmul %443, %444, %cst_145 {dimension_numbers = #tpu.dot_dimension_numbers<[1], [1], [0], [0], [0, 0, 1, 0], [], []>} : vector<16x8xbf16>, vector<16x8xbf16>, vector<16x16xf32> -> vector<16x16xf32>
    %446 = arith.addf %445, %59 : vector<16x16xf32>
    %cst_146 = arith.constant dense<0xFF800000> : vector<16xf32>
    %447 = vector.multi_reduction <maximumf>, %446, %cst_146 [1] : vector<16x16xf32> to vector<16xf32>
    %448 = vector.shape_cast %447 : vector<16xf32> to vector<16x1xf32>
    %449 = vector.broadcast %448 : vector<16x1xf32> to vector<16x16xf32>
    %450 = arith.subf %446, %449 : vector<16x16xf32>
    %451 = math.exp %450 : vector<16x16xf32>
    %cst_147 = arith.constant dense<0.000000e+00> : vector<16xf32>
    %452 = vector.multi_reduction <add>, %451, %cst_147 [1] : vector<16x16xf32> to vector<16xf32>
    %453 = vector.shape_cast %452 : vector<16xf32> to vector<16x1xf32>
    %454 = tpu.reciprocal %453 {approx = true} : vector<16x1xf32> -> vector<16x1xf32>
    %455 = vector.broadcast %454 : vector<16x1xf32> to vector<16x16xf32>
    %456 = arith.mulf %451, %455 : vector<16x16xf32>
    %457 = vector.extract_strided_slice %440 {offsets = [0, 0], sizes = [16, 8], strides = [1, 1]} : vector<16x32xf32> to vector<16x8xf32>
    %458 = arith.truncf %456 : vector<16x16xf32> to vector<16x16xbf16>
    %459 = arith.truncf %457 : vector<16x8xf32> to vector<16x8xbf16>
    %cst_148 = arith.constant dense<0.000000e+00> : vector<16x8xf32>
    %460 = tpu.matmul %458, %459, %cst_148 {dimension_numbers = #tpu.dot_dimension_numbers<[1], [0], [0], [1], [0, 0, 1, 1], [], []>} : vector<16x16xbf16>, vector<16x8xbf16>, vector<16x8xf32> -> vector<16x8xf32>
    %c0_149 = arith.constant 0 : index
    %c0_150 = arith.constant 0 : index
    %461 = vector.load %arg5[%c0_149, %c0_150] : memref<16x32xf32, #tpu.memory_space<vmem>>, vector<16x8xf32>
    tpu.vector_store %arg5[%c0_149, %c0_150], %460 {strides = array<i32>} : memref<16x32xf32, #tpu.memory_space<vmem>>, vector<16x8xf32>,
    %462 = vector.extract_strided_slice %432 {offsets = [0, 8], sizes = [16, 8], strides = [1, 1]} : vector<16x32xf32> to vector<16x8xf32>
    %463 = vector.extract_strided_slice %439 {offsets = [0, 8], sizes = [16, 8], strides = [1, 1]} : vector<16x32xf32> to vector<16x8xf32>
    %464 = arith.truncf %462 : vector<16x8xf32> to vector<16x8xbf16>
    %465 = arith.truncf %463 : vector<16x8xf32> to vector<16x8xbf16>
    %cst_151 = arith.constant dense<0.000000e+00> : vector<16x16xf32>
    %466 = tpu.matmul %464, %465, %cst_151 {dimension_numbers = #tpu.dot_dimension_numbers<[1], [1], [0], [0], [0, 0, 1, 0], [], []>} : vector<16x8xbf16>, vector<16x8xbf16>, vector<16x16xf32> -> vector<16x16xf32>
    %467 = arith.addf %466, %59 : vector<16x16xf32>
    %cst_152 = arith.constant dense<0xFF800000> : vector<16xf32>
    %468 = vector.multi_reduction <maximumf>, %467, %cst_152 [1] : vector<16x16xf32> to vector<16xf32>
    %469 = vector.shape_cast %468 : vector<16xf32> to vector<16x1xf32>
    %470 = vector.broadcast %469 : vector<16x1xf32> to vector<16x16xf32>
    %471 = arith.subf %467, %470 : vector<16x16xf32>
    %472 = math.exp %471 : vector<16x16xf32>
    %cst_153 = arith.constant dense<0.000000e+00> : vector<16xf32>
    %473 = vector.multi_reduction <add>, %472, %cst_153 [1] : vector<16x16xf32> to vector<16xf32>
    %474 = vector.shape_cast %473 : vector<16xf32> to vector<16x1xf32>
    %475 = tpu.reciprocal %474 {approx = true} : vector<16x1xf32> -> vector<16x1xf32>
    %476 = vector.broadcast %475 : vector<16x1xf32> to vector<16x16xf32>
    %477 = arith.mulf %472, %476 : vector<16x16xf32>
    %478 = vector.extract_strided_slice %440 {offsets = [0, 8], sizes = [16, 8], strides = [1, 1]} : vector<16x32xf32> to vector<16x8xf32>
    %479 = arith.truncf %477 : vector<16x16xf32> to vector<16x16xbf16>
    %480 = arith.truncf %478 : vector<16x8xf32> to vector<16x8xbf16>
    %cst_154 = arith.constant dense<0.000000e+00> : vector<16x8xf32>
    %481 = tpu.matmul %479, %480, %cst_154 {dimension_numbers = #tpu.dot_dimension_numbers<[1], [0], [0], [1], [0, 0, 1, 1], [], []>} : vector<16x16xbf16>, vector<16x8xbf16>, vector<16x8xf32> -> vector<16x8xf32>
    %c0_155 = arith.constant 0 : index
    %c8_156 = arith.constant 8 : index
    %482 = vector.load %arg5[%c0_155, %c8_156] : memref<16x32xf32, #tpu.memory_space<vmem>>, vector<16x8xf32>
    tpu.vector_store %arg5[%c0_155, %c8_156], %481 {strides = array<i32>} : memref<16x32xf32, #tpu.memory_space<vmem>>, vector<16x8xf32>,
    %483 = vector.extract_strided_slice %432 {offsets = [0, 16], sizes = [16, 8], strides = [1, 1]} : vector<16x32xf32> to vector<16x8xf32>
    %484 = vector.extract_strided_slice %439 {offsets = [0, 16], sizes = [16, 8], strides = [1, 1]} : vector<16x32xf32> to vector<16x8xf32>
    %485 = arith.truncf %483 : vector<16x8xf32> to vector<16x8xbf16>
    %486 = arith.truncf %484 : vector<16x8xf32> to vector<16x8xbf16>
    %cst_157 = arith.constant dense<0.000000e+00> : vector<16x16xf32>
    %487 = tpu.matmul %485, %486, %cst_157 {dimension_numbers = #tpu.dot_dimension_numbers<[1], [1], [0], [0], [0, 0, 1, 0], [], []>} : vector<16x8xbf16>, vector<16x8xbf16>, vector<16x16xf32> -> vector<16x16xf32>
    %488 = arith.addf %487, %59 : vector<16x16xf32>
    %cst_158 = arith.constant dense<0xFF800000> : vector<16xf32>
    %489 = vector.multi_reduction <maximumf>, %488, %cst_158 [1] : vector<16x16xf32> to vector<16xf32>
    %490 = vector.shape_cast %489 : vector<16xf32> to vector<16x1xf32>
    %491 = vector.broadcast %490 : vector<16x1xf32> to vector<16x16xf32>
    %492 = arith.subf %488, %491 : vector<16x16xf32>
    %493 = math.exp %492 : vector<16x16xf32>
    %cst_159 = arith.constant dense<0.000000e+00> : vector<16xf32>
    %494 = vector.multi_reduction <add>, %493, %cst_159 [1] : vector<16x16xf32> to vector<16xf32>
    %495 = vector.shape_cast %494 : vector<16xf32> to vector<16x1xf32>
    %496 = tpu.reciprocal %495 {approx = true} : vector<16x1xf32> -> vector<16x1xf32>
    %497 = vector.broadcast %496 : vector<16x1xf32> to vector<16x16xf32>
    %498 = arith.mulf %493, %497 : vector<16x16xf32>
    %499 = vector.extract_strided_slice %440 {offsets = [0, 16], sizes = [16, 8], strides = [1, 1]} : vector<16x32xf32> to vector<16x8xf32>
    %500 = arith.truncf %498 : vector<16x16xf32> to vector<16x16xbf16>
    %501 = arith.truncf %499 : vector<16x8xf32> to vector<16x8xbf16>
    %cst_160 = arith.constant dense<0.000000e+00> : vector<16x8xf32>
    %502 = tpu.matmul %500, %501, %cst_160 {dimension_numbers = #tpu.dot_dimension_numbers<[1], [0], [0], [1], [0, 0, 1, 1], [], []>} : vector<16x16xbf16>, vector<16x8xbf16>, vector<16x8xf32> -> vector<16x8xf32>
    %c0_161 = arith.constant 0 : index
    %c16_162 = arith.constant 16 : index
    %503 = vector.load %arg5[%c0_161, %c16_162] : memref<16x32xf32, #tpu.memory_space<vmem>>, vector<16x8xf32>
    tpu.vector_store %arg5[%c0_161, %c16_162], %502 {strides = array<i32>} : memref<16x32xf32, #tpu.memory_space<vmem>>, vector<16x8xf32>,
    %504 = vector.extract_strided_slice %432 {offsets = [0, 24], sizes = [16, 8], strides = [1, 1]} : vector<16x32xf32> to vector<16x8xf32>
    %505 = vector.extract_strided_slice %439 {offsets = [0, 24], sizes = [16, 8], strides = [1, 1]} : vector<16x32xf32> to vector<16x8xf32>
    %506 = arith.truncf %504 : vector<16x8xf32> to vector<16x8xbf16>
    %507 = arith.truncf %505 : vector<16x8xf32> to vector<16x8xbf16>
    %cst_163 = arith.constant dense<0.000000e+00> : vector<16x16xf32>
    %508 = tpu.matmul %506, %507, %cst_163 {dimension_numbers = #tpu.dot_dimension_numbers<[1], [1], [0], [0], [0, 0, 1, 0], [], []>} : vector<16x8xbf16>, vector<16x8xbf16>, vector<16x16xf32> -> vector<16x16xf32>
    %509 = arith.addf %508, %59 : vector<16x16xf32>
    %cst_164 = arith.constant dense<0xFF800000> : vector<16xf32>
    %510 = vector.multi_reduction <maximumf>, %509, %cst_164 [1] : vector<16x16xf32> to vector<16xf32>
    %511 = vector.shape_cast %510 : vector<16xf32> to vector<16x1xf32>
    %512 = vector.broadcast %511 : vector<16x1xf32> to vector<16x16xf32>
    %513 = arith.subf %509, %512 : vector<16x16xf32>
    %514 = math.exp %513 : vector<16x16xf32>
    %cst_165 = arith.constant dense<0.000000e+00> : vector<16xf32>
    %515 = vector.multi_reduction <add>, %514, %cst_165 [1] : vector<16x16xf32> to vector<16xf32>
    %516 = vector.shape_cast %515 : vector<16xf32> to vector<16x1xf32>
    %517 = tpu.reciprocal %516 {approx = true} : vector<16x1xf32> -> vector<16x1xf32>
    %518 = vector.broadcast %517 : vector<16x1xf32> to vector<16x16xf32>
    %519 = arith.mulf %514, %518 : vector<16x16xf32>
    %520 = vector.extract_strided_slice %440 {offsets = [0, 24], sizes = [16, 8], strides = [1, 1]} : vector<16x32xf32> to vector<16x8xf32>
    %521 = arith.truncf %519 : vector<16x16xf32> to vector<16x16xbf16>
    %522 = arith.truncf %520 : vector<16x8xf32> to vector<16x8xbf16>
    %cst_166 = arith.constant dense<0.000000e+00> : vector<16x8xf32>
    %523 = tpu.matmul %521, %522, %cst_166 {dimension_numbers = #tpu.dot_dimension_numbers<[1], [0], [0], [1], [0, 0, 1, 1], [], []>} : vector<16x16xbf16>, vector<16x8xbf16>, vector<16x8xf32> -> vector<16x8xf32>
    %c0_167 = arith.constant 0 : index
    %c24_168 = arith.constant 24 : index
    %524 = vector.load %arg5[%c0_167, %c24_168] : memref<16x32xf32, #tpu.memory_space<vmem>>, vector<16x8xf32>
    tpu.vector_store %arg5[%c0_167, %c24_168], %523 {strides = array<i32>} : memref<16x32xf32, #tpu.memory_space<vmem>>, vector<16x8xf32>,
    %c0_169 = arith.constant 0 : index
    %c0_170 = arith.constant 0 : index
    %525 = vector.load %arg5[%c0_169, %c0_170] : memref<16x32xf32, #tpu.memory_space<vmem>>, vector<16x32xf32>
    %c416 = arith.constant 416 : index
    %c0_171 = arith.constant 0 : index
    %526 = vector.load %arg0[%c416, %c0_171] : memref<800x128xbf16, #tpu.memory_space<vmem>>, vector<32x32xbf16>
    %527 = arith.truncf %525 : vector<16x32xf32> to vector<16x32xbf16>
    %cst_172 = arith.constant dense<0.000000e+00> : vector<16x32xf32>
    %528 = tpu.matmul %527, %526, %cst_172 {dimension_numbers = #tpu.dot_dimension_numbers<[1], [0], [0], [1], [0, 0, 1, 1], [], []>} : vector<16x32xbf16>, vector<32x32xbf16>, vector<16x32xf32> -> vector<16x32xf32>
    %c19 = arith.constant 19 : index
    %c0_173 = arith.constant 0 : index
    %529 = vector.load %arg1[%c19, %c0_173] : memref<41x128xf32, #tpu.memory_space<vmem>>, vector<1x32xf32>
    %530 = vector.broadcast %529 : vector<1x32xf32> to vector<16x32xf32>
    %531 = arith.addf %528, %530 : vector<16x32xf32>
    %532 = arith.addf %426, %531 : vector<16x32xf32>
    %c24_174 = arith.constant 24 : index
    %c0_175 = arith.constant 0 : index
    %533 = vector.load %arg1[%c24_174, %c0_175] : memref<41x128xf32, #tpu.memory_space<vmem>>, vector<1x32xf32>
    %c25 = arith.constant 25 : index
    %c0_176 = arith.constant 0 : index
    %534 = vector.load %arg1[%c25, %c0_176] : memref<41x128xf32, #tpu.memory_space<vmem>>, vector<1x32xf32>
    %cst_177 = arith.constant dense<0.000000e+00> : vector<16xf32>
    %535 = vector.multi_reduction <add>, %532, %cst_177 [1] : vector<16x32xf32> to vector<16xf32>
    %536 = vector.shape_cast %535 : vector<16xf32> to vector<16x1xf32>
    %cst_178 = arith.constant 3.200000e+01 : f32
    %537 = vector.broadcast %cst_178 : f32 to vector<16x1xf32>
    %538 = arith.divf %536, %537 : vector<16x1xf32>
    %539 = vector.broadcast %538 : vector<16x1xf32> to vector<16x32xf32>
    %540 = arith.subf %532, %539 : vector<16x32xf32>
    %541 = arith.mulf %540, %540 : vector<16x32xf32>
    %cst_179 = arith.constant dense<0.000000e+00> : vector<16xf32>
    %542 = vector.multi_reduction <add>, %541, %cst_179 [1] : vector<16x32xf32> to vector<16xf32>
    %543 = vector.shape_cast %542 : vector<16xf32> to vector<16x1xf32>
    %cst_180 = arith.constant 3.200000e+01 : f32
    %544 = vector.broadcast %cst_180 : f32 to vector<16x1xf32>
    %545 = arith.divf %543, %544 : vector<16x1xf32>
    %cst_181 = arith.constant 9.99999974E-6 : f32
    %546 = vector.broadcast %cst_181 : f32 to vector<16x1xf32>
    %547 = arith.addf %545, %546 : vector<16x1xf32>
    %548 = math.rsqrt %547 : vector<16x1xf32>
    %549 = vector.broadcast %548 : vector<16x1xf32> to vector<16x32xf32>
    %550 = arith.mulf %540, %549 : vector<16x32xf32>
    %551 = vector.broadcast %533 : vector<1x32xf32> to vector<16x32xf32>
    %552 = arith.mulf %550, %551 : vector<16x32xf32>
    %553 = vector.broadcast %534 : vector<1x32xf32> to vector<16x32xf32>
    %554 = arith.addf %552, %553 : vector<16x32xf32>
    %c448 = arith.constant 448 : index
    %c0_182 = arith.constant 0 : index
    %555 = vector.load %arg0[%c448, %c0_182] : memref<800x128xbf16, #tpu.memory_space<vmem>>, vector<32x64xbf16>
    %556 = arith.truncf %554 : vector<16x32xf32> to vector<16x32xbf16>
    %cst_183 = arith.constant dense<0.000000e+00> : vector<16x64xf32>
    %557 = tpu.matmul %556, %555, %cst_183 {dimension_numbers = #tpu.dot_dimension_numbers<[1], [0], [0], [1], [0, 0, 1, 1], [], []>} : vector<16x32xbf16>, vector<32x64xbf16>, vector<16x64xf32> -> vector<16x64xf32>
    %c20 = arith.constant 20 : index
    %c0_184 = arith.constant 0 : index
    %558 = vector.load %arg1[%c20, %c0_184] : memref<41x128xf32, #tpu.memory_space<vmem>>, vector<1x64xf32>
    %559 = vector.broadcast %558 : vector<1x64xf32> to vector<16x64xf32>
    %560 = arith.addf %557, %559 : vector<16x64xf32>
    %cst_185 = arith.constant 0.000000e+00 : f32
    %561 = vector.broadcast %cst_185 : f32 to vector<16x64xf32>
    %562 = arith.maximumf %560, %561 : vector<16x64xf32>
    %563 = math.absf %560 : vector<16x64xf32>
    %cst_186 = arith.constant 0.000000e+00 : f32
    %564 = vector.broadcast %cst_186 : f32 to vector<16x64xf32>
    %565 = arith.subf %564, %563 : vector<16x64xf32>
    %566 = math.exp %565 : vector<16x64xf32>
    %567 = math.log1p %566 : vector<16x64xf32>
    %568 = arith.addf %562, %567 : vector<16x64xf32>
    %569 = math.tanh %568 : vector<16x64xf32>
    %570 = arith.mulf %560, %569 : vector<16x64xf32>
    %c480 = arith.constant 480 : index
    %c0_187 = arith.constant 0 : index
    %571 = vector.load %arg0[%c480, %c0_187] : memref<800x128xbf16, #tpu.memory_space<vmem>>, vector<64x32xbf16>
    %572 = arith.truncf %570 : vector<16x64xf32> to vector<16x64xbf16>
    %cst_188 = arith.constant dense<0.000000e+00> : vector<16x32xf32>
    %573 = tpu.matmul %572, %571, %cst_188 {dimension_numbers = #tpu.dot_dimension_numbers<[1], [0], [0], [1], [0, 0, 1, 1], [], []>} : vector<16x64xbf16>, vector<64x32xbf16>, vector<16x32xf32> -> vector<16x32xf32>
    %c21 = arith.constant 21 : index
    %c0_189 = arith.constant 0 : index
    %574 = vector.load %arg1[%c21, %c0_189] : memref<41x128xf32, #tpu.memory_space<vmem>>, vector<1x32xf32>
    %575 = vector.broadcast %574 : vector<1x32xf32> to vector<16x32xf32>
    %576 = arith.addf %573, %575 : vector<16x32xf32>
    %577 = arith.addf %554, %576 : vector<16x32xf32>
    %c26 = arith.constant 26 : index
    %c0_190 = arith.constant 0 : index
    %578 = vector.load %arg1[%c26, %c0_190] : memref<41x128xf32, #tpu.memory_space<vmem>>, vector<1x32xf32>
    %c27 = arith.constant 27 : index
    %c0_191 = arith.constant 0 : index
    %579 = vector.load %arg1[%c27, %c0_191] : memref<41x128xf32, #tpu.memory_space<vmem>>, vector<1x32xf32>
    %cst_192 = arith.constant dense<0.000000e+00> : vector<16xf32>
    %580 = vector.multi_reduction <add>, %577, %cst_192 [1] : vector<16x32xf32> to vector<16xf32>
    %581 = vector.shape_cast %580 : vector<16xf32> to vector<16x1xf32>
    %cst_193 = arith.constant 3.200000e+01 : f32
    %582 = vector.broadcast %cst_193 : f32 to vector<16x1xf32>
    %583 = arith.divf %581, %582 : vector<16x1xf32>
    %584 = vector.broadcast %583 : vector<16x1xf32> to vector<16x32xf32>
    %585 = arith.subf %577, %584 : vector<16x32xf32>
    %586 = arith.mulf %585, %585 : vector<16x32xf32>
    %cst_194 = arith.constant dense<0.000000e+00> : vector<16xf32>
    %587 = vector.multi_reduction <add>, %586, %cst_194 [1] : vector<16x32xf32> to vector<16xf32>
    %588 = vector.shape_cast %587 : vector<16xf32> to vector<16x1xf32>
    %cst_195 = arith.constant 3.200000e+01 : f32
    %589 = vector.broadcast %cst_195 : f32 to vector<16x1xf32>
    %590 = arith.divf %588, %589 : vector<16x1xf32>
    %cst_196 = arith.constant 9.99999974E-6 : f32
    %591 = vector.broadcast %cst_196 : f32 to vector<16x1xf32>
    %592 = arith.addf %590, %591 : vector<16x1xf32>
    %593 = math.rsqrt %592 : vector<16x1xf32>
    %594 = vector.broadcast %593 : vector<16x1xf32> to vector<16x32xf32>
    %595 = arith.mulf %585, %594 : vector<16x32xf32>
    %596 = vector.broadcast %578 : vector<1x32xf32> to vector<16x32xf32>
    %597 = arith.mulf %595, %596 : vector<16x32xf32>
    %598 = vector.broadcast %579 : vector<1x32xf32> to vector<16x32xf32>
    %599 = arith.addf %597, %598 : vector<16x32xf32>
    %c544 = arith.constant 544 : index
    %c0_197 = arith.constant 0 : index
    %600 = vector.load %arg0[%c544, %c0_197] : memref<800x128xbf16, #tpu.memory_space<vmem>>, vector<32x32xbf16>
    %601 = arith.truncf %599 : vector<16x32xf32> to vector<16x32xbf16>
    %cst_198 = arith.constant dense<0.000000e+00> : vector<16x32xf32>
    %602 = tpu.matmul %601, %600, %cst_198 {dimension_numbers = #tpu.dot_dimension_numbers<[1], [0], [0], [1], [0, 0, 1, 1], [], []>} : vector<16x32xbf16>, vector<32x32xbf16>, vector<16x32xf32> -> vector<16x32xf32>
    %c28 = arith.constant 28 : index
    %c0_199 = arith.constant 0 : index
    %603 = vector.load %arg1[%c28, %c0_199] : memref<41x128xf32, #tpu.memory_space<vmem>>, vector<1x32xf32>
    %604 = vector.broadcast %603 : vector<1x32xf32> to vector<16x32xf32>
    %605 = arith.addf %602, %604 : vector<16x32xf32>
    %606 = arith.addf %599, %605 : vector<16x32xf32>
    %c34 = arith.constant 34 : index
    %c0_200 = arith.constant 0 : index
    %607 = vector.load %arg1[%c34, %c0_200] : memref<41x128xf32, #tpu.memory_space<vmem>>, vector<1x32xf32>
    %c35 = arith.constant 35 : index
    %c0_201 = arith.constant 0 : index
    %608 = vector.load %arg1[%c35, %c0_201] : memref<41x128xf32, #tpu.memory_space<vmem>>, vector<1x32xf32>
    %cst_202 = arith.constant dense<0.000000e+00> : vector<16xf32>
    %609 = vector.multi_reduction <add>, %606, %cst_202 [1] : vector<16x32xf32> to vector<16xf32>
    %610 = vector.shape_cast %609 : vector<16xf32> to vector<16x1xf32>
    %cst_203 = arith.constant 3.200000e+01 : f32
    %611 = vector.broadcast %cst_203 : f32 to vector<16x1xf32>
    %612 = arith.divf %610, %611 : vector<16x1xf32>
    %613 = vector.broadcast %612 : vector<16x1xf32> to vector<16x32xf32>
    %614 = arith.subf %606, %613 : vector<16x32xf32>
    %615 = arith.mulf %614, %614 : vector<16x32xf32>
    %cst_204 = arith.constant dense<0.000000e+00> : vector<16xf32>
    %616 = vector.multi_reduction <add>, %615, %cst_204 [1] : vector<16x32xf32> to vector<16xf32>
    %617 = vector.shape_cast %616 : vector<16xf32> to vector<16x1xf32>
    %cst_205 = arith.constant 3.200000e+01 : f32
    %618 = vector.broadcast %cst_205 : f32 to vector<16x1xf32>
    %619 = arith.divf %617, %618 : vector<16x1xf32>
    %cst_206 = arith.constant 9.99999974E-6 : f32
    %620 = vector.broadcast %cst_206 : f32 to vector<16x1xf32>
    %621 = arith.addf %619, %620 : vector<16x1xf32>
    %622 = math.rsqrt %621 : vector<16x1xf32>
    %623 = vector.broadcast %622 : vector<16x1xf32> to vector<16x32xf32>
    %624 = arith.mulf %614, %623 : vector<16x32xf32>
    %625 = vector.broadcast %607 : vector<1x32xf32> to vector<16x32xf32>
    %626 = arith.mulf %624, %625 : vector<16x32xf32>
    %627 = vector.broadcast %608 : vector<1x32xf32> to vector<16x32xf32>
    %628 = arith.addf %626, %627 : vector<16x32xf32>
    %c576 = arith.constant 576 : index
    %c0_207 = arith.constant 0 : index
    %629 = vector.load %arg0[%c576, %c0_207] : memref<800x128xbf16, #tpu.memory_space<vmem>>, vector<32x32xbf16>
    %630 = arith.truncf %628 : vector<16x32xf32> to vector<16x32xbf16>
    %cst_208 = arith.constant dense<0.000000e+00> : vector<16x32xf32>
    %631 = tpu.matmul %630, %629, %cst_208 {dimension_numbers = #tpu.dot_dimension_numbers<[1], [0], [0], [1], [0, 0, 1, 1], [], []>} : vector<16x32xbf16>, vector<32x32xbf16>, vector<16x32xf32> -> vector<16x32xf32>
    %c29 = arith.constant 29 : index
    %c0_209 = arith.constant 0 : index
    %632 = vector.load %arg1[%c29, %c0_209] : memref<41x128xf32, #tpu.memory_space<vmem>>, vector<1x32xf32>
    %633 = vector.broadcast %632 : vector<1x32xf32> to vector<16x32xf32>
    %634 = arith.addf %631, %633 : vector<16x32xf32>
    %c608 = arith.constant 608 : index
    %c0_210 = arith.constant 0 : index
    %635 = vector.load %arg0[%c608, %c0_210] : memref<800x128xbf16, #tpu.memory_space<vmem>>, vector<32x64xbf16>
    %636 = arith.truncf %396 : vector<16x32xf32> to vector<16x32xbf16>
    %cst_211 = arith.constant dense<0.000000e+00> : vector<16x64xf32>
    %637 = tpu.matmul %636, %635, %cst_211 {dimension_numbers = #tpu.dot_dimension_numbers<[1], [0], [0], [1], [0, 0, 1, 1], [], []>} : vector<16x32xbf16>, vector<32x64xbf16>, vector<16x64xf32> -> vector<16x64xf32>
    %c30 = arith.constant 30 : index
    %c0_212 = arith.constant 0 : index
    %638 = vector.load %arg1[%c30, %c0_212] : memref<41x128xf32, #tpu.memory_space<vmem>>, vector<1x64xf32>
    %639 = vector.broadcast %638 : vector<1x64xf32> to vector<16x64xf32>
    %640 = arith.addf %637, %639 : vector<16x64xf32>
    %641 = vector.extract_strided_slice %640 {offsets = [0, 0], sizes = [16, 32], strides = [1, 1]} : vector<16x64xf32> to vector<16x32xf32>
    %642 = vector.extract_strided_slice %640 {offsets = [0, 32], sizes = [16, 32], strides = [1, 1]} : vector<16x64xf32> to vector<16x32xf32>
    %643 = vector.extract_strided_slice %634 {offsets = [0, 0], sizes = [16, 8], strides = [1, 1]} : vector<16x32xf32> to vector<16x8xf32>
    %644 = vector.extract_strided_slice %641 {offsets = [0, 0], sizes = [16, 8], strides = [1, 1]} : vector<16x32xf32> to vector<16x8xf32>
    %645 = arith.truncf %643 : vector<16x8xf32> to vector<16x8xbf16>
    %646 = arith.truncf %644 : vector<16x8xf32> to vector<16x8xbf16>
    %cst_213 = arith.constant dense<0.000000e+00> : vector<16x16xf32>
    %647 = tpu.matmul %645, %646, %cst_213 {dimension_numbers = #tpu.dot_dimension_numbers<[1], [1], [0], [0], [0, 0, 1, 0], [], []>} : vector<16x8xbf16>, vector<16x8xbf16>, vector<16x16xf32> -> vector<16x16xf32>
    %648 = arith.addf %647, %59 : vector<16x16xf32>
    %cst_214 = arith.constant dense<0xFF800000> : vector<16xf32>
    %649 = vector.multi_reduction <maximumf>, %648, %cst_214 [1] : vector<16x16xf32> to vector<16xf32>
    %650 = vector.shape_cast %649 : vector<16xf32> to vector<16x1xf32>
    %651 = vector.broadcast %650 : vector<16x1xf32> to vector<16x16xf32>
    %652 = arith.subf %648, %651 : vector<16x16xf32>
    %653 = math.exp %652 : vector<16x16xf32>
    %cst_215 = arith.constant dense<0.000000e+00> : vector<16xf32>
    %654 = vector.multi_reduction <add>, %653, %cst_215 [1] : vector<16x16xf32> to vector<16xf32>
    %655 = vector.shape_cast %654 : vector<16xf32> to vector<16x1xf32>
    %656 = tpu.reciprocal %655 {approx = true} : vector<16x1xf32> -> vector<16x1xf32>
    %657 = vector.broadcast %656 : vector<16x1xf32> to vector<16x16xf32>
    %658 = arith.mulf %653, %657 : vector<16x16xf32>
    %659 = vector.extract_strided_slice %642 {offsets = [0, 0], sizes = [16, 8], strides = [1, 1]} : vector<16x32xf32> to vector<16x8xf32>
    %660 = arith.truncf %658 : vector<16x16xf32> to vector<16x16xbf16>
    %661 = arith.truncf %659 : vector<16x8xf32> to vector<16x8xbf16>
    %cst_216 = arith.constant dense<0.000000e+00> : vector<16x8xf32>
    %662 = tpu.matmul %660, %661, %cst_216 {dimension_numbers = #tpu.dot_dimension_numbers<[1], [0], [0], [1], [0, 0, 1, 1], [], []>} : vector<16x16xbf16>, vector<16x8xbf16>, vector<16x8xf32> -> vector<16x8xf32>
    %c0_217 = arith.constant 0 : index
    %c0_218 = arith.constant 0 : index
    %663 = vector.load %arg5[%c0_217, %c0_218] : memref<16x32xf32, #tpu.memory_space<vmem>>, vector<16x8xf32>
    tpu.vector_store %arg5[%c0_217, %c0_218], %662 {strides = array<i32>} : memref<16x32xf32, #tpu.memory_space<vmem>>, vector<16x8xf32>,
    %664 = vector.extract_strided_slice %634 {offsets = [0, 8], sizes = [16, 8], strides = [1, 1]} : vector<16x32xf32> to vector<16x8xf32>
    %665 = vector.extract_strided_slice %641 {offsets = [0, 8], sizes = [16, 8], strides = [1, 1]} : vector<16x32xf32> to vector<16x8xf32>
    %666 = arith.truncf %664 : vector<16x8xf32> to vector<16x8xbf16>
    %667 = arith.truncf %665 : vector<16x8xf32> to vector<16x8xbf16>
    %cst_219 = arith.constant dense<0.000000e+00> : vector<16x16xf32>
    %668 = tpu.matmul %666, %667, %cst_219 {dimension_numbers = #tpu.dot_dimension_numbers<[1], [1], [0], [0], [0, 0, 1, 0], [], []>} : vector<16x8xbf16>, vector<16x8xbf16>, vector<16x16xf32> -> vector<16x16xf32>
    %669 = arith.addf %668, %59 : vector<16x16xf32>
    %cst_220 = arith.constant dense<0xFF800000> : vector<16xf32>
    %670 = vector.multi_reduction <maximumf>, %669, %cst_220 [1] : vector<16x16xf32> to vector<16xf32>
    %671 = vector.shape_cast %670 : vector<16xf32> to vector<16x1xf32>
    %672 = vector.broadcast %671 : vector<16x1xf32> to vector<16x16xf32>
    %673 = arith.subf %669, %672 : vector<16x16xf32>
    %674 = math.exp %673 : vector<16x16xf32>
    %cst_221 = arith.constant dense<0.000000e+00> : vector<16xf32>
    %675 = vector.multi_reduction <add>, %674, %cst_221 [1] : vector<16x16xf32> to vector<16xf32>
    %676 = vector.shape_cast %675 : vector<16xf32> to vector<16x1xf32>
    %677 = tpu.reciprocal %676 {approx = true} : vector<16x1xf32> -> vector<16x1xf32>
    %678 = vector.broadcast %677 : vector<16x1xf32> to vector<16x16xf32>
    %679 = arith.mulf %674, %678 : vector<16x16xf32>
    %680 = vector.extract_strided_slice %642 {offsets = [0, 8], sizes = [16, 8], strides = [1, 1]} : vector<16x32xf32> to vector<16x8xf32>
    %681 = arith.truncf %679 : vector<16x16xf32> to vector<16x16xbf16>
    %682 = arith.truncf %680 : vector<16x8xf32> to vector<16x8xbf16>
    %cst_222 = arith.constant dense<0.000000e+00> : vector<16x8xf32>
    %683 = tpu.matmul %681, %682, %cst_222 {dimension_numbers = #tpu.dot_dimension_numbers<[1], [0], [0], [1], [0, 0, 1, 1], [], []>} : vector<16x16xbf16>, vector<16x8xbf16>, vector<16x8xf32> -> vector<16x8xf32>
    %c0_223 = arith.constant 0 : index
    %c8_224 = arith.constant 8 : index
    %684 = vector.load %arg5[%c0_223, %c8_224] : memref<16x32xf32, #tpu.memory_space<vmem>>, vector<16x8xf32>
    tpu.vector_store %arg5[%c0_223, %c8_224], %683 {strides = array<i32>} : memref<16x32xf32, #tpu.memory_space<vmem>>, vector<16x8xf32>,
    %685 = vector.extract_strided_slice %634 {offsets = [0, 16], sizes = [16, 8], strides = [1, 1]} : vector<16x32xf32> to vector<16x8xf32>
    %686 = vector.extract_strided_slice %641 {offsets = [0, 16], sizes = [16, 8], strides = [1, 1]} : vector<16x32xf32> to vector<16x8xf32>
    %687 = arith.truncf %685 : vector<16x8xf32> to vector<16x8xbf16>
    %688 = arith.truncf %686 : vector<16x8xf32> to vector<16x8xbf16>
    %cst_225 = arith.constant dense<0.000000e+00> : vector<16x16xf32>
    %689 = tpu.matmul %687, %688, %cst_225 {dimension_numbers = #tpu.dot_dimension_numbers<[1], [1], [0], [0], [0, 0, 1, 0], [], []>} : vector<16x8xbf16>, vector<16x8xbf16>, vector<16x16xf32> -> vector<16x16xf32>
    %690 = arith.addf %689, %59 : vector<16x16xf32>
    %cst_226 = arith.constant dense<0xFF800000> : vector<16xf32>
    %691 = vector.multi_reduction <maximumf>, %690, %cst_226 [1] : vector<16x16xf32> to vector<16xf32>
    %692 = vector.shape_cast %691 : vector<16xf32> to vector<16x1xf32>
    %693 = vector.broadcast %692 : vector<16x1xf32> to vector<16x16xf32>
    %694 = arith.subf %690, %693 : vector<16x16xf32>
    %695 = math.exp %694 : vector<16x16xf32>
    %cst_227 = arith.constant dense<0.000000e+00> : vector<16xf32>
    %696 = vector.multi_reduction <add>, %695, %cst_227 [1] : vector<16x16xf32> to vector<16xf32>
    %697 = vector.shape_cast %696 : vector<16xf32> to vector<16x1xf32>
    %698 = tpu.reciprocal %697 {approx = true} : vector<16x1xf32> -> vector<16x1xf32>
    %699 = vector.broadcast %698 : vector<16x1xf32> to vector<16x16xf32>
    %700 = arith.mulf %695, %699 : vector<16x16xf32>
    %701 = vector.extract_strided_slice %642 {offsets = [0, 16], sizes = [16, 8], strides = [1, 1]} : vector<16x32xf32> to vector<16x8xf32>
    %702 = arith.truncf %700 : vector<16x16xf32> to vector<16x16xbf16>
    %703 = arith.truncf %701 : vector<16x8xf32> to vector<16x8xbf16>
    %cst_228 = arith.constant dense<0.000000e+00> : vector<16x8xf32>
    %704 = tpu.matmul %702, %703, %cst_228 {dimension_numbers = #tpu.dot_dimension_numbers<[1], [0], [0], [1], [0, 0, 1, 1], [], []>} : vector<16x16xbf16>, vector<16x8xbf16>, vector<16x8xf32> -> vector<16x8xf32>
    %c0_229 = arith.constant 0 : index
    %c16_230 = arith.constant 16 : index
    %705 = vector.load %arg5[%c0_229, %c16_230] : memref<16x32xf32, #tpu.memory_space<vmem>>, vector<16x8xf32>
    tpu.vector_store %arg5[%c0_229, %c16_230], %704 {strides = array<i32>} : memref<16x32xf32, #tpu.memory_space<vmem>>, vector<16x8xf32>,
    %706 = vector.extract_strided_slice %634 {offsets = [0, 24], sizes = [16, 8], strides = [1, 1]} : vector<16x32xf32> to vector<16x8xf32>
    %707 = vector.extract_strided_slice %641 {offsets = [0, 24], sizes = [16, 8], strides = [1, 1]} : vector<16x32xf32> to vector<16x8xf32>
    %708 = arith.truncf %706 : vector<16x8xf32> to vector<16x8xbf16>
    %709 = arith.truncf %707 : vector<16x8xf32> to vector<16x8xbf16>
    %cst_231 = arith.constant dense<0.000000e+00> : vector<16x16xf32>
    %710 = tpu.matmul %708, %709, %cst_231 {dimension_numbers = #tpu.dot_dimension_numbers<[1], [1], [0], [0], [0, 0, 1, 0], [], []>} : vector<16x8xbf16>, vector<16x8xbf16>, vector<16x16xf32> -> vector<16x16xf32>
    %711 = arith.addf %710, %59 : vector<16x16xf32>
    %cst_232 = arith.constant dense<0xFF800000> : vector<16xf32>
    %712 = vector.multi_reduction <maximumf>, %711, %cst_232 [1] : vector<16x16xf32> to vector<16xf32>
    %713 = vector.shape_cast %712 : vector<16xf32> to vector<16x1xf32>
    %714 = vector.broadcast %713 : vector<16x1xf32> to vector<16x16xf32>
    %715 = arith.subf %711, %714 : vector<16x16xf32>
    %716 = math.exp %715 : vector<16x16xf32>
    %cst_233 = arith.constant dense<0.000000e+00> : vector<16xf32>
    %717 = vector.multi_reduction <add>, %716, %cst_233 [1] : vector<16x16xf32> to vector<16xf32>
    %718 = vector.shape_cast %717 : vector<16xf32> to vector<16x1xf32>
    %719 = tpu.reciprocal %718 {approx = true} : vector<16x1xf32> -> vector<16x1xf32>
    %720 = vector.broadcast %719 : vector<16x1xf32> to vector<16x16xf32>
    %721 = arith.mulf %716, %720 : vector<16x16xf32>
    %722 = vector.extract_strided_slice %642 {offsets = [0, 24], sizes = [16, 8], strides = [1, 1]} : vector<16x32xf32> to vector<16x8xf32>
    %723 = arith.truncf %721 : vector<16x16xf32> to vector<16x16xbf16>
    %724 = arith.truncf %722 : vector<16x8xf32> to vector<16x8xbf16>
    %cst_234 = arith.constant dense<0.000000e+00> : vector<16x8xf32>
    %725 = tpu.matmul %723, %724, %cst_234 {dimension_numbers = #tpu.dot_dimension_numbers<[1], [0], [0], [1], [0, 0, 1, 1], [], []>} : vector<16x16xbf16>, vector<16x8xbf16>, vector<16x8xf32> -> vector<16x8xf32>
    %c0_235 = arith.constant 0 : index
    %c24_236 = arith.constant 24 : index
    %726 = vector.load %arg5[%c0_235, %c24_236] : memref<16x32xf32, #tpu.memory_space<vmem>>, vector<16x8xf32>
    tpu.vector_store %arg5[%c0_235, %c24_236], %725 {strides = array<i32>} : memref<16x32xf32, #tpu.memory_space<vmem>>, vector<16x8xf32>,
    %c0_237 = arith.constant 0 : index
    %c0_238 = arith.constant 0 : index
    %727 = vector.load %arg5[%c0_237, %c0_238] : memref<16x32xf32, #tpu.memory_space<vmem>>, vector<16x32xf32>
    %c640 = arith.constant 640 : index
    %c0_239 = arith.constant 0 : index
    %728 = vector.load %arg0[%c640, %c0_239] : memref<800x128xbf16, #tpu.memory_space<vmem>>, vector<32x32xbf16>
    %729 = arith.truncf %727 : vector<16x32xf32> to vector<16x32xbf16>
    %cst_240 = arith.constant dense<0.000000e+00> : vector<16x32xf32>
    %730 = tpu.matmul %729, %728, %cst_240 {dimension_numbers = #tpu.dot_dimension_numbers<[1], [0], [0], [1], [0, 0, 1, 1], [], []>} : vector<16x32xbf16>, vector<32x32xbf16>, vector<16x32xf32> -> vector<16x32xf32>
    %c31 = arith.constant 31 : index
    %c0_241 = arith.constant 0 : index
    %731 = vector.load %arg1[%c31, %c0_241] : memref<41x128xf32, #tpu.memory_space<vmem>>, vector<1x32xf32>
    %732 = vector.broadcast %731 : vector<1x32xf32> to vector<16x32xf32>
    %733 = arith.addf %730, %732 : vector<16x32xf32>
    %734 = arith.addf %628, %733 : vector<16x32xf32>
    %c36 = arith.constant 36 : index
    %c0_242 = arith.constant 0 : index
    %735 = vector.load %arg1[%c36, %c0_242] : memref<41x128xf32, #tpu.memory_space<vmem>>, vector<1x32xf32>
    %c37 = arith.constant 37 : index
    %c0_243 = arith.constant 0 : index
    %736 = vector.load %arg1[%c37, %c0_243] : memref<41x128xf32, #tpu.memory_space<vmem>>, vector<1x32xf32>
    %cst_244 = arith.constant dense<0.000000e+00> : vector<16xf32>
    %737 = vector.multi_reduction <add>, %734, %cst_244 [1] : vector<16x32xf32> to vector<16xf32>
    %738 = vector.shape_cast %737 : vector<16xf32> to vector<16x1xf32>
    %cst_245 = arith.constant 3.200000e+01 : f32
    %739 = vector.broadcast %cst_245 : f32 to vector<16x1xf32>
    %740 = arith.divf %738, %739 : vector<16x1xf32>
    %741 = vector.broadcast %740 : vector<16x1xf32> to vector<16x32xf32>
    %742 = arith.subf %734, %741 : vector<16x32xf32>
    %743 = arith.mulf %742, %742 : vector<16x32xf32>
    %cst_246 = arith.constant dense<0.000000e+00> : vector<16xf32>
    %744 = vector.multi_reduction <add>, %743, %cst_246 [1] : vector<16x32xf32> to vector<16xf32>
    %745 = vector.shape_cast %744 : vector<16xf32> to vector<16x1xf32>
    %cst_247 = arith.constant 3.200000e+01 : f32
    %746 = vector.broadcast %cst_247 : f32 to vector<16x1xf32>
    %747 = arith.divf %745, %746 : vector<16x1xf32>
    %cst_248 = arith.constant 9.99999974E-6 : f32
    %748 = vector.broadcast %cst_248 : f32 to vector<16x1xf32>
    %749 = arith.addf %747, %748 : vector<16x1xf32>
    %750 = math.rsqrt %749 : vector<16x1xf32>
    %751 = vector.broadcast %750 : vector<16x1xf32> to vector<16x32xf32>
    %752 = arith.mulf %742, %751 : vector<16x32xf32>
    %753 = vector.broadcast %735 : vector<1x32xf32> to vector<16x32xf32>
    %754 = arith.mulf %752, %753 : vector<16x32xf32>
    %755 = vector.broadcast %736 : vector<1x32xf32> to vector<16x32xf32>
    %756 = arith.addf %754, %755 : vector<16x32xf32>
    %c672 = arith.constant 672 : index
    %c0_249 = arith.constant 0 : index
    %757 = vector.load %arg0[%c672, %c0_249] : memref<800x128xbf16, #tpu.memory_space<vmem>>, vector<32x64xbf16>
    %758 = arith.truncf %756 : vector<16x32xf32> to vector<16x32xbf16>
    %cst_250 = arith.constant dense<0.000000e+00> : vector<16x64xf32>
    %759 = tpu.matmul %758, %757, %cst_250 {dimension_numbers = #tpu.dot_dimension_numbers<[1], [0], [0], [1], [0, 0, 1, 1], [], []>} : vector<16x32xbf16>, vector<32x64xbf16>, vector<16x64xf32> -> vector<16x64xf32>
    %c32_251 = arith.constant 32 : index
    %c0_252 = arith.constant 0 : index
    %760 = vector.load %arg1[%c32_251, %c0_252] : memref<41x128xf32, #tpu.memory_space<vmem>>, vector<1x64xf32>
    %761 = vector.broadcast %760 : vector<1x64xf32> to vector<16x64xf32>
    %762 = arith.addf %759, %761 : vector<16x64xf32>
    %cst_253 = arith.constant 0.000000e+00 : f32
    %763 = vector.broadcast %cst_253 : f32 to vector<16x64xf32>
    %764 = arith.maximumf %762, %763 : vector<16x64xf32>
    %765 = math.absf %762 : vector<16x64xf32>
    %cst_254 = arith.constant 0.000000e+00 : f32
    %766 = vector.broadcast %cst_254 : f32 to vector<16x64xf32>
    %767 = arith.subf %766, %765 : vector<16x64xf32>
    %768 = math.exp %767 : vector<16x64xf32>
    %769 = math.log1p %768 : vector<16x64xf32>
    %770 = arith.addf %764, %769 : vector<16x64xf32>
    %771 = math.tanh %770 : vector<16x64xf32>
    %772 = arith.mulf %762, %771 : vector<16x64xf32>
    %c704 = arith.constant 704 : index
    %c0_255 = arith.constant 0 : index
    %773 = vector.load %arg0[%c704, %c0_255] : memref<800x128xbf16, #tpu.memory_space<vmem>>, vector<64x32xbf16>
    %774 = arith.truncf %772 : vector<16x64xf32> to vector<16x64xbf16>
    %cst_256 = arith.constant dense<0.000000e+00> : vector<16x32xf32>
    %775 = tpu.matmul %774, %773, %cst_256 {dimension_numbers = #tpu.dot_dimension_numbers<[1], [0], [0], [1], [0, 0, 1, 1], [], []>} : vector<16x64xbf16>, vector<64x32xbf16>, vector<16x32xf32> -> vector<16x32xf32>
    %c33 = arith.constant 33 : index
    %c0_257 = arith.constant 0 : index
    %776 = vector.load %arg1[%c33, %c0_257] : memref<41x128xf32, #tpu.memory_space<vmem>>, vector<1x32xf32>
    %777 = vector.broadcast %776 : vector<1x32xf32> to vector<16x32xf32>
    %778 = arith.addf %775, %777 : vector<16x32xf32>
    %779 = arith.addf %756, %778 : vector<16x32xf32>
    %c38 = arith.constant 38 : index
    %c0_258 = arith.constant 0 : index
    %780 = vector.load %arg1[%c38, %c0_258] : memref<41x128xf32, #tpu.memory_space<vmem>>, vector<1x32xf32>
    %c39 = arith.constant 39 : index
    %c0_259 = arith.constant 0 : index
    %781 = vector.load %arg1[%c39, %c0_259] : memref<41x128xf32, #tpu.memory_space<vmem>>, vector<1x32xf32>
    %cst_260 = arith.constant dense<0.000000e+00> : vector<16xf32>
    %782 = vector.multi_reduction <add>, %779, %cst_260 [1] : vector<16x32xf32> to vector<16xf32>
    %783 = vector.shape_cast %782 : vector<16xf32> to vector<16x1xf32>
    %cst_261 = arith.constant 3.200000e+01 : f32
    %784 = vector.broadcast %cst_261 : f32 to vector<16x1xf32>
    %785 = arith.divf %783, %784 : vector<16x1xf32>
    %786 = vector.broadcast %785 : vector<16x1xf32> to vector<16x32xf32>
    %787 = arith.subf %779, %786 : vector<16x32xf32>
    %788 = arith.mulf %787, %787 : vector<16x32xf32>
    %cst_262 = arith.constant dense<0.000000e+00> : vector<16xf32>
    %789 = vector.multi_reduction <add>, %788, %cst_262 [1] : vector<16x32xf32> to vector<16xf32>
    %790 = vector.shape_cast %789 : vector<16xf32> to vector<16x1xf32>
    %cst_263 = arith.constant 3.200000e+01 : f32
    %791 = vector.broadcast %cst_263 : f32 to vector<16x1xf32>
    %792 = arith.divf %790, %791 : vector<16x1xf32>
    %cst_264 = arith.constant 9.99999974E-6 : f32
    %793 = vector.broadcast %cst_264 : f32 to vector<16x1xf32>
    %794 = arith.addf %792, %793 : vector<16x1xf32>
    %795 = math.rsqrt %794 : vector<16x1xf32>
    %796 = vector.broadcast %795 : vector<16x1xf32> to vector<16x32xf32>
    %797 = arith.mulf %787, %796 : vector<16x32xf32>
    %798 = vector.broadcast %780 : vector<1x32xf32> to vector<16x32xf32>
    %799 = arith.mulf %797, %798 : vector<16x32xf32>
    %800 = vector.broadcast %781 : vector<1x32xf32> to vector<16x32xf32>
    %801 = arith.addf %799, %800 : vector<16x32xf32>
    %c768 = arith.constant 768 : index
    %c0_265 = arith.constant 0 : index
    %802 = vector.load %arg0[%c768, %c0_265] : memref<800x128xbf16, #tpu.memory_space<vmem>>, vector<32x3xbf16>
    %803 = arith.truncf %801 : vector<16x32xf32> to vector<16x32xbf16>
    %cst_266 = arith.constant dense<0.000000e+00> : vector<16x3xf32>
    %804 = tpu.matmul %803, %802, %cst_266 {dimension_numbers = #tpu.dot_dimension_numbers<[1], [0], [0], [1], [0, 0, 1, 1], [], []>} : vector<16x32xbf16>, vector<32x3xbf16>, vector<16x3xf32> -> vector<16x3xf32>
    %c40 = arith.constant 40 : index
    %c0_267 = arith.constant 0 : index
    %805 = vector.load %arg1[%c40, %c0_267] : memref<41x128xf32, #tpu.memory_space<vmem>>, vector<1x3xf32>
    %806 = vector.broadcast %805 : vector<1x3xf32> to vector<16x3xf32>
    %807 = arith.addf %804, %806 : vector<16x3xf32>
    %c0_268 = arith.constant 0 : index
    %c0_269 = arith.constant 0 : index
    %808 = vector.load %arg4[%c0_268, %c0_269] : memref<16x3xf32, #tpu.memory_space<vmem>>, vector<16x3xf32>
    tpu.vector_store %arg4[%c0_268, %c0_269], %807 {strides = array<i32>} : memref<16x3xf32, #tpu.memory_space<vmem>>, vector<16x3xf32>,
    return
  }
}

</mosaic_0001>

<bundles_post_ra>
// kernel: forward.1
= control target key start
LH: loop header
LB: loop body
LE: loop exit
PB: predicated region body
PF: predicated region fallthrough
CT: control target
= control target key end

     0   :  { %9 = vsyncpa [#allocation4], 0  ;;  %s5938_s0 = inlined_call_operand.hbm [shape: bf16[800,128], index: 0, kind: input, shape index: {}]   ;;  %s5939_s1 = inlined_call_operand.hbm [shape: f32[41,128], index: 1, kind: input, shape index: {}]   ;;  %s5940_s2 = inlined_call_operand.hbm [shape: f32[16,32], index: 2, kind: input, shape index: {}]   ;;  %s5941_s3 = inlined_call_operand.vmem [shape: f32[16,32], index: 3, kind: input, shape index: {}]   ;;  %s5942_s4 = inlined_call_operand.vmem [shape: f32[16,3], index: 4, kind: output, shape index: {}]  }
   0x1   :  { %10 = vsyncpa [#allocation6], 0  ;;  %s5200_s15 = smov [#allocation5]   ;;  %s5130_s19 = scalar_lea.hbm %s5939_s1, 768 }
   0x2   :  { %s28_s16 = sshll.u32 %s5200_s15, 4  ;;  %p5131_p0 = scmp.ne.s32.totalorder %s5939_s1, %s5130_s19  ;;  %s29_s16 = int_to_ptr.vmem [resolvable:$true] %s28_s16 }
   0x3   :  { %p5134_p1 = scmp.lt.u32.totalorder %s5130_s19, %s5939_s1 }
   0x5   :  { %p5136_p2 = pnand %p5134_p1, %p5131_p0 }
   0x7   :  { %5139 = shalt.err (!%p5136_p2)
}
   0x8   :  { %s5140_s24 = scalar_lea.vmem %s29_s16, 768  ;;  %p5145_p4 = scmp.lt.s32.totalorder %s29_s16, %s29_s16 }
   0x9   :  { %p5141_p3 = scmp.ne.s32.totalorder %s29_s16, %s5140_s24  ;;  %p5146_p5 = scmp.lt.s32.totalorder %s5140_s24, %s5140_s24 }
   0xb   :  { %p5147_p6 = por %p5146_p5, %p5145_p4 }
   0xd   :  { %p5148_p7 = pnand %p5147_p6, %p5141_p3 }
   0xf   :  { %5151 = shalt.err (!%p5148_p7)
}
  0x10   :  { %s5201_s25 = smov 128   ;;  %s5202_s26 = smov 8  }
  0x11   :  { %34 = dma.hbm_to_vmem [thread:$0]  %s5939_s1, 768, %s29_s16, [#allocation6], %s5201_s25, %s5201_s25, %s5202_s26  }
  0x12   :  { %s5203_s29 = smov [#allocation3]   ;;  %s5152_s7 = scalar_lea.hbm %s5938_s0, 6400 }
  0x13   :  { %s16_s30 = sshll.u32 %s5203_s29, 4  ;;  %p5153_p8 = scmp.ne.s32.totalorder %s5938_s0, %s5152_s7  ;;  %s17_s30 = int_to_ptr.vmem [resolvable:$true] %s16_s30 }
  0x14   :  { %p5156_p9 = scmp.lt.u32.totalorder %s5152_s7, %s5938_s0 }
  0x16   :  { %p5158_p10 = pnand %p5156_p9, %p5153_p8 }
  0x18   :  { %5161 = shalt.err (!%p5158_p10)
}
  0x19   :  { %s5162_s12 = scalar_lea.vmem %s17_s30, 6400  ;;  %p5167_p12 = scmp.lt.s32.totalorder %s17_s30, %s17_s30 }
  0x1a   :  { %p5163_p11 = scmp.ne.s32.totalorder %s17_s30, %s5162_s12  ;;  %p5168_p13 = scmp.lt.s32.totalorder %s5162_s12, %s5162_s12 }
  0x1c   :  { %p5169_p0 = por %p5168_p13, %p5167_p12 }
  0x1e   :  { %p5170_p1 = pnand %p5169_p0, %p5163_p11 }
  0x20   :  { %5173 = shalt.err (!%p5170_p1)
}
  0x21   :  { %s5204_s1 = smov 64   ;;  %s5205_s13 = smov 4  }
  0x22   :  { %22 = dma.hbm_to_vmem [thread:$0]  %s5938_s0, 6400, %s17_s30, [#allocation4], %s5204_s1, %s5204_s1, %s5205_s13  }
  0x23   :  { %s5206_s16 = smov [#allocation7]   ;;  %s5174_s20 = scalar_lea.hbm %s5940_s2, 256 }
  0x24   :  { %s40_s17 = sshll.u32 %s5206_s16, 4  ;;  %p5175_p2 = scmp.ne.s32.totalorder %s5940_s2, %s5174_s20  ;;  %s41_s17 = int_to_ptr.vmem [resolvable:$true] %s40_s17 }
  0x25   :  { %p5178_p3 = scmp.lt.u32.totalorder %s5174_s20, %s5940_s2 }
  0x27   :  { %p5180_p4 = pnand %p5178_p3, %p5175_p2 }
  0x29   :  { %5183 = shalt.err (!%p5180_p4)
}
  0x2a   :  { %s5184_s27 = scalar_lea.vmem %s41_s17, 256  ;;  %p5189_p6 = scmp.lt.s32.totalorder %s41_s17, %s41_s17 }
  0x2b   :  { %p5185_p5 = scmp.ne.s32.totalorder %s41_s17, %s5184_s27  ;;  %p5190_p7 = scmp.lt.s32.totalorder %s5184_s27, %s5184_s27 }
  0x2d   :  { %p5191_p8 = por %p5190_p7, %p5189_p6 }
  0x2f   :  { %p5192_p9 = pnand %p5191_p8, %p5185_p5 }
  0x31   :  { %5195 = shalt.err (!%p5192_p9)
}
  0x32   :  { %46 = dma.hbm_to_vmem [thread:$0]  %s5940_s2, 256, %s41_s17, [#allocation6], %s5201_s25, %s5201_s25, %s5202_s26  }
  0x33   :  { %5196 = dma.done.wait [#allocation4], 6400  }
  0x34   :  { %5197 = vsyncadd [#allocation4], 4294960896 }
  0x35   :  { %5198 = dma.done.wait [#allocation6], 1024  }
  0x36   :  { %5199 = vsyncadd [#allocation6], 4294966272  ;;  %v5207_v0 = vmov 0.0   ;;  %vm5208_vm0 = vmmov 0   ;;  %v4864_v1 = vld [vmem:[#allocation3] sm:$0xff]   ;;  %v4865_v2 = vld [vmem:[#allocation3 + $0x8] sm:$0xff]   ;;  %v62_v25 = vlaneseq }
  0x37   :  { %4466 = vmatprep.subr.bf16.mxu0 %v5207_v0  ;;  %4470 = vmatprep.mubr.msk.bf16.mxu0 %vm5208_vm0, %v5207_v0  ;;  %v5297_v3 = vld [vmem:[#allocation7] sm:$0xff]  ;;  %v5299_v4 = vld [vmem:[#allocation7 + $0x8] sm:$0xff]  ;;  %vm116_vm1 = vcmask 261120   ;;  %v4187_v6 = vld [vmem:[#allocation5] ss:$0 sm:$0xff]  ;;  %s5209_s2 = smov 120  }
  0x38   :  { %4474 = vmatprep.subr.bf16.mxu1 %v5207_v0  ;;  %4476 = vmatprep.mubr.msk.bf16.mxu1 %vm5208_vm0, %v5207_v0  ;;  %v98_v5 = vpack.c.bf16 %v5299_v4, %v5297_v3  ;;  %s5210_s25 = smov 96   ;;  %s5211_s29 = smov 80   ;;  %vm165_vm2 = vcmask 64512   ;;  %v63_v26 = vand.u32 127, %v62_v25  ;;  %v5216_v27 = vmov -1e+30  }
  0x39   :  { %4467 = vmatpush3.bf16.msra.mxu0 %v4864_v1  ;;  %s5212_s30 = smov 88   ;;  %s5213_s5 = smov 72   ;;  %vm213_vm7 = vcmask 130048   ;;  %vm415_vm8 = vcmask 130112   ;;  %vm547_vm9 = vcmask 195712   ;;  %vm679_vm10 = vcmask 261312  }
  0x3a   :  { %4468 = vmatprep.subr.bf16.mxu0 %v5207_v0  ;;  %s5214_s6 = smov 112   ;;  %s5215_s7 = smov 104   ;;  %vm82_vm3 = vcmp.ge.s32.totalorder %v63_v26, 8  ;;  %vm85_vm4 = vcmp.lt.s32.totalorder %v63_v26, 16  ;;  %vm73_vm5 = vcmp.lt.s32.totalorder %v63_v26, 8  ;;  %vm931_vm13 = vcmask 523264  }
  0x3b   :  { %vm87_vm6 = vmand %vm82_vm3, %vm85_vm4  ;;  %v5345_v28 = vsel %vm73_vm5, 0.0, %v5216_v27  ;;  %s5217_s8 = smov 56   ;;  %s5218_s9 = smov 48   ;;  %vm4178_vm5 = vcmask 23552  }
  0x3c   :  { %v5347_v30 = vsel %vm87_vm6, 0.0, %v5216_v27  ;;  %s5219_s10 = smov 40   ;;  %s5220_s11 = smov 16  }
  0x3d   :  { %4469 = vmatpush3.bf16.msra.mxu0 %v4865_v2  ;;  %s5221_s12 = smov 24  }
  0x3e   :  { %4480 = vmatprep.subr.bf16.mxu0 %v5207_v0 }
  0x40   :  { %4471 = vmatmul.mubr.msk.bf16.vlgmr.msra.gmra.mrb[0].mxu0 %vm116_vm1, %v98_v5 }
  0x41   :  { %4482 = vmatprep.mubr.msk.bf16.mxu0 %vm5208_vm0, %v5207_v0 }
 0x113   :  { %v154_v7 = vpop.f32.mrb[0].mxu0 }
 0x114   :  { %v4472_v8 = vpop.f32.mrb[1].mxu0  ;;  %v155_v10 = vadd.f32 %v4187_v6, %v154_v7 }
 0x115   :  { %v157_v9 = vpop.f32.mrb[2].mxu0 }
 0x116   :  { %v158_v11 = vadd.f32 %v4187_v6, %v157_v9  ;;  %v4473_v12 = vpop.f32.mrb[3].mxu0 }
 0x118   :  { %v5308_v13 = vpack.c.bf16 %v158_v11, %v155_v10 }
 0x11a   :  { %286 = vrot.lane.b32.xlu1 %v5308_v13, %s5209_s2  ;;  %163 = vrot.lane.b32.xlu0 %v5308_v13, %s5210_s25 }
 0x11e   :  { %420 = vrot.lane.b32.xlu1 %v5308_v13, %s5211_s29  ;;  %288 = vrot.lane.b32.xlu0 %v5308_v13, %s5212_s30 }
 0x122   :  { %552 = vrot.lane.b32.xlu1 %v5308_v13, %s5213_s5  ;;  %418 = vrot.lane.b32.xlu0 %v5308_v13, %s5214_s6 }
 0x126   :  { %550 = vrot.lane.b32.xlu0 %v5308_v13, %s5215_s7 }
 0x18c   :  { %v164_v14 = vpop.permute.xlu0 %163  ;;  %v287_v17 = vpop.permute.xlu1 %286 }
 0x18d   :  { %v170_v15 = vsel %vm165_vm2, %v164_v14, 0 }
 0x18e   :  { %4475 = vmatpush3.bf16.xpose.msra.mxu1 %v170_v15 }
 0x18f   :  { %4486 = vmatprep.subr.bf16.mxu1 %v5207_v0 }
 0x190   :  { %v289_v16 = vpop.permute.xlu0 %288  ;;  %v421_v19 = vpop.permute.xlu1 %420 }
 0x191   :  { %v294_v18 = vsel %vm165_vm2, %v289_v16, 0  ;;  %v426_v20 = vsel %vm165_vm2, %v421_v19, 0 }
 0x194   :  { %v553_v21 = vpop.permute.xlu1 %552  ;;  %v419_v22 = vpop.permute.xlu0 %418 }
 0x195   :  { %4477 = vmatmul.mubr.msk.bf16.vlgmr.msra.gmra.mrb[0].mxu1 %vm165_vm2, %v5308_v13  ;;  %v558_v23 = vsel %vm165_vm2, %v553_v21, 0 }
 0x196   :  { %4487 = vmatpush3.bf16.xpose.msra.mxu1 %v294_v18  ;;  %4488 = vmatprep.mubr.msk.bf16.mxu1 %vm5208_vm0, %v5207_v0 }
 0x197   :  { %4498 = vmatprep.subr.bf16.mxu1 %v5207_v0 }
 0x198   :  { %v551_v24 = vpop.permute.xlu0 %550 }
 0x19d   :  { %4489 = vmatmul.mubr.msk.bf16.vlgmr.msra.gmra.mrb[4].mxu1 %vm165_vm2, %v287_v17 }
 0x19e   :  { %4499 = vmatpush3.bf16.xpose.msra.mxu1 %v426_v20  ;;  %4500 = vmatprep.mubr.msk.bf16.mxu1 %vm5208_vm0, %v5207_v0 }
 0x19f   :  { %4510 = vmatprep.subr.bf16.mxu1 %v5207_v0 }
 0x1a5   :  { %4501 = vmatmul.mubr.msk.bf16.vlgmr.msra.gmra.mrb[8].mxu1 %vm165_vm2, %v419_v22 }
 0x1a6   :  { %4511 = vmatpush3.bf16.xpose.msra.mxu1 %v558_v23  ;;  %4512 = vmatprep.mubr.msk.bf16.mxu1 %vm5208_vm0, %v5207_v0 }
 0x1a7   :  { %4522 = vmatprep.subr.bf16.mxu1 %v5207_v0 }
 0x1ad   :  { %4513 = vmatmul.mubr.msk.bf16.vlgmr.msra.gmra.mrb[12].mxu1 %vm165_vm2, %v551_v24 }
 0x1ae   :  { %4526 = vmatprep.mubr.msk.bf16.mxu1 %vm5208_vm0, %v5207_v0 }
 0x268   :  { %v206_v29 = vpop.f32.mrb[0].mxu1 }
 0x269   :  { %v207_v31 = vadd.f32 %v206_v29, %v5345_v28  ;;  %v4478_v32 = vpop.f32.mrb[1].mxu1 }
 0x26a   :  { %v209_v33 = vpop.f32.mrb[2].mxu1 }
 0x26b   :  { %v210_v34 = vadd.f32 %v209_v33, %v5347_v30  ;;  %v4479_v35 = vpop.f32.mrb[3].mxu1  ;;  %v214_v36 = vsel %vm213_vm7, %v207_v31, -inf }
 0x26c   :  { %215 = vmax.xlane.f32.xlu1 %v214_v36 }
 0x26d   :  { %v217_v37 = vsel %vm213_vm7, %v210_v34, -inf }
 0x26e   :  { %218 = vmax.xlane.f32.xlu0 %v217_v37 }
 0x270   :  { %v330_v38 = vpop.f32.mrb[4].mxu1 }
 0x271   :  { %v331_v39 = vadd.f32 %v330_v38, %v5345_v28  ;;  %v4490_v40 = vpop.f32.mrb[5].mxu1 }
 0x272   :  { %v333_v41 = vpop.f32.mrb[6].mxu1 }
 0x273   :  { %v334_v42 = vadd.f32 %v333_v41, %v5347_v30  ;;  %v4491_v43 = vpop.f32.mrb[7].mxu1  ;;  %v337_v44 = vsel %vm213_vm7, %v331_v39, -inf }
 0x274   :  { %338 = vmax.xlane.f32.xlu0 %v337_v44 }
 0x275   :  { %v340_v45 = vsel %vm213_vm7, %v334_v42, -inf }
 0x276   :  { %341 = vmax.xlane.f32.xlu1 %v340_v45 }
 0x278   :  { %v462_v46 = vpop.f32.mrb[8].mxu1 }
 0x279   :  { %v463_v47 = vadd.f32 %v462_v46, %v5345_v28  ;;  %v4502_v48 = vpop.f32.mrb[9].mxu1 }
 0x27a   :  { %v465_v49 = vpop.f32.mrb[10].mxu1 }
 0x27b   :  { %v466_v50 = vadd.f32 %v465_v49, %v5347_v30  ;;  %v4503_v51 = vpop.f32.mrb[11].mxu1  ;;  %v469_v52 = vsel %vm213_vm7, %v463_v47, -inf }
 0x27c   :  { %470 = vmax.xlane.f32.xlu0 %v469_v52 }
 0x27d   :  { %v472_v53 = vsel %vm213_vm7, %v466_v50, -inf }
 0x27e   :  { %473 = vmax.xlane.f32.xlu1 %v472_v53 }
 0x280   :  { %v594_v54 = vpop.f32.mrb[12].mxu1 }
 0x281   :  { %v595_v55 = vadd.f32 %v594_v54, %v5345_v28  ;;  %v4514_v56 = vpop.f32.mrb[13].mxu1 }
 0x282   :  { %v597_v57 = vpop.f32.mrb[14].mxu1 }
 0x283   :  { %v598_v58 = vadd.f32 %v597_v57, %v5347_v30  ;;  %v4515_v59 = vpop.f32.mrb[15].mxu1  ;;  %v601_v60 = vsel %vm213_vm7, %v595_v55, -inf }
 0x284   :  { %602 = vmax.xlane.f32.xlu0 %v601_v60 }
 0x285   :  { %v604_v61 = vsel %vm213_vm7, %v598_v58, -inf }
 0x286   :  { %605 = vmax.xlane.f32.xlu1 %v604_v61 }
 0x2f9   :  { %v216_v62 = vpop.xlane.xlu1 %215 }
 0x2fa   :  { %v220_v63 = vsub.f32 %v207_v31, %v216_v62 }
 0x2fb   :  { %v219_v1 = vpop.xlane.xlu0 %218 }
 0x2fc   :  { %v222_v2 = vmul.f32 1.442695, %v220_v63  ;;  %v221_v5 = vsub.f32 %v210_v34, %v219_v1 }
 0x2fe   :  { %4914 = vpow2.f32 %v222_v2  ;;  %v224_v6 = vmul.f32 1.442695, %v221_v5 }
 0x300   :  { %4916 = vpow2.f32 %v224_v6 }
 0x301   :  { %v339_v7 = vpop.xlane.xlu0 %338 }
 0x302   :  { %v343_v8 = vsub.f32 %v331_v39, %v339_v7 }
 0x303   :  { %v342_v17 = vpop.xlane.xlu1 %341 }
 0x304   :  { %v345_v9 = vmul.f32 1.442695, %v343_v8  ;;  %v344_v18 = vsub.f32 %v334_v42, %v342_v17 }
 0x306   :  { %4918 = vpow2.f32 %v345_v9  ;;  %v347_v21 = vmul.f32 1.442695, %v344_v18 }
 0x308   :  { %v4915_v10 = vpop.eup %4914  ;;  %4920 = vpow2.f32 %v347_v21 }
 0x309   :  { %v226_v11 = vsel %vm213_vm7, %v4915_v10, 0.0  ;;  %v471_v20 = vpop.xlane.xlu0 %470 }
 0x30a   :  { %v4917_v12 = vpop.eup %4916  ;;  %227 = vadd.xlane.f32.xlu0 %v226_v11  ;;  %v475_v24 = vsub.f32 %v463_v47, %v471_v20 }
 0x30b   :  { %v229_v14 = vsel %vm213_vm7, %v4917_v12, 0.0  ;;  %v474_v19 = vpop.xlane.xlu1 %473 }
 0x30c   :  { %230 = vadd.xlane.f32.xlu1 %v229_v14  ;;  %v476_v22 = vsub.f32 %v466_v50, %v474_v19  ;;  %v477_v29 = vmul.f32 1.442695, %v475_v24 }
 0x30e   :  { %v479_v26 = vmul.f32 1.442695, %v476_v22 }
 0x310   :  { %v5367_v15 = vpop.eup %4918  ;;  %4922 = vpow2.f32 %v479_v26 }
 0x311   :  { %v349_v16 = vsel %vm213_vm7, %v5367_v15, 0.0  ;;  %v603_v25 = vpop.xlane.xlu0 %602  ;;  %4924 = vpow2.f32 %v477_v29 }
 0x312   :  { %350 = vadd.xlane.f32.xlu0 %v349_v16  ;;  %v607_v31 = vsub.f32 %v595_v55, %v603_v25  ;;  %v4921_v34 = vpop.eup %4920  ;;  %v4867_v25 = vld [vmem:[#allocation3 + $0x18] sm:$0xff]  }
 0x313   :  { %v606_v23 = vpop.xlane.xlu1 %605  ;;  %v352_v35 = vsel %vm213_vm7, %v4921_v34, 0.0 }
 0x314   :  { %v608_v27 = vsub.f32 %v598_v58, %v606_v23  ;;  %v609_v33 = vmul.f32 1.442695, %v607_v31  ;;  %v4866_v23 = vld [vmem:[#allocation3 + $0x10] sm:$0xff]  }
 0x315   :  { %4523 = vmatpush3.bf16.msra.mxu1 %v4866_v23  ;;  %v4872_v23 = vld [vmem:[#allocation3 + $0x40] sm:$0xff]  }
 0x316   :  { %v611_v32 = vmul.f32 1.442695, %v608_v27  ;;  %4524 = vmatprep.subr.bf16.mxu1 %v5207_v0 }
 0x318   :  { %4926 = vpow2.f32 %v611_v32 }
 0x319   :  { %4928 = vpow2.f32 %v609_v33  ;;  %4525 = vmatpush3.bf16.msra.mxu1 %v4867_v25  ;;  %v4205_v25 = vld [vmem:[#allocation5 + $0x2] ss:$0 sm:$0xff] }
 0x31a   :  { %v4923_v36 = vpop.eup %4922  ;;  %4538 = vmatprep.subr.bf16.mxu1 %v5207_v0 }
 0x31b   :  { %v4925_v37 = vpop.eup %4924  ;;  %v484_v38 = vsel %vm213_vm7, %v4923_v36, 0.0 }
 0x31c   :  { %v481_v40 = vsel %vm213_vm7, %v4925_v37, 0.0 }
 0x31d   :  { %360 = vrot.lane.b32.xlu1 %v5308_v13, %s5217_s8 }
 0x322   :  { %v5377_v39 = vpop.eup %4926 }
 0x323   :  { %v4929_v41 = vpop.eup %4928  ;;  %v616_v42 = vsel %vm213_vm7, %v5377_v39, 0.0 }
 0x324   :  { %v613_v43 = vsel %vm213_vm7, %v4929_v41, 0.0 }
 0x328   :  { %237 = vrot.lane.b32.xlu0 %v5308_v13, %s5204_s1 }
 0x341   :  { %353 = vadd.xlane.f32.xlu1 %v352_v35 }
 0x345   :  { %485 = vadd.xlane.f32.xlu1 %v484_v38 }
 0x347   :  { %482 = vadd.xlane.f32.xlu0 %v481_v40 }
 0x349   :  { %617 = vadd.xlane.f32.xlu1 %v616_v42 }
 0x34b   :  { %614 = vadd.xlane.f32.xlu0 %v613_v43 }
 0x35a   :  { %492 = vrot.lane.b32.xlu1 %v5308_v13, %s5218_s9 }
 0x361   :  { %624 = vrot.lane.b32.xlu0 %v5308_v13, %s5219_s10 }
 0x397   :  { %v228_v44 = vpop.xlane.xlu0 %227 }
 0x398   :  { %4930 = vrcp.f32 %v228_v44  ;;  %v4199_v44 = vld [vmem:[#allocation5 + $0x1] ss:$0 sm:$0xff] }
 0x399   :  { %v231_v45 = vpop.xlane.xlu1 %230 }
 0x39a   :  { %4932 = vrcp.f32 %v231_v45 }
 0x39d   :  { %v361_v53 = vpop.permute.xlu1 %360 }
 0x39f   :  { %v351_v46 = vpop.xlane.xlu0 %350 }
 0x3a0   :  { %4934 = vrcp.f32 %v351_v46 }
 0x3a2   :  { %v4931_v47 = vpop.eup %4930 }
 0x3a3   :  { %v238_v48 = vpop.permute.xlu0 %237  ;;  %v234_v50 = vmul.f32 %v4931_v47, %v4915_v10 }
 0x3a4   :  { %v4933_v49 = vpop.eup %4932  ;;  %4481 = vmatpush3.bf16.msra.mxu0 %v238_v48 }
 0x3a5   :  { %v235_v51 = vmul.f32 %v4933_v49, %v4917_v12  ;;  %4492 = vmatprep.subr.bf16.mxu0 %v5207_v0 }
 0x3a7   :  { %v236_v52 = vpack.c.bf16 %v235_v51, %v234_v50 }
 0x3a9   :  { %4483 = vmatmul.mubr.msk.bf16.vlgmr.msra.gmra.mrb[4].mxu0 %vm213_vm7, %v236_v52 }
 0x3aa   :  { %4493 = vmatpush3.bf16.msra.mxu0 %v361_v53  ;;  %4494 = vmatprep.mubr.msk.bf16.mxu0 %vm5208_vm0, %v5207_v0  ;;  %v4935_v56 = vpop.eup %4934 }
 0x3ab   :  { %4504 = vmatprep.subr.bf16.mxu0 %v5207_v0  ;;  %v357_v60 = vmul.f32 %v4935_v56, %v5367_v15 }
 0x3ce   :  { %v354_v13 = vpop.xlane.xlu1 %353 }
 0x3cf   :  { %4936 = vrcp.f32 %v354_v13 }
 0x3d2   :  { %v486_v54 = vpop.xlane.xlu1 %485 }
 0x3d3   :  { %4938 = vrcp.f32 %v486_v54 }
 0x3d4   :  { %v483_v55 = vpop.xlane.xlu0 %482 }
 0x3d5   :  { %4940 = vrcp.f32 %v483_v55 }
 0x3d6   :  { %v618_v57 = vpop.xlane.xlu1 %617 }
 0x3d8   :  { %v615_v58 = vpop.xlane.xlu0 %614 }
 0x3d9   :  { %v4937_v59 = vpop.eup %4936  ;;  %4942 = vrcp.f32 %v615_v58 }
 0x3da   :  { %v358_v61 = vmul.f32 %v4937_v59, %v4921_v34  ;;  %4944 = vrcp.f32 %v618_v57  ;;  %v493_v1 = vpop.permute.xlu1 %492 }
 0x3dc   :  { %v359_v62 = vpack.c.bf16 %v358_v61, %v357_v60  ;;  %v625_v9 = vpop.permute.xlu0 %624 }
 0x3dd   :  { %v4939_v63 = vpop.eup %4938 }
 0x3de   :  { %4495 = vmatmul.mubr.msk.bf16.vlgmr.msra.gmra.mrb[8].mxu0 %vm213_vm7, %v359_v62  ;;  %v490_v6 = vmul.f32 %v4939_v63, %v4923_v36  ;;  %v4868_v63 = vld [vmem:[#allocation3 + $0x20] sm:$0xff]  }
 0x3df   :  { %v4941_v2 = vpop.eup %4940  ;;  %4505 = vmatpush3.bf16.msra.mxu0 %v493_v1  ;;  %4506 = vmatprep.mubr.msk.bf16.mxu0 %vm5208_vm0, %v5207_v0 }
 0x3e0   :  { %v489_v5 = vmul.f32 %v4941_v2, %v4925_v37  ;;  %4516 = vmatprep.subr.bf16.mxu0 %v5207_v0 }
 0x3e2   :  { %v491_v7 = vpack.c.bf16 %v490_v6, %v489_v5 }
 0x3e3   :  { %v4943_v8 = vpop.eup %4942 }
 0x3e4   :  { %v4945_v10 = vpop.eup %4944  ;;  %v621_v11 = vmul.f32 %v4943_v8, %v4929_v41 }
 0x3e5   :  { %v622_v12 = vmul.f32 %v4945_v10, %v5377_v39  ;;  %v4203_v10 = vld [vmem:[#allocation5 + $0x4] ss:$0 sm:$0xff] }
 0x3e6   :  { %4507 = vmatmul.mubr.msk.bf16.vlgmr.msra.gmra.mrb[12].mxu0 %vm213_vm7, %v491_v7 }
 0x3e7   :  { %4517 = vmatpush3.bf16.msra.mxu0 %v625_v9  ;;  %4518 = vmatprep.mubr.msk.bf16.mxu0 %vm5208_vm0, %v5207_v0  ;;  %v623_v14 = vpack.c.bf16 %v622_v12, %v621_v11 }
 0x3e8   :  { %4530 = vmatprep.subr.bf16.mxu0 %v5207_v0 }
 0x3ee   :  { %4519 = vmatmul.mubr.msk.bf16.vlgmr.msra.gmra.mrb[16].mxu0 %vm213_vm7, %v623_v14 }
 0x3ef   :  { %4534 = vmatprep.mubr.msk.bf16.mxu0 %vm5208_vm0, %v5207_v0  ;;  %4531 = vmatpush3.bf16.msra.mxu0 %v4868_v63 }
 0x3f0   :  { %4532 = vmatprep.subr.bf16.mxu0 %v5207_v0 }
 0x47c   :  { %v277_v15 = vpop.f32.mrb[4].mxu0 }
 0x47d   :  { %284 = vst.msk [vmem:[#allocation2] sm:$0xff] %vm165_vm2, %v277_v15  ;;  %v4484_v16 = vpop.f32.mrb[5].mxu0 }
 0x47e   :  { %v280_v17 = vpop.f32.mrb[6].mxu0  ;;  %v4204_v16 = vld [vmem:[#allocation5 + $0x5] ss:$0 sm:$0xff] }
 0x47f   :  { %285 = vst.msk [vmem:[#allocation2 + $0x8] sm:$0xff] %vm165_vm2, %v280_v17  ;;  %v4485_v18 = vpop.f32.mrb[7].mxu0 }
 0x4b1   :  { %v400_v19 = vpop.f32.mrb[8].mxu0 }
 0x4b2   :  { %409 = vrot.lane.b32.xlu1 %v400_v19, %s5202_s26  ;;  %v4496_v20 = vpop.f32.mrb[9].mxu0 }
 0x4b3   :  { %v403_v21 = vpop.f32.mrb[10].mxu0 }
 0x4b4   :  { %411 = vrot.lane.b32.xlu0 %v403_v21, %s5202_s26  ;;  %v4497_v22 = vpop.f32.mrb[11].mxu0  ;;  %v4870_v21 = vld [vmem:[#allocation3 + $0x30] sm:$0xff]  }
 0x4b5   :  { %v4871_v22 = vld [vmem:[#allocation3 + $0x38] sm:$0xff]  }
 0x4b9   :  { %v532_v24 = vpop.f32.mrb[12].mxu0 }
 0x4ba   :  { %541 = vrot.lane.b32.xlu1 %v532_v24, %s5220_s11  ;;  %v4508_v26 = vpop.f32.mrb[13].mxu0  ;;  %v4873_v24 = vld [vmem:[#allocation3 + $0x48] sm:$0xff]  }
 0x4bb   :  { %v535_v27 = vpop.f32.mrb[14].mxu0 }
 0x4bc   :  { %543 = vrot.lane.b32.xlu0 %v535_v27, %s5220_s11  ;;  %v4509_v29 = vpop.f32.mrb[15].mxu0 }
 0x4c1   :  { %v664_v31 = vpop.f32.mrb[16].mxu0 }
 0x4c2   :  { %673 = vrot.lane.b32.xlu1 %v664_v31, %s5221_s12  ;;  %v4520_v32 = vpop.f32.mrb[17].mxu0 }
 0x4c3   :  { %v667_v33 = vpop.f32.mrb[18].mxu0 }
 0x4c4   :  { %675 = vrot.lane.b32.xlu0 %v667_v33, %s5221_s12  ;;  %v4521_v34 = vpop.f32.mrb[19].mxu0 }
 0x524   :  { %v410_v35 = vpop.permute.xlu1 %409 }
 0x525   :  { %416 = vst.msk [vmem:[#allocation2] sm:$0xff] %vm415_vm8, %v410_v35 }
 0x526   :  { %v412_v36 = vpop.permute.xlu0 %411 }
 0x527   :  { %417 = vst.msk [vmem:[#allocation2 + $0x8] sm:$0xff] %vm415_vm8, %v412_v36 }
 0x52c   :  { %v542_v37 = vpop.permute.xlu1 %541 }
 0x52d   :  { %548 = vst.msk [vmem:[#allocation2] sm:$0xff] %vm547_vm9, %v542_v37 }
 0x52e   :  { %v544_v38 = vpop.permute.xlu0 %543 }
 0x52f   :  { %549 = vst.msk [vmem:[#allocation2 + $0x8] sm:$0xff] %vm547_vm9, %v544_v38 }
 0x534   :  { %v674_v39 = vpop.permute.xlu1 %673 }
 0x535   :  { %680 = vst.msk [vmem:[#allocation2] sm:$0xff] %vm679_vm10, %v674_v39 }
 0x536   :  { %v676_v40 = vpop.permute.xlu0 %675 }
 0x537   :  { %681 = vst.msk [vmem:[#allocation2 + $0x8] sm:$0xff] %vm679_vm10, %v676_v40 }
 0x53c   :  { %v682_v41 = vld [vmem:[#allocation2] sm:$0xff] }
 0x53e   :  { %v683_v42 = vld [vmem:[#allocation2 + $0x8] sm:$0xff] }
 0x53f   :  { %v688_v43 = vpack.c.bf16 %v683_v42, %v682_v41 }
 0x541   :  { %4527 = vmatmul.mubr.msk.bf16.vlgmr.msra.gmra.mrb[16].mxu1 %vm116_vm1, %v688_v43 }
 0x542   :  { %4546 = vmatprep.mubr.msk.bf16.mxu1 %vm5208_vm0, %v5207_v0  ;;  %4539 = vmatpush3.bf16.msra.mxu1 %v4870_v21 }
 0x543   :  { %4540 = vmatprep.subr.bf16.mxu1 %v5207_v0 }
 0x546   :  { %4541 = vmatpush3.bf16.msra.mxu1 %v4871_v22 }
 0x547   :  { %4542 = vmatprep.subr.bf16.mxu1 %v5207_v0 }
 0x54a   :  { %4543 = vmatpush3.bf16.msra.mxu1 %v4872_v23 }
 0x54b   :  { %4544 = vmatprep.subr.bf16.mxu1 %v5207_v0 }
 0x54e   :  { %4545 = vmatpush3.bf16.msra.mxu1 %v4873_v24 }
 0x54f   :  { %4564 = vmatprep.subr.bf16.mxu1 %v5207_v0 }
 0x614   :  { %v743_v45 = vpop.f32.mrb[16].mxu1 }
 0x615   :  { %v744_v46 = vadd.f32 %v4199_v44, %v743_v45  ;;  %v4528_v47 = vpop.f32.mrb[17].mxu1 }
 0x616   :  { %v746_v48 = vpop.f32.mrb[18].mxu1 }
 0x617   :  { %v747_v49 = vadd.f32 %v4199_v44, %v746_v48  ;;  %v4529_v50 = vpop.f32.mrb[19].mxu1  ;;  %v750_v51 = vadd.f32 %v744_v46, %v5297_v3 }
 0x619   :  { %v754_v52 = vsel %vm116_vm1, %v750_v51, 0.0  ;;  %v751_v53 = vadd.f32 %v747_v49, %v5299_v4  ;;  %v4869_v4 = vld [vmem:[#allocation3 + $0x28] sm:$0xff]  }
 0x61a   :  { %755 = vadd.xlane.f32.xlu1 %v754_v52  ;;  %4533 = vmatpush3.bf16.msra.mxu0 %v4869_v4 }
 0x61b   :  { %v757_v13 = vsel %vm116_vm1, %v751_v53, 0.0  ;;  %4550 = vmatprep.subr.bf16.mxu0 %v5207_v0 }
 0x61c   :  { %758 = vadd.xlane.f32.xlu0 %v757_v13 }
 0x6a7   :  { %v756_v54 = vpop.xlane.xlu1 %755 }
 0x6a8   :  { %v761_v55 = vmul.f32 0.03125, %v756_v54 }
 0x6a9   :  { %v759_v56 = vpop.xlane.xlu0 %758 }
 0x6aa   :  { %v763_v57 = vsub.f32 %v750_v51, %v761_v55  ;;  %v762_v58 = vmul.f32 0.03125, %v759_v56 }
 0x6ac   :  { %v764_v59 = vsub.f32 %v751_v53, %v762_v58  ;;  %v765_v60 = vmul.f32 %v763_v57, %v763_v57 }
 0x6ae   :  { %v767_v61 = vsel %vm116_vm1, %v765_v60, 0.0  ;;  %v766_v62 = vmul.f32 %v764_v59, %v764_v59 }
 0x6af   :  { %768 = vadd.xlane.f32.xlu0 %v767_v61 }
 0x6b0   :  { %v770_v3 = vsel %vm116_vm1, %v766_v62, 0.0 }
 0x6b1   :  { %771 = vadd.xlane.f32.xlu1 %v770_v3 }
 0x73c   :  { %v769_v1 = vpop.xlane.xlu0 %768 }
 0x73d   :  { %v773_v2 = vmul.f32 0.03125, %v769_v1  ;;  %v4209_v1 = vld [vmem:[#allocation5 + $0x3] ss:$0 sm:$0xff] }
 0x73e   :  { %v772_v5 = vpop.xlane.xlu1 %771 }
 0x73f   :  { %v775_v6 = vadd.f32 1e-05, %v773_v2  ;;  %v774_v7 = vmul.f32 0.03125, %v772_v5 }
 0x741   :  { %4946 = vrsqrt.f32 %v775_v6  ;;  %v776_v8 = vadd.f32 1e-05, %v774_v7 }
 0x743   :  { %4948 = vrsqrt.f32 %v776_v8 }
 0x74b   :  { %v4947_v9 = vpop.eup %4946 }
 0x74c   :  { %v779_v11 = vmul.f32 %v4947_v9, %v763_v57 }
 0x74d   :  { %v4949_v12 = vpop.eup %4948 }
 0x74e   :  { %v785_v14 = vmul.f32 %v4203_v10, %v779_v11  ;;  %v780_v15 = vmul.f32 %v4949_v12, %v764_v59 }
 0x750   :  { %v786_v17 = vmul.f32 %v4203_v10, %v780_v15  ;;  %v5432_v18 = vadd.f32 %v4204_v16, %v785_v14 }
 0x752   :  { %v5434_v19 = vadd.f32 %v4204_v16, %v786_v17 }
 0x754   :  { %v797_v20 = vpack.c.bf16 %v5434_v19, %v5432_v18 }
 0x756   :  { %4535 = vmatmul.mubr.msk.bf16.vlgmr.msra.gmra.mrb[20].mxu0 %vm116_vm1, %v797_v20 }
 0x757   :  { %4554 = vmatprep.mubr.msk.bf16.mxu0 %vm5208_vm0, %v5207_v0 }
 0x829   :  { %v852_v26 = vpop.f32.mrb[20].mxu0 }
 0x82a   :  { %v853_v27 = vadd.f32 %v4205_v25, %v852_v26  ;;  %v4536_v29 = vpop.f32.mrb[21].mxu0  ;;  %v4874_v26 = vld [vmem:[#allocation3 + $0x50] sm:$0xff]  }
 0x82b   :  { %v855_v31 = vpop.f32.mrb[22].mxu0  ;;  %4551 = vmatpush3.bf16.msra.mxu0 %v4874_v26 }
 0x82c   :  { %v861_v32 = vand.u32 2147483647, %v853_v27  ;;  %v856_v33 = vadd.f32 %v4205_v25, %v855_v31  ;;  %v4537_v34 = vpop.f32.mrb[23].mxu0  ;;  %v859_v13 = vmax.f32 %v853_v27, 0.0  ;;  %4552 = vmatprep.subr.bf16.mxu0 %v5207_v0 }
 0x82e   :  { %v863_v35 = vsub.f32 0.0, %v861_v32  ;;  %v862_v36 = vand.u32 2147483647, %v856_v33  ;;  %v860_v58 = vmax.f32 %v856_v33, 0.0 }
 0x830   :  { %v865_v37 = vmul.f32 1.442695, %v863_v35  ;;  %v864_v38 = vsub.f32 0.0, %v862_v36  ;;  %v4215_v36 = vld [vmem:[#allocation5 + $0x6] ss:$0 sm:$0xff] }
 0x832   :  { %4950 = vpow2.f32 %v865_v37  ;;  %v867_v39 = vmul.f32 1.442695, %v864_v38 }
 0x834   :  { %4952 = vpow2.f32 %v867_v39 }
 0x83c   :  { %v4951_v40 = vpop.eup %4950 }
 0x83d   :  { %v869_v41 = vadd.f32 1.0, %v4951_v40  ;;  %v872_v44 = vmul.f32 -0.5, %v4951_v40  ;;  %v875_v47 = vand.u32 2147483647, %v4951_v40 }
 0x83e   :  { %v4953_v42 = vpop.eup %4952 }
 0x83f   :  { %4954 = vlog2.f32 %v869_v41  ;;  %v878_v43 = vadd.f32 1.0, %v4953_v42  ;;  %v881_v45 = vmul.f32 -0.5, %v4953_v42  ;;  %v873_v46 = vadd.f32 1.0, %v872_v44  ;;  %v4216_v41 = vld [vmem:[#allocation5 + $0x7] ss:$0 sm:$0xff] }
 0x840   :  { %v884_v50 = vand.u32 2147483647, %v4953_v42  ;;  %vm876_vm11 = vcmp.lt.f32.partialorder %v875_v47, 0.0004427343 }
 0x841   :  { %4956 = vlog2.f32 %v878_v43  ;;  %v882_v48 = vadd.f32 1.0, %v881_v45  ;;  %v874_v52 = vmul.f32 %v4951_v40, %v873_v46  ;;  %v4217_v46 = vld [vmem:[#allocation5 + $0x8] ss:$0 sm:$0xff] }
 0x842   :  { %vm885_vm12 = vcmp.lt.f32.partialorder %v884_v50, 0.0004427343 }
 0x843   :  { %v883_v56 = vmul.f32 %v4953_v42, %v882_v48 }
 0x849   :  { %v4955_v49 = vpop.eup %4954 }
 0x84a   :  { %v871_v51 = vmul.f32 0.6931472, %v4955_v49 }
 0x84b   :  { %v4957_v53 = vpop.eup %4956 }
 0x84c   :  { %v877_v54 = vsel %vm876_vm11, %v874_v52, %v871_v51  ;;  %v880_v55 = vmul.f32 0.6931472, %v4957_v53 }
 0x84d   :  { %v887_v57 = vadd.f32 %v877_v54, %v859_v13 }
 0x84e   :  { %v886_v59 = vsel %vm885_vm12, %v883_v56, %v880_v55 }
 0x84f   :  { %4958 = vtanh.f32 %v887_v57  ;;  %v888_v60 = vadd.f32 %v886_v59, %v860_v58 }
 0x851   :  { %4960 = vtanh.f32 %v888_v60 }
 0x859   :  { %v4959_v61 = vpop.eup %4958 }
 0x85a   :  { %v891_v3 = vmul.f32 %v4959_v61, %v853_v27 }
 0x85b   :  { %v4961_v62 = vpop.eup %4960 }
 0x85c   :  { %v892_v63 = vmul.f32 %v4961_v62, %v856_v33 }
 0x85e   :  { %v901_v4 = vpack.c.bf16 %v892_v63, %v891_v3 }
 0x860   :  { %4547 = vmatmul.mubr.msk.bf16.vlgmr.msra.gmra.mrb[20].mxu1 %vm931_vm13, %v901_v4 }
 0x861   :  { %4566 = vmatprep.mubr.msk.bf16.mxu1 %vm5208_vm0, %v5207_v0 }
 0x933   :  { %v969_v2 = vpop.f32.mrb[20].mxu1 }
 0x934   :  { %v970_v5 = vadd.f32 %v4209_v1, %v969_v2  ;;  %v4548_v6 = vpop.f32.mrb[21].mxu1 }
 0x935   :  { %v972_v7 = vpop.f32.mrb[22].mxu1 }
 0x936   :  { %v973_v8 = vadd.f32 %v4209_v1, %v972_v7  ;;  %v4549_v9 = vpop.f32.mrb[23].mxu1  ;;  %v976_v10 = vadd.f32 %v970_v5, %v5432_v18 }
 0x938   :  { %v980_v11 = vsel %vm116_vm1, %v976_v10, 0.0  ;;  %v977_v12 = vadd.f32 %v973_v8, %v5434_v19  ;;  %v4875_v19 = vld [vmem:[#allocation3 + $0x58] sm:$0xff]  }
 0x939   :  { %981 = vadd.xlane.f32.xlu0 %v980_v11  ;;  %4553 = vmatpush3.bf16.msra.mxu0 %v4875_v19 }
 0x93a   :  { %v983_v14 = vsel %vm116_vm1, %v977_v12, 0.0  ;;  %4558 = vmatprep.subr.bf16.mxu0 %v5207_v0 }
 0x93b   :  { %984 = vadd.xlane.f32.xlu1 %v983_v14 }
 0x9c6   :  { %v982_v15 = vpop.xlane.xlu0 %981 }
 0x9c7   :  { %v986_v16 = vmul.f32 0.03125, %v982_v15 }
 0x9c8   :  { %v985_v17 = vpop.xlane.xlu1 %984 }
 0x9c9   :  { %v988_v20 = vsub.f32 %v976_v10, %v986_v16  ;;  %v987_v21 = vmul.f32 0.03125, %v985_v17 }
 0x9cb   :  { %v989_v22 = vsub.f32 %v977_v12, %v987_v21  ;;  %v990_v23 = vmul.f32 %v988_v20, %v988_v20 }
 0x9cd   :  { %v992_v24 = vsel %vm116_vm1, %v990_v23, 0.0  ;;  %v991_v25 = vmul.f32 %v989_v22, %v989_v22 }
 0x9ce   :  { %993 = vadd.xlane.f32.xlu0 %v992_v24 }
 0x9cf   :  { %v995_v18 = vsel %vm116_vm1, %v991_v25, 0.0 }
 0x9d0   :  { %996 = vadd.xlane.f32.xlu1 %v995_v18 }
 0xa5b   :  { %v994_v27 = vpop.xlane.xlu0 %993 }
 0xa5c   :  { %v998_v29 = vmul.f32 0.03125, %v994_v27 }
 0xa5d   :  { %v997_v31 = vpop.xlane.xlu1 %996 }
 0xa5e   :  { %v1000_v32 = vadd.f32 1e-05, %v998_v29  ;;  %v999_v33 = vmul.f32 0.03125, %v997_v31 }
 0xa60   :  { %4962 = vrsqrt.f32 %v1000_v32  ;;  %v1001_v34 = vadd.f32 1e-05, %v999_v33 }
 0xa62   :  { %4964 = vrsqrt.f32 %v1001_v34 }
 0xa6a   :  { %v4963_v35 = vpop.eup %4962 }
 0xa6b   :  { %v1004_v37 = vmul.f32 %v4963_v35, %v988_v20 }
 0xa6c   :  { %v4965_v38 = vpop.eup %4964 }
 0xa6d   :  { %v1010_v39 = vmul.f32 %v4215_v36, %v1004_v37  ;;  %v1005_v40 = vmul.f32 %v4965_v38, %v989_v22 }
 0xa6f   :  { %v1011_v42 = vmul.f32 %v4215_v36, %v1005_v40  ;;  %v5456_v43 = vadd.f32 %v4216_v41, %v1010_v39 }
 0xa71   :  { %v5458_v44 = vadd.f32 %v4216_v41, %v1011_v42 }
 0xa73   :  { %v1022_v45 = vpack.c.bf16 %v5458_v44, %v5456_v43 }
 0xa75   :  { %4555 = vmatmul.mubr.msk.bf16.vlgmr.msra.gmra.mrb[24].mxu0 %vm116_vm1, %v1022_v45 }
 0xa76   :  { %4560 = vmatprep.mubr.msk.bf16.mxu0 %vm5208_vm0, %v5207_v0 }
 0xb48   :  { %v1077_v47 = vpop.f32.mrb[24].mxu0 }
 0xb49   :  { %v4556_v48 = vpop.f32.mrb[25].mxu0  ;;  %v1078_v50 = vadd.f32 %v4217_v46, %v1077_v47 }
 0xb4a   :  { %v1080_v49 = vpop.f32.mrb[26].mxu0 }
 0xb4b   :  { %v1081_v51 = vadd.f32 %v4217_v46, %v1080_v49  ;;  %v4557_v52 = vpop.f32.mrb[27].mxu0 }
 0xb4d   :  { %v5465_v53 = vpack.c.bf16 %v1081_v51, %v1078_v50 }
 0xb4f   :  { %1209 = vrot.lane.b32.xlu1 %v5465_v53, %s5212_s30  ;;  %1086 = vrot.lane.b32.xlu0 %v5465_v53, %s5210_s25 }
 0xb53   :  { %1207 = vrot.lane.b32.xlu1 %v5465_v53, %s5209_s2  ;;  %1340 = vrot.lane.b32.xlu0 %v5465_v53, %s5211_s29 }
 0xb57   :  { %1338 = vrot.lane.b32.xlu1 %v5465_v53, %s5214_s6  ;;  %1471 = vrot.lane.b32.xlu0 %v5465_v53, %s5213_s5 }
 0xb5b   :  { %1469 = vrot.lane.b32.xlu1 %v5465_v53, %s5215_s7 }
 0xbc1   :  { %v1087_v13 = vpop.permute.xlu0 %1086  ;;  %v1210_v55 = vpop.permute.xlu1 %1209 }
 0xbc2   :  { %v1092_v54 = vsel %vm165_vm2, %v1087_v13, 0  ;;  %v1215_v56 = vsel %vm165_vm2, %v1210_v55, 0 }
 0xbc3   :  { %4559 = vmatpush3.bf16.xpose.msra.mxu0 %v1092_v54 }
 0xbc4   :  { %4570 = vmatprep.subr.bf16.mxu0 %v5207_v0 }
 0xbc5   :  { %v1341_v57 = vpop.permute.xlu0 %1340  ;;  %v1208_v58 = vpop.permute.xlu1 %1207 }
 0xbc6   :  { %v1346_v59 = vsel %vm165_vm2, %v1341_v57, 0 }
 0xbc9   :  { %v1472_v60 = vpop.permute.xlu0 %1471  ;;  %v1339_v61 = vpop.permute.xlu1 %1338 }
 0xbca   :  { %4561 = vmatmul.mubr.msk.bf16.vlgmr.msra.gmra.mrb[28].mxu0 %vm165_vm2, %v5465_v53  ;;  %v1477_v62 = vsel %vm165_vm2, %v1472_v60, 0 }
 0xbcb   :  { %4571 = vmatpush3.bf16.xpose.msra.mxu0 %v1215_v56  ;;  %4572 = vmatprep.mubr.msk.bf16.mxu0 %vm5208_vm0, %v5207_v0 }
 0xbcc   :  { %4582 = vmatprep.subr.bf16.mxu0 %v5207_v0 }
 0xbcd   :  { %v1470_v3 = vpop.permute.xlu1 %1469 }
 0xbd2   :  { %4573 = vmatmul.mubr.msk.bf16.vlgmr.msra.gmra.mrb[32].mxu0 %vm165_vm2, %v1208_v58 }
 0xbd3   :  { %4583 = vmatpush3.bf16.xpose.msra.mxu0 %v1346_v59  ;;  %4584 = vmatprep.mubr.msk.bf16.mxu0 %vm5208_vm0, %v5207_v0 }
 0xbd4   :  { %4594 = vmatprep.subr.bf16.mxu0 %v5207_v0 }
 0xbda   :  { %4585 = vmatmul.mubr.msk.bf16.vlgmr.msra.gmra.mrb[36].mxu0 %vm165_vm2, %v1339_v61 }
 0xbdb   :  { %4595 = vmatpush3.bf16.xpose.msra.mxu0 %v1477_v62  ;;  %4596 = vmatprep.mubr.msk.bf16.mxu0 %vm5208_vm0, %v5207_v0 }
 0xbdc   :  { %4606 = vmatprep.subr.bf16.mxu0 %v5207_v0 }
 0xbe2   :  { %4597 = vmatmul.mubr.msk.bf16.vlgmr.msra.gmra.mrb[40].mxu0 %vm165_vm2, %v1470_v3 }
 0xbe3   :  { %4610 = vmatprep.mubr.msk.bf16.mxu0 %vm5208_vm0, %v5207_v0 }
 0xc9d   :  { %v1128_v63 = vpop.f32.mrb[28].mxu0 }
 0xc9e   :  { %v1129_v4 = vadd.f32 %v1128_v63, %v5345_v28  ;;  %v4562_v1 = vpop.f32.mrb[29].mxu0 }
 0xc9f   :  { %v1131_v2 = vpop.f32.mrb[30].mxu0 }
 0xca0   :  { %v1132_v5 = vadd.f32 %v1131_v2, %v5347_v30  ;;  %v4563_v6 = vpop.f32.mrb[31].mxu0  ;;  %v1135_v7 = vsel %vm213_vm7, %v1129_v4, -inf }
 0xca1   :  { %1136 = vmax.xlane.f32.xlu0 %v1135_v7 }
 0xca2   :  { %v1138_v8 = vsel %vm213_vm7, %v1132_v5, -inf }
 0xca3   :  { %1139 = vmax.xlane.f32.xlu1 %v1138_v8 }
 0xca5   :  { %v1251_v9 = vpop.f32.mrb[32].mxu0 }
 0xca6   :  { %v1252_v10 = vadd.f32 %v1251_v9, %v5345_v28  ;;  %v4574_v11 = vpop.f32.mrb[33].mxu0 }
 0xca7   :  { %v1254_v12 = vpop.f32.mrb[34].mxu0 }
 0xca8   :  { %v1255_v14 = vadd.f32 %v1254_v12, %v5347_v30  ;;  %v4575_v15 = vpop.f32.mrb[35].mxu0  ;;  %v1258_v16 = vsel %vm213_vm7, %v1252_v10, -inf }
 0xca9   :  { %1259 = vmax.xlane.f32.xlu0 %v1258_v16 }
 0xcaa   :  { %v1261_v17 = vsel %vm213_vm7, %v1255_v14, -inf }
 0xcad   :  { %1262 = vmax.xlane.f32.xlu0 %v1261_v17  ;;  %v1382_v20 = vpop.f32.mrb[36].mxu0 }
 0xcae   :  { %v1383_v21 = vadd.f32 %v1382_v20, %v5345_v28  ;;  %v4586_v22 = vpop.f32.mrb[37].mxu0 }
 0xcaf   :  { %v1385_v23 = vpop.f32.mrb[38].mxu0 }
 0xcb0   :  { %v1386_v24 = vadd.f32 %v1385_v23, %v5347_v30  ;;  %v4587_v25 = vpop.f32.mrb[39].mxu0  ;;  %v1389_v18 = vsel %vm213_vm7, %v1383_v21, -inf }
 0xcb1   :  { %1390 = vmax.xlane.f32.xlu1 %v1389_v18 }
 0xcb2   :  { %v1392_v26 = vsel %vm213_vm7, %v1386_v24, -inf }
 0xcb3   :  { %1393 = vmax.xlane.f32.xlu0 %v1392_v26 }
 0xcb5   :  { %v1513_v19 = vpop.f32.mrb[40].mxu0 }
 0xcb6   :  { %v1514_v27 = vadd.f32 %v1513_v19, %v5345_v28  ;;  %v4598_v29 = vpop.f32.mrb[41].mxu0 }
 0xcb7   :  { %v1516_v31 = vpop.f32.mrb[42].mxu0 }
 0xcb8   :  { %v1517_v32 = vadd.f32 %v1516_v31, %v5347_v30  ;;  %v4599_v33 = vpop.f32.mrb[43].mxu0  ;;  %v1520_v34 = vsel %vm213_vm7, %v1514_v27, -inf }
 0xcb9   :  { %1521 = vmax.xlane.f32.xlu1 %v1520_v34 }
 0xcba   :  { %v1523_v35 = vsel %vm213_vm7, %v1517_v32, -inf }
 0xcbb   :  { %1524 = vmax.xlane.f32.xlu0 %v1523_v35 }
 0xcca   :  { %1158 = vrot.lane.b32.xlu1 %v5465_v53, %s5204_s1 }
 0xd2e   :  { %v1137_v36 = vpop.xlane.xlu0 %1136 }
 0xd2f   :  { %v1141_v37 = vsub.f32 %v1129_v4, %v1137_v36 }
 0xd30   :  { %v1140_v38 = vpop.xlane.xlu1 %1139 }
 0xd31   :  { %v1143_v39 = vmul.f32 1.442695, %v1141_v37  ;;  %v1142_v40 = vsub.f32 %v1132_v5, %v1140_v38 }
 0xd33   :  { %4966 = vpow2.f32 %v1143_v39  ;;  %v1145_v41 = vmul.f32 1.442695, %v1142_v40 }
 0xd35   :  { %4968 = vpow2.f32 %v1145_v41 }
 0xd36   :  { %v1260_v42 = vpop.xlane.xlu0 %1259 }
 0xd37   :  { %v1264_v45 = vsub.f32 %v1252_v10, %v1260_v42 }
 0xd39   :  { %v1266_v46 = vmul.f32 1.442695, %v1264_v45 }
 0xd3a   :  { %v1263_v47 = vpop.xlane.xlu0 %1262 }
 0xd3b   :  { %4970 = vpow2.f32 %v1266_v46  ;;  %v1265_v48 = vsub.f32 %v1255_v14, %v1263_v47 }
 0xd3d   :  { %v4967_v49 = vpop.eup %4966  ;;  %v1268_v50 = vmul.f32 1.442695, %v1265_v48 }
 0xd3e   :  { %v1391_v51 = vpop.xlane.xlu1 %1390  ;;  %v1147_v52 = vsel %vm213_vm7, %v4967_v49, 0.0 }
 0xd3f   :  { %v4969_v13 = vpop.eup %4968  ;;  %4972 = vpow2.f32 %v1268_v50  ;;  %v1395_v54 = vsub.f32 %v1383_v21, %v1391_v51  ;;  %1148 = vadd.xlane.f32.xlu1 %v1147_v52 }
 0xd40   :  { %v1394_v55 = vpop.xlane.xlu0 %1393  ;;  %v1150_v56 = vsel %vm213_vm7, %v4969_v13, 0.0 }
 0xd41   :  { %v1397_v57 = vmul.f32 1.442695, %v1395_v54  ;;  %v1396_v58 = vsub.f32 %v1386_v24, %v1394_v55  ;;  %1151 = vadd.xlane.f32.xlu0 %v1150_v56 }
 0xd43   :  { %4974 = vpow2.f32 %v1397_v57  ;;  %v1399_v59 = vmul.f32 1.442695, %v1396_v58 }
 0xd45   :  { %v4971_v60 = vpop.eup %4970  ;;  %4976 = vpow2.f32 %v1399_v59  ;;  %v4876_v59 = vld [vmem:[#allocation3 + $0x60] sm:$0xff]  }
 0xd46   :  { %v1522_v61 = vpop.xlane.xlu1 %1521  ;;  %v1270_v62 = vsel %vm213_vm7, %v4971_v60, 0.0  ;;  %4607 = vmatpush3.bf16.msra.mxu0 %v4876_v59  ;;  %v4882_v59 = vld [vmem:[#allocation3 + $0x90] sm:$0xff]  }
 0xd47   :  { %v1526_v3 = vsub.f32 %v1514_v27, %v1522_v61  ;;  %1271 = vadd.xlane.f32.xlu1 %v1270_v62  ;;  %v4877_v61 = vld [vmem:[#allocation3 + $0x68] sm:$0xff]   ;;  %4608 = vmatprep.subr.bf16.mxu0 %v5207_v0 }
 0xd48   :  { %v1525_v63 = vpop.xlane.xlu0 %1524 }
 0xd49   :  { %v4973_v4 = vpop.eup %4972  ;;  %v1528_v1 = vmul.f32 1.442695, %v1526_v3  ;;  %v1527_v2 = vsub.f32 %v1517_v32, %v1525_v63 }
 0xd4a   :  { %v1159_v5 = vpop.permute.xlu1 %1158  ;;  %v1273_v6 = vsel %vm213_vm7, %v4973_v4, 0.0  ;;  %4609 = vmatpush3.bf16.msra.mxu0 %v4877_v61  ;;  %v4884_v61 = vld [vmem:[#allocation3 + $0xa0] sm:$0xff]  }
 0xd4b   :  { %4978 = vpow2.f32 %v1528_v1  ;;  %v1530_v7 = vmul.f32 1.442695, %v1527_v2  ;;  %4565 = vmatpush3.bf16.msra.mxu1 %v1159_v5  ;;  %1274 = vadd.xlane.f32.xlu0 %v1273_v6 }
 0xd4c   :  { %4576 = vmatprep.subr.bf16.mxu1 %v5207_v0  ;;  %4622 = vmatprep.subr.bf16.mxu0 %v5207_v0 }
 0xd4d   :  { %v4975_v8 = vpop.eup %4974  ;;  %4980 = vpow2.f32 %v1530_v7 }
 0xd4e   :  { %v1401_v9 = vsel %vm213_vm7, %v4975_v8, 0.0 }
 0xd4f   :  { %v4977_v10 = vpop.eup %4976  ;;  %1402 = vadd.xlane.f32.xlu1 %v1401_v9 }
 0xd50   :  { %v1404_v11 = vsel %vm213_vm7, %v4977_v10, 0.0 }
 0xd51   :  { %1405 = vadd.xlane.f32.xlu0 %v1404_v11 }
 0xd55   :  { %v4979_v12 = vpop.eup %4978 }
 0xd56   :  { %v1532_v14 = vsel %vm213_vm7, %v4979_v12, 0.0 }
 0xd57   :  { %v4981_v15 = vpop.eup %4980  ;;  %1533 = vadd.xlane.f32.xlu1 %v1532_v14 }
 0xd58   :  { %v1535_v16 = vsel %vm213_vm7, %v4981_v15, 0.0 }
 0xd59   :  { %1536 = vadd.xlane.f32.xlu0 %v1535_v16  ;;  %v4229_v16 = vld [vmem:[#allocation5 + $0x9] ss:$0 sm:$0xff] }
 0xd68   :  { %1412 = vrot.lane.b32.xlu1 %v5465_v53, %s5218_s9 }
 0xd6c   :  { %1543 = vrot.lane.b32.xlu1 %v5465_v53, %s5219_s10 }
 0xd6f   :  { %1281 = vrot.lane.b32.xlu0 %v5465_v53, %s5217_s8 }
 0xdcc   :  { %v1149_v17 = vpop.xlane.xlu1 %1148 }
 0xdcd   :  { %4982 = vrcp.f32 %v1149_v17 }
 0xdce   :  { %v1152_v20 = vpop.xlane.xlu0 %1151 }
 0xdcf   :  { %4984 = vrcp.f32 %v1152_v20 }
 0xdd4   :  { %v1272_v18 = vpop.xlane.xlu1 %1271 }
 0xdd7   :  { %v4983_v21 = vpop.eup %4982 }
 0xdd8   :  { %v1275_v22 = vpop.xlane.xlu0 %1274  ;;  %v1155_v24 = vmul.f32 %v4983_v21, %v4967_v49 }
 0xdd9   :  { %v4985_v23 = vpop.eup %4984  ;;  %4986 = vrcp.f32 %v1275_v22 }
 0xdda   :  { %v1156_v25 = vmul.f32 %v4985_v23, %v4969_v13  ;;  %4988 = vrcp.f32 %v1272_v18 }
 0xddc   :  { %v1157_v26 = vpack.c.bf16 %v1156_v25, %v1155_v24  ;;  %v1403_v53 = vpop.xlane.xlu1 %1402 }
 0xdde   :  { %4567 = vmatmul.mubr.msk.bf16.vlgmr.msra.gmra.mrb[24].mxu1 %vm213_vm7, %v1157_v26  ;;  %v1406_v19 = vpop.xlane.xlu0 %1405 }
 0xddf   :  { %4578 = vmatprep.mubr.msk.bf16.mxu1 %vm5208_vm0, %v5207_v0  ;;  %4990 = vrcp.f32 %v1406_v19 }
 0xde0   :  { %4992 = vrcp.f32 %v1403_v53 }
 0xde3   :  { %v4987_v27 = vpop.eup %4986 }
 0xde4   :  { %v4989_v31 = vpop.eup %4988  ;;  %v1279_v32 = vmul.f32 %v4987_v27, %v4973_v4  ;;  %v1534_v33 = vpop.xlane.xlu1 %1533 }
 0xde5   :  { %v1278_v34 = vmul.f32 %v4989_v31, %v4971_v60 }
 0xde6   :  { %v1537_v29 = vpop.xlane.xlu0 %1536 }
 0xde7   :  { %4994 = vrcp.f32 %v1537_v29  ;;  %v1280_v36 = vpack.c.bf16 %v1279_v32, %v1278_v34 }
 0xde8   :  { %4996 = vrcp.f32 %v1534_v33  ;;  %v1413_v38 = vpop.permute.xlu1 %1412 }
 0xde9   :  { %v4991_v37 = vpop.eup %4990 }
 0xdea   :  { %v1282_v35 = vpop.permute.xlu0 %1281  ;;  %v4993_v39 = vpop.eup %4992  ;;  %v1410_v40 = vmul.f32 %v4991_v37, %v4977_v10  ;;  %v4878_v37 = vld [vmem:[#allocation3 + $0x70] sm:$0xff]  }
 0xdeb   :  { %4577 = vmatpush3.bf16.msra.mxu1 %v1282_v35  ;;  %v1409_v41 = vmul.f32 %v4993_v39, %v4975_v8 }
 0xdec   :  { %4588 = vmatprep.subr.bf16.mxu1 %v5207_v0  ;;  %v1544_v46 = vpop.permute.xlu1 %1543 }
 0xded   :  { %v1411_v42 = vpack.c.bf16 %v1410_v40, %v1409_v41 }
 0xdee   :  { %4579 = vmatmul.mubr.msk.bf16.vlgmr.msra.gmra.mrb[28].mxu1 %vm213_vm7, %v1280_v36 }
 0xdef   :  { %4589 = vmatpush3.bf16.msra.mxu1 %v1413_v38  ;;  %4590 = vmatprep.mubr.msk.bf16.mxu1 %vm5208_vm0, %v5207_v0 }
 0xdf0   :  { %4600 = vmatprep.subr.bf16.mxu1 %v5207_v0 }
 0xdf1   :  { %v4995_v45 = vpop.eup %4994 }
 0xdf2   :  { %v4997_v47 = vpop.eup %4996  ;;  %v1541_v48 = vmul.f32 %v4995_v45, %v4981_v15 }
 0xdf3   :  { %v1540_v49 = vmul.f32 %v4997_v47, %v4979_v12 }
 0xdf5   :  { %v1542_v50 = vpack.c.bf16 %v1541_v48, %v1540_v49  ;;  %v4233_v48 = vld [vmem:[#allocation5 + $0xc] ss:$0 sm:$0xff] }
 0xdf6   :  { %4591 = vmatmul.mubr.msk.bf16.vlgmr.msra.gmra.mrb[32].mxu1 %vm213_vm7, %v1411_v42 }
 0xdf7   :  { %4601 = vmatpush3.bf16.msra.mxu1 %v1544_v46  ;;  %4602 = vmatprep.mubr.msk.bf16.mxu1 %vm5208_vm0, %v5207_v0 }
 0xdf8   :  { %4614 = vmatprep.subr.bf16.mxu1 %v5207_v0 }
 0xdfe   :  { %4603 = vmatmul.mubr.msk.bf16.vlgmr.msra.gmra.mrb[36].mxu1 %vm213_vm7, %v1542_v50 }
 0xdff   :  { %4618 = vmatprep.mubr.msk.bf16.mxu1 %vm5208_vm0, %v5207_v0  ;;  %4615 = vmatpush3.bf16.msra.mxu1 %v4878_v37 }
 0xe00   :  { %4616 = vmatprep.subr.bf16.mxu1 %v5207_v0 }
 0xeb1   :  { %v1198_v51 = vpop.f32.mrb[24].mxu1 }
 0xeb2   :  { %1205 = vst.msk [vmem:[#allocation2] sm:$0xff] %vm165_vm2, %v1198_v51  ;;  %v4568_v52 = vpop.f32.mrb[25].mxu1 }
 0xeb3   :  { %v1201_v13 = vpop.f32.mrb[26].mxu1  ;;  %v4234_v52 = vld [vmem:[#allocation5 + $0xd] ss:$0 sm:$0xff] }
 0xeb4   :  { %1206 = vst.msk [vmem:[#allocation2 + $0x8] sm:$0xff] %vm165_vm2, %v1201_v13  ;;  %v4569_v54 = vpop.f32.mrb[27].mxu1 }
 0xec1   :  { %v1321_v55 = vpop.f32.mrb[28].mxu1 }
 0xec2   :  { %1330 = vrot.lane.b32.xlu0 %v1321_v55, %s5202_s26  ;;  %v4580_v56 = vpop.f32.mrb[29].mxu1 }
 0xec3   :  { %v1324_v57 = vpop.f32.mrb[30].mxu1 }
 0xec4   :  { %1332 = vrot.lane.b32.xlu1 %v1324_v57, %s5202_s26  ;;  %v4581_v58 = vpop.f32.mrb[31].mxu1  ;;  %v4880_v57 = vld [vmem:[#allocation3 + $0x80] sm:$0xff]  }
 0xec5   :  { %v4881_v58 = vld [vmem:[#allocation3 + $0x88] sm:$0xff]  }
 0xec9   :  { %v1452_v60 = vpop.f32.mrb[32].mxu1 }
 0xeca   :  { %1461 = vrot.lane.b32.xlu0 %v1452_v60, %s5220_s11  ;;  %v4592_v62 = vpop.f32.mrb[33].mxu1  ;;  %v4883_v60 = vld [vmem:[#allocation3 + $0x98] sm:$0xff]  }
 0xecb   :  { %v1455_v3 = vpop.f32.mrb[34].mxu1  ;;  %v4885_v62 = vld [vmem:[#allocation3 + $0xa8] sm:$0xff]  }
 0xecc   :  { %1463 = vrot.lane.b32.xlu1 %v1455_v3, %s5220_s11  ;;  %v4593_v63 = vpop.f32.mrb[35].mxu1  ;;  %v5594_v3 = vld [vmem:[%s5941_s3] sm:$0xff] }
 0xecd   :  { %v5599_v63 = vld [vmem:[%s5941_s3 + $0x8] sm:$0xff] }
 0xed1   :  { %v1583_v4 = vpop.f32.mrb[36].mxu1 }
 0xed2   :  { %1592 = vrot.lane.b32.xlu0 %v1583_v4, %s5221_s12  ;;  %v4604_v1 = vpop.f32.mrb[37].mxu1  ;;  %v1940_v4 = vpack.c.bf16 %v5599_v63, %v5594_v3 }
 0xed3   :  { %v1586_v2 = vpop.f32.mrb[38].mxu1  ;;  %v4235_v1 = vld [vmem:[#allocation5 + $0xa] ss:$0 sm:$0xff] }
 0xed4   :  { %1594 = vrot.lane.b32.xlu1 %v1586_v2, %s5221_s12  ;;  %v4605_v5 = vpop.f32.mrb[39].mxu1 }
 0xf34   :  { %v1331_v6 = vpop.permute.xlu0 %1330 }
 0xf35   :  { %1336 = vst.msk [vmem:[#allocation2] sm:$0xff] %vm415_vm8, %v1331_v6 }
 0xf36   :  { %v1333_v7 = vpop.permute.xlu1 %1332 }
 0xf37   :  { %1337 = vst.msk [vmem:[#allocation2 + $0x8] sm:$0xff] %vm415_vm8, %v1333_v7 }
 0xf3c   :  { %v1462_v8 = vpop.permute.xlu0 %1461 }
 0xf3d   :  { %1467 = vst.msk [vmem:[#allocation2] sm:$0xff] %vm547_vm9, %v1462_v8 }
 0xf3e   :  { %v1464_v9 = vpop.permute.xlu1 %1463 }
 0xf3f   :  { %1468 = vst.msk [vmem:[#allocation2 + $0x8] sm:$0xff] %vm547_vm9, %v1464_v9 }
 0xf44   :  { %v1593_v10 = vpop.permute.xlu0 %1592 }
 0xf45   :  { %1598 = vst.msk [vmem:[#allocation2] sm:$0xff] %vm679_vm10, %v1593_v10 }
 0xf46   :  { %v1595_v11 = vpop.permute.xlu1 %1594 }
 0xf47   :  { %1599 = vst.msk [vmem:[#allocation2 + $0x8] sm:$0xff] %vm679_vm10, %v1595_v11 }
 0xf4c   :  { %v1600_v12 = vld [vmem:[#allocation2] sm:$0xff] }
 0xf4e   :  { %v1601_v14 = vld [vmem:[#allocation2 + $0x8] sm:$0xff] }
 0xf4f   :  { %v1606_v15 = vpack.c.bf16 %v1601_v14, %v1600_v12 }
 0xf51   :  { %4611 = vmatmul.mubr.msk.bf16.vlgmr.msra.gmra.mrb[44].mxu0 %vm116_vm1, %v1606_v15 }
 0xf52   :  { %4630 = vmatprep.mubr.msk.bf16.mxu0 %vm5208_vm0, %v5207_v0  ;;  %4623 = vmatpush3.bf16.msra.mxu0 %v4880_v57 }
 0xf53   :  { %4624 = vmatprep.subr.bf16.mxu0 %v5207_v0 }
 0xf56   :  { %4625 = vmatpush3.bf16.msra.mxu0 %v4881_v58 }
 0xf57   :  { %4626 = vmatprep.subr.bf16.mxu0 %v5207_v0 }
 0xf5a   :  { %4627 = vmatpush3.bf16.msra.mxu0 %v4882_v59 }
 0xf5b   :  { %4628 = vmatprep.subr.bf16.mxu0 %v5207_v0 }
 0xf5e   :  { %4629 = vmatpush3.bf16.msra.mxu0 %v4883_v60 }
 0xf5f   :  { %4650 = vmatprep.subr.bf16.mxu0 %v5207_v0 }
0x1024   :  { %v1661_v17 = vpop.f32.mrb[44].mxu0 }
0x1025   :  { %v1662_v20 = vadd.f32 %v4229_v16, %v1661_v17  ;;  %v4612_v21 = vpop.f32.mrb[45].mxu0 }
0x1026   :  { %v1664_v22 = vpop.f32.mrb[46].mxu0 }
0x1027   :  { %v1665_v23 = vadd.f32 %v4229_v16, %v1664_v22  ;;  %v4613_v24 = vpop.f32.mrb[47].mxu0  ;;  %v1668_v25 = vadd.f32 %v1662_v20, %v5456_v43 }
0x1029   :  { %v1672_v18 = vsel %vm116_vm1, %v1668_v25, 0.0  ;;  %v1669_v26 = vadd.f32 %v1665_v23, %v5458_v44  ;;  %v4879_v44 = vld [vmem:[#allocation3 + $0x78] sm:$0xff]  }
0x102a   :  { %1673 = vadd.xlane.f32.xlu0 %v1672_v18  ;;  %4617 = vmatpush3.bf16.msra.mxu1 %v4879_v44 }
0x102b   :  { %v1675_v19 = vsel %vm116_vm1, %v1669_v26, 0.0  ;;  %4634 = vmatprep.subr.bf16.mxu1 %v5207_v0 }
0x102c   :  { %1676 = vadd.xlane.f32.xlu1 %v1675_v19 }
0x10b7   :  { %v1674_v53 = vpop.xlane.xlu0 %1673 }
0x10b8   :  { %v1678_v27 = vmul.f32 0.03125, %v1674_v53 }
0x10b9   :  { %v1677_v29 = vpop.xlane.xlu1 %1676 }
0x10ba   :  { %v1680_v31 = vsub.f32 %v1668_v25, %v1678_v27  ;;  %v1679_v32 = vmul.f32 0.03125, %v1677_v29 }
0x10bc   :  { %v1681_v33 = vsub.f32 %v1669_v26, %v1679_v32  ;;  %v1682_v34 = vmul.f32 %v1680_v31, %v1680_v31 }
0x10be   :  { %v1684_v35 = vsel %vm116_vm1, %v1682_v34, 0.0  ;;  %v1683_v36 = vmul.f32 %v1681_v33, %v1681_v33 }
0x10bf   :  { %1685 = vadd.xlane.f32.xlu0 %v1684_v35 }
0x10c0   :  { %v1687_v43 = vsel %vm116_vm1, %v1683_v36, 0.0 }
0x10c3   :  { %1688 = vadd.xlane.f32.xlu0 %v1687_v43 }
0x114c   :  { %v1686_v38 = vpop.xlane.xlu0 %1685 }
0x114d   :  { %v1690_v39 = vmul.f32 0.03125, %v1686_v38 }
0x114f   :  { %v1692_v40 = vadd.f32 1e-05, %v1690_v39 }
0x1150   :  { %v1689_v41 = vpop.xlane.xlu0 %1688 }
0x1151   :  { %4998 = vrsqrt.f32 %v1692_v40  ;;  %v1691_v42 = vmul.f32 0.03125, %v1689_v41 }
0x1153   :  { %v1693_v45 = vadd.f32 1e-05, %v1691_v42 }
0x1155   :  { %5000 = vrsqrt.f32 %v1693_v45 }
0x115b   :  { %v4999_v46 = vpop.eup %4998 }
0x115c   :  { %v1696_v47 = vmul.f32 %v4999_v46, %v1680_v31 }
0x115e   :  { %v1702_v50 = vmul.f32 %v4233_v48, %v1696_v47 }
0x115f   :  { %v5001_v49 = vpop.eup %5000 }
0x1160   :  { %v1697_v51 = vmul.f32 %v5001_v49, %v1681_v33  ;;  %v5577_v54 = vadd.f32 %v4234_v52, %v1702_v50  ;;  %v4247_v49 = vld [vmem:[#allocation5 + $0x10] ss:$0 sm:$0xff]  ;;  %v4239_v50 = vld [vmem:[#allocation5 + $0xb] ss:$0 sm:$0xff] }
0x1162   :  { %v1703_v13 = vmul.f32 %v4233_v48, %v1697_v51 }
0x1164   :  { %v5579_v55 = vadd.f32 %v4234_v52, %v1703_v13 }
0x1166   :  { %v1714_v56 = vpack.c.bf16 %v5579_v55, %v5577_v54 }
0x1168   :  { %4619 = vmatmul.mubr.msk.bf16.vlgmr.msra.gmra.mrb[40].mxu1 %vm116_vm1, %v1714_v56 }
0x1169   :  { %4638 = vmatprep.mubr.msk.bf16.mxu1 %vm5208_vm0, %v5207_v0  ;;  %4635 = vmatpush3.bf16.msra.mxu1 %v4884_v61 }
0x116a   :  { %4636 = vmatprep.subr.bf16.mxu1 %v5207_v0 }
0x116d   :  { %4637 = vmatpush3.bf16.msra.mxu1 %v4885_v62 }
0x116e   :  { %4642 = vmatprep.subr.bf16.mxu1 %v5207_v0 }
0x1170   :  { %4639 = vmatmul.mubr.msk.bf16.vlgmr.msra.gmra.mrb[44].mxu1 %vm116_vm1, %v1940_v4 }
0x1171   :  { %4646 = vmatprep.mubr.msk.bf16.mxu1 %vm5208_vm0, %v5207_v0 }
0x123b   :  { %v1769_v2 = vpop.f32.mrb[40].mxu1 }
0x123c   :  { %v1770_v5 = vadd.f32 %v4235_v1, %v1769_v2  ;;  %v4620_v6 = vpop.f32.mrb[41].mxu1 }
0x123d   :  { %v1772_v7 = vpop.f32.mrb[42].mxu1 }
0x123e   :  { %v1778_v8 = vand.u32 2147483647, %v1770_v5  ;;  %v1773_v9 = vadd.f32 %v4235_v1, %v1772_v7  ;;  %v4621_v10 = vpop.f32.mrb[43].mxu1  ;;  %v1776_v32 = vmax.f32 %v1770_v5, 0.0 }
0x1240   :  { %v1780_v11 = vsub.f32 0.0, %v1778_v8  ;;  %v1779_v12 = vand.u32 2147483647, %v1773_v9  ;;  %v1777_v43 = vmax.f32 %v1773_v9, 0.0 }
0x1242   :  { %v1782_v14 = vmul.f32 1.442695, %v1780_v11  ;;  %v1781_v15 = vsub.f32 0.0, %v1779_v12 }
0x1243   :  { %v1995_v45 = vpop.f32.mrb[44].mxu1 }
0x1244   :  { %5002 = vpow2.f32 %v1782_v14  ;;  %v1784_v16 = vmul.f32 1.442695, %v1781_v15  ;;  %v4640_v46 = vpop.f32.mrb[45].mxu1  ;;  %v1996_v51 = vadd.f32 %v4247_v49, %v1995_v45 }
0x1245   :  { %v1998_v47 = vpop.f32.mrb[46].mxu1 }
0x1246   :  { %5004 = vpow2.f32 %v1784_v16  ;;  %v4641_v48 = vpop.f32.mrb[47].mxu1  ;;  %v1999_v57 = vadd.f32 %v4247_v49, %v1998_v47  ;;  %v2002_v62 = vadd.f32 %v1996_v51, %v5594_v3  ;;  %v4251_v49 = vld [vmem:[#allocation5 + $0x16] ss:$0 sm:$0xff] }
0x1248   :  { %v2003_v2 = vadd.f32 %v1999_v57, %v5599_v63  ;;  %v2006_v6 = vsel %vm116_vm1, %v2002_v62, 0.0 }
0x124a   :  { %v2009_v7 = vsel %vm116_vm1, %v2003_v2, 0.0 }
0x124e   :  { %v5003_v17 = vpop.eup %5002 }
0x124f   :  { %v1786_v20 = vadd.f32 1.0, %v5003_v17  ;;  %v1789_v23 = vmul.f32 -0.5, %v5003_v17  ;;  %v1792_v18 = vand.u32 2147483647, %v5003_v17 }
0x1250   :  { %v5005_v21 = vpop.eup %5004 }
0x1251   :  { %5006 = vlog2.f32 %v1786_v20  ;;  %v1795_v22 = vadd.f32 1.0, %v5005_v21  ;;  %v1798_v24 = vmul.f32 -0.5, %v5005_v21  ;;  %v1790_v25 = vadd.f32 1.0, %v1789_v23 }
0x1252   :  { %v1801_v53 = vand.u32 2147483647, %v5005_v21  ;;  %vm1793_vm14 = vcmp.lt.f32.partialorder %v1792_v18, 0.0004427343 }
0x1253   :  { %5008 = vlog2.f32 %v1795_v22  ;;  %v1799_v26 = vadd.f32 1.0, %v1798_v24  ;;  %v1791_v29 = vmul.f32 %v5003_v17, %v1790_v25 }
0x1254   :  { %vm1802_vm15 = vcmp.lt.f32.partialorder %v1801_v53, 0.0004427343  ;;  %v4888_v53 = vld [vmem:[#allocation3 + $0xc8] sm:$0xff]  }
0x1255   :  { %v1800_v35 = vmul.f32 %v5005_v21, %v1799_v26  ;;  %v4886_v26 = vld [vmem:[#allocation3 + $0xc0] sm:$0xff]  }
0x125b   :  { %v5007_v19 = vpop.eup %5006 }
0x125c   :  { %v1788_v27 = vmul.f32 0.6931472, %v5007_v19  ;;  %v4887_v19 = vld [vmem:[#allocation3 + $0xb0] sm:$0xff]  }
0x125d   :  { %v5009_v31 = vpop.eup %5008  ;;  %4643 = vmatpush3.bf16.msra.mxu1 %v4887_v19 }
0x125e   :  { %v1794_v33 = vsel %vm1793_vm14, %v1791_v29, %v1788_v27  ;;  %v1797_v34 = vmul.f32 0.6931472, %v5009_v31  ;;  %4644 = vmatprep.subr.bf16.mxu1 %v5207_v0  ;;  %v4889_v27 = vld [vmem:[#allocation3 + $0xb8] sm:$0xff]  }
0x125f   :  { %v1804_v36 = vadd.f32 %v1794_v33, %v1776_v32 }
0x1260   :  { %v1803_v37 = vsel %vm1802_vm15, %v1800_v35, %v1797_v34 }
0x1261   :  { %5010 = vtanh.f32 %v1804_v36  ;;  %v1805_v44 = vadd.f32 %v1803_v37, %v1777_v43  ;;  %4645 = vmatpush3.bf16.msra.mxu1 %v4889_v27 }
0x1262   :  { %4658 = vmatprep.subr.bf16.mxu1 %v5207_v0 }
0x1263   :  { %5012 = vtanh.f32 %v1805_v44 }
0x126b   :  { %v5011_v38 = vpop.eup %5010 }
0x126c   :  { %v1808_v40 = vmul.f32 %v5011_v38, %v1770_v5 }
0x126d   :  { %v5013_v39 = vpop.eup %5012 }
0x126e   :  { %v1809_v41 = vmul.f32 %v5013_v39, %v1773_v9 }
0x1270   :  { %v1818_v42 = vpack.c.bf16 %v1809_v41, %v1808_v40  ;;  %v4245_v41 = vld [vmem:[#allocation5 + $0xe] ss:$0 sm:$0xff] }
0x1272   :  { %4631 = vmatmul.mubr.msk.bf16.vlgmr.msra.gmra.mrb[48].mxu0 %vm931_vm13, %v1818_v42 }
0x1273   :  { %4654 = vmatprep.mubr.msk.bf16.mxu0 %vm5208_vm0, %v5207_v0  ;;  %4651 = vmatpush3.bf16.msra.mxu0 %v4886_v26 }
0x1274   :  { %4652 = vmatprep.subr.bf16.mxu0 %v5207_v0 }
0x1277   :  { %4653 = vmatpush3.bf16.msra.mxu0 %v4888_v53 }
0x1278   :  { %4664 = vmatprep.subr.bf16.mxu0 %v5207_v0 }
0x1345   :  { %v1885_v52 = vpop.f32.mrb[48].mxu0 }
0x1346   :  { %v1886_v13 = vadd.f32 %v4239_v50, %v1885_v52  ;;  %v4632_v56 = vpop.f32.mrb[49].mxu0 }
0x1347   :  { %v1888_v58 = vpop.f32.mrb[50].mxu0 }
0x1348   :  { %v1889_v59 = vadd.f32 %v4239_v50, %v1888_v58  ;;  %v4633_v60 = vpop.f32.mrb[51].mxu0  ;;  %v1892_v61 = vadd.f32 %v1886_v13, %v5577_v54  ;;  %v4246_v50 = vld [vmem:[#allocation5 + $0xf] ss:$0 sm:$0xff] }
0x1349   :  { %v4252_v60 = vld [vmem:[#allocation5 + $0x17] ss:$0 sm:$0xff] }
0x134a   :  { %v1896_v4 = vsel %vm116_vm1, %v1892_v61, 0.0  ;;  %v1893_v1 = vadd.f32 %v1889_v59, %v5579_v55 }
0x134b   :  { %1897 = vadd.xlane.f32.xlu1 %v1896_v4 }
0x134c   :  { %v1899_v5 = vsel %vm116_vm1, %v1893_v1, 0.0 }
0x134d   :  { %1900 = vadd.xlane.f32.xlu0 %v1899_v5  ;;  %v4257_v5 = vld [vmem:[#allocation5 + $0x12] ss:$0 sm:$0xff] }
0x134f   :  { %2007 = vadd.xlane.f32.xlu1 %v2006_v6 }
0x1351   :  { %2010 = vadd.xlane.f32.xlu0 %v2009_v7 }
0x13d8   :  { %v1898_v8 = vpop.xlane.xlu1 %1897 }
0x13d9   :  { %v1902_v54 = vmul.f32 0.03125, %v1898_v8 }
0x13da   :  { %v1901_v9 = vpop.xlane.xlu0 %1900 }
0x13db   :  { %v1904_v3 = vsub.f32 %v1892_v61, %v1902_v54  ;;  %v1903_v10 = vmul.f32 0.03125, %v1901_v9 }
0x13dc   :  { %v2008_v11 = vpop.xlane.xlu1 %2007 }
0x13dd   :  { %v1905_v12 = vsub.f32 %v1893_v1, %v1903_v10  ;;  %v2012_v55 = vmul.f32 0.03125, %v2008_v11  ;;  %v1906_v14 = vmul.f32 %v1904_v3, %v1904_v3  ;;  %v4253_v10 = vld [vmem:[#allocation5 + $0x11] ss:$0 sm:$0xff] }
0x13de   :  { %v2011_v63 = vpop.xlane.xlu0 %2010 }
0x13df   :  { %v2014_v15 = vsub.f32 %v2002_v62, %v2012_v55  ;;  %v2013_v16 = vmul.f32 0.03125, %v2011_v63  ;;  %v1908_v17 = vsel %vm116_vm1, %v1906_v14, 0.0  ;;  %v1907_v20 = vmul.f32 %v1905_v12, %v1905_v12 }
0x13e0   :  { %1909 = vadd.xlane.f32.xlu1 %v1908_v17 }
0x13e1   :  { %v2015_v21 = vsub.f32 %v2003_v2, %v2013_v16  ;;  %v1911_v22 = vsel %vm116_vm1, %v1907_v20, 0.0  ;;  %v2016_v23 = vmul.f32 %v2014_v15, %v2014_v15 }
0x13e2   :  { %1912 = vadd.xlane.f32.xlu0 %v1911_v22 }
0x13e3   :  { %v2018_v24 = vsel %vm116_vm1, %v2016_v23, 0.0  ;;  %v2017_v25 = vmul.f32 %v2015_v21, %v2015_v21 }
0x13e4   :  { %2019 = vadd.xlane.f32.xlu1 %v2018_v24 }
0x13e5   :  { %v2021_v18 = vsel %vm116_vm1, %v2017_v25, 0.0 }
0x13e6   :  { %2022 = vadd.xlane.f32.xlu0 %v2021_v18 }
0x146d   :  { %v1910_v29 = vpop.xlane.xlu1 %1909 }
0x146e   :  { %v1914_v31 = vmul.f32 0.03125, %v1910_v29 }
0x146f   :  { %v1913_v32 = vpop.xlane.xlu0 %1912 }
0x1470   :  { %v1916_v33 = vadd.f32 1e-05, %v1914_v31  ;;  %v1915_v34 = vmul.f32 0.03125, %v1913_v32 }
0x1471   :  { %v2020_v35 = vpop.xlane.xlu1 %2019 }
0x1472   :  { %5014 = vrsqrt.f32 %v1916_v33  ;;  %v1917_v36 = vadd.f32 1e-05, %v1915_v34  ;;  %v2024_v43 = vmul.f32 0.03125, %v2020_v35 }
0x1473   :  { %v2023_v37 = vpop.xlane.xlu0 %2022 }
0x1474   :  { %5016 = vrsqrt.f32 %v1917_v36  ;;  %v2026_v44 = vadd.f32 1e-05, %v2024_v43  ;;  %v2025_v38 = vmul.f32 0.03125, %v2023_v37 }
0x1476   :  { %5018 = vrsqrt.f32 %v2026_v44  ;;  %v2027_v39 = vadd.f32 1e-05, %v2025_v38 }
0x1478   :  { %5020 = vrsqrt.f32 %v2027_v39 }
0x147c   :  { %v5015_v40 = vpop.eup %5014 }
0x147d   :  { %v1920_v42 = vmul.f32 %v5015_v40, %v1904_v3 }
0x147e   :  { %v5017_v45 = vpop.eup %5016 }
0x147f   :  { %v1926_v46 = vmul.f32 %v4245_v41, %v1920_v42  ;;  %v1921_v47 = vmul.f32 %v5017_v45, %v1905_v12 }
0x1480   :  { %v5019_v48 = vpop.eup %5018 }
0x1481   :  { %v1927_v51 = vmul.f32 %v4245_v41, %v1921_v47  ;;  %v2030_v52 = vmul.f32 %v5019_v48, %v2014_v15  ;;  %v1932_v58 = vadd.f32 %v4246_v50, %v1926_v46 }
0x1482   :  { %v5021_v13 = vpop.eup %5020 }
0x1483   :  { %v2036_v56 = vmul.f32 %v4251_v49, %v2030_v52  ;;  %v2031_v57 = vmul.f32 %v5021_v13, %v2015_v21  ;;  %v1933_v59 = vadd.f32 %v4246_v50, %v1927_v51 }
0x1485   :  { %v2037_v61 = vmul.f32 %v4251_v49, %v2031_v57  ;;  %v5626_v62 = vpack.c.bf16 %v1933_v59, %v1932_v58  ;;  %v5630_v4 = vadd.f32 %v4252_v60, %v2036_v56 }
0x1487   :  { %4655 = vmatmul.mubr.msk.bf16.vlgmr.msra.gmra.mrb[52].mxu0 %vm116_vm1, %v5626_v62  ;;  %v5632_v1 = vadd.f32 %v4252_v60, %v2037_v61 }
0x1488   :  { %4666 = vmatprep.mubr.msk.bf16.mxu0 %vm5208_vm0, %v5207_v0 }
0x1489   :  { %v2048_v2 = vpack.c.bf16 %v5632_v1, %v5630_v4 }
0x148b   :  { %4647 = vmatmul.mubr.msk.bf16.vlgmr.msra.gmra.mrb[48].mxu1 %vm116_vm1, %v2048_v2 }
0x148c   :  { %4660 = vmatprep.mubr.msk.bf16.mxu1 %vm5208_vm0, %v5207_v0 }
0x155a   :  { %v2169_v6 = vpop.f32.mrb[52].mxu0 }
0x155b   :  { %v4656_v7 = vpop.f32.mrb[53].mxu0  ;;  %v2170_v54 = vadd.f32 %v4257_v5, %v2169_v6 }
0x155c   :  { %v2172_v8 = vpop.f32.mrb[54].mxu0 }
0x155d   :  { %v2173_v9 = vadd.f32 %v4257_v5, %v2172_v8  ;;  %v4657_v3 = vpop.f32.mrb[55].mxu0 }
0x155e   :  { %v2103_v11 = vpop.f32.mrb[48].mxu1 }
0x155f   :  { %v5641_v12 = vpack.c.bf16 %v2173_v9, %v2170_v54  ;;  %v4648_v55 = vpop.f32.mrb[49].mxu1  ;;  %v2104_v63 = vadd.f32 %v4253_v10, %v2103_v11 }
0x1560   :  { %v2106_v14 = vpop.f32.mrb[50].mxu1 }
0x1561   :  { %v2107_v15 = vadd.f32 %v4253_v10, %v2106_v14  ;;  %v4649_v16 = vpop.f32.mrb[51].mxu1  ;;  %2301 = vrot.lane.b32.xlu1 %v5641_v12, %s5209_s2  ;;  %v2182_v17 = vsel %vm165_vm2, %v5641_v12, 0 }
0x1562   :  { %4659 = vmatpush3.bf16.xpose.msra.mxu1 %v2182_v17 }
0x1563   :  { %v2176_v20 = vpack.c.bf16 %v2107_v15, %v2104_v63  ;;  %4670 = vmatprep.subr.bf16.mxu1 %v5207_v0 }
0x1565   :  { %2299 = vrot.lane.b32.xlu0 %v2176_v20, %s5209_s2  ;;  %2432 = vrot.lane.b32.xlu1 %v5641_v12, %s5214_s6 }
0x1569   :  { %2563 = vrot.lane.b32.xlu0 %v5641_v12, %s5215_s7  ;;  %2430 = vrot.lane.b32.xlu1 %v2176_v20, %s5214_s6 }
0x156a   :  { %4661 = vmatmul.mubr.msk.bf16.vlgmr.msra.gmra.mrb[52].mxu1 %vm165_vm2, %v2176_v20 }
0x156b   :  { %4672 = vmatprep.mubr.msk.bf16.mxu1 %vm5208_vm0, %v5207_v0 }
0x156d   :  { %2561 = vrot.lane.b32.xlu1 %v2176_v20, %s5215_s7 }
0x15d3   :  { %v2302_v21 = vpop.permute.xlu1 %2301 }
0x15d4   :  { %v2307_v22 = vsel %vm165_vm2, %v2302_v21, 0 }
0x15d5   :  { %4671 = vmatpush3.bf16.xpose.msra.mxu1 %v2307_v22 }
0x15d6   :  { %4682 = vmatprep.subr.bf16.mxu1 %v5207_v0 }
0x15d7   :  { %v2433_v23 = vpop.permute.xlu1 %2432  ;;  %v2300_v24 = vpop.permute.xlu0 %2299 }
0x15d8   :  { %v2438_v25 = vsel %vm165_vm2, %v2433_v23, 0 }
0x15db   :  { %v2564_v18 = vpop.permute.xlu0 %2563  ;;  %v2431_v26 = vpop.permute.xlu1 %2430 }
0x15dc   :  { %4673 = vmatmul.mubr.msk.bf16.vlgmr.msra.gmra.mrb[56].mxu1 %vm165_vm2, %v2300_v24  ;;  %v2569_v19 = vsel %vm165_vm2, %v2564_v18, 0 }
0x15dd   :  { %4683 = vmatpush3.bf16.xpose.msra.mxu1 %v2438_v25  ;;  %4684 = vmatprep.mubr.msk.bf16.mxu1 %vm5208_vm0, %v5207_v0 }
0x15de   :  { %4694 = vmatprep.subr.bf16.mxu1 %v5207_v0 }
0x15df   :  { %v2562_v53 = vpop.permute.xlu1 %2561 }
0x15e4   :  { %4685 = vmatmul.mubr.msk.bf16.vlgmr.msra.gmra.mrb[60].mxu1 %vm165_vm2, %v2431_v26 }
0x15e5   :  { %4695 = vmatpush3.bf16.xpose.msra.mxu1 %v2569_v19  ;;  %4696 = vmatprep.mubr.msk.bf16.mxu1 %vm5208_vm0, %v5207_v0 }
0x15e6   :  { %4706 = vmatprep.subr.bf16.mxu1 %v5207_v0 }
0x15ec   :  { %4697 = vmatmul.mubr.msk.bf16.vlgmr.msra.gmra.mrb[64].mxu1 %vm165_vm2, %v2562_v53 }
0x15ed   :  { %4710 = vmatprep.mubr.msk.bf16.mxu1 %vm5208_vm0, %v5207_v0 }
0x163d   :  { %v2218_v27 = vpop.f32.mrb[52].mxu1 }
0x163e   :  { %v2219_v29 = vadd.f32 %v2218_v27, %v5345_v28  ;;  %v4662_v31 = vpop.f32.mrb[53].mxu1 }
0x163f   :  { %v2221_v32 = vpop.f32.mrb[54].mxu1 }
0x1640   :  { %v2222_v33 = vadd.f32 %v2221_v32, %v5347_v30  ;;  %v4663_v34 = vpop.f32.mrb[55].mxu1  ;;  %v2225_v35 = vsel %vm213_vm7, %v2219_v29, -inf }
0x1641   :  { %2226 = vmax.xlane.f32.xlu0 %v2225_v35 }
0x1642   :  { %v2228_v36 = vsel %vm213_vm7, %v2222_v33, -inf }
0x1643   :  { %2229 = vmax.xlane.f32.xlu1 %v2228_v36 }
0x16af   :  { %v2343_v43 = vpop.f32.mrb[56].mxu1 }
0x16b0   :  { %v2344_v37 = vadd.f32 %v2343_v43, %v5345_v28  ;;  %v4674_v44 = vpop.f32.mrb[57].mxu1 }
0x16b1   :  { %v2346_v38 = vpop.f32.mrb[58].mxu1 }
0x16b2   :  { %v2347_v39 = vadd.f32 %v2346_v38, %v5347_v30  ;;  %v4675_v40 = vpop.f32.mrb[59].mxu1  ;;  %v2350_v41 = vsel %vm213_vm7, %v2344_v37, -inf }
0x16b3   :  { %2351 = vmax.xlane.f32.xlu0 %v2350_v41 }
0x16b4   :  { %v2353_v42 = vsel %vm213_vm7, %v2347_v39, -inf }
0x16b7   :  { %2354 = vmax.xlane.f32.xlu0 %v2353_v42  ;;  %v2474_v45 = vpop.f32.mrb[60].mxu1 }
0x16b8   :  { %v2475_v46 = vadd.f32 %v2474_v45, %v5345_v28  ;;  %v4686_v47 = vpop.f32.mrb[61].mxu1 }
0x16b9   :  { %v2477_v48 = vpop.f32.mrb[62].mxu1 }
0x16ba   :  { %v2478_v49 = vadd.f32 %v2477_v48, %v5347_v30  ;;  %v4687_v50 = vpop.f32.mrb[63].mxu1  ;;  %v2481_v51 = vsel %vm213_vm7, %v2475_v46, -inf }
0x16bb   :  { %2482 = vmax.xlane.f32.xlu1 %v2481_v51 }
0x16bc   :  { %v2484_v52 = vsel %vm213_vm7, %v2478_v49, -inf }
0x16bd   :  { %2485 = vmax.xlane.f32.xlu0 %v2484_v52 }
0x16bf   :  { %v2605_v13 = vpop.f32.mrb[64].mxu1 }
0x16c0   :  { %v2606_v56 = vadd.f32 %v2605_v13, %v5345_v28  ;;  %v4698_v57 = vpop.f32.mrb[65].mxu1 }
0x16c1   :  { %v2608_v58 = vpop.f32.mrb[66].mxu1 }
0x16c2   :  { %v2609_v59 = vadd.f32 %v2608_v58, %v5347_v30  ;;  %v4699_v60 = vpop.f32.mrb[67].mxu1  ;;  %v2612_v61 = vsel %vm213_vm7, %v2606_v56, -inf }
0x16c3   :  { %2613 = vmax.xlane.f32.xlu1 %v2612_v61 }
0x16c4   :  { %v2615_v2 = vsel %vm213_vm7, %v2609_v59, -inf }
0x16c5   :  { %2616 = vmax.xlane.f32.xlu0 %v2615_v2 }
0x16ce   :  { %v2227_v54 = vpop.xlane.xlu0 %2226 }
0x16cf   :  { %v2231_v3 = vsub.f32 %v2219_v29, %v2227_v54 }
0x16d0   :  { %v2230_v5 = vpop.xlane.xlu1 %2229 }
0x16d1   :  { %v2232_v6 = vsub.f32 %v2222_v33, %v2230_v5  ;;  %v2233_v10 = vmul.f32 1.442695, %v2231_v3 }
0x16d3   :  { %v2235_v7 = vmul.f32 1.442695, %v2232_v6 }
0x16d4   :  { %2249 = vrot.lane.b32.xlu1 %v5641_v12, %s5210_s25 }
0x16d5   :  { %5022 = vpow2.f32 %v2235_v7 }
0x16d6   :  { %5024 = vpow2.f32 %v2233_v10 }
0x16df   :  { %v5691_v8 = vpop.eup %5022 }
0x16e0   :  { %v2240_v9 = vsel %vm213_vm7, %v5691_v8, 0.0  ;;  %v5025_v11 = vpop.eup %5024 }
0x16e1   :  { %2241 = vadd.xlane.f32.xlu0 %v2240_v9  ;;  %v2237_v55 = vsel %vm213_vm7, %v5025_v11, 0.0 }
0x16f8   :  { %2238 = vadd.xlane.f32.xlu1 %v2237_v55 }
0x1740   :  { %v2352_v14 = vpop.xlane.xlu0 %2351 }
0x1741   :  { %v2356_v63 = vsub.f32 %v2344_v37, %v2352_v14 }
0x1743   :  { %v2358_v15 = vmul.f32 1.442695, %v2356_v63 }
0x1744   :  { %v2355_v16 = vpop.xlane.xlu0 %2354 }
0x1745   :  { %5026 = vpow2.f32 %v2358_v15  ;;  %v2357_v17 = vsub.f32 %v2347_v39, %v2355_v16 }
0x1747   :  { %v2360_v20 = vmul.f32 1.442695, %v2357_v17 }
0x1748   :  { %v2483_v21 = vpop.xlane.xlu1 %2482 }
0x1749   :  { %5028 = vpow2.f32 %v2360_v20  ;;  %v2487_v22 = vsub.f32 %v2475_v46, %v2483_v21 }
0x174a   :  { %v2486_v23 = vpop.xlane.xlu0 %2485 }
0x174b   :  { %v2489_v24 = vmul.f32 1.442695, %v2487_v22  ;;  %v2488_v25 = vsub.f32 %v2478_v49, %v2486_v23 }
0x174d   :  { %5030 = vpow2.f32 %v2489_v24  ;;  %v2491_v18 = vmul.f32 1.442695, %v2488_v25 }
0x174f   :  { %v5027_v26 = vpop.eup %5026  ;;  %5032 = vpow2.f32 %v2491_v18 }
0x1750   :  { %v2614_v19 = vpop.xlane.xlu1 %2613  ;;  %v2362_v53 = vsel %vm213_vm7, %v5027_v26, 0.0 }
0x1751   :  { %v2618_v27 = vsub.f32 %v2606_v56, %v2614_v19  ;;  %2363 = vadd.xlane.f32.xlu1 %v2362_v53  ;;  %v4891_v53 = vld [vmem:[#allocation3 + $0xd8] sm:$0xff]  }
0x1752   :  { %v2617_v29 = vpop.xlane.xlu0 %2616 }
0x1753   :  { %v5029_v31 = vpop.eup %5028  ;;  %v2620_v32 = vmul.f32 1.442695, %v2618_v27  ;;  %v2619_v33 = vsub.f32 %v2609_v59, %v2617_v29 }
0x1754   :  { %v2250_v34 = vpop.permute.xlu1 %2249  ;;  %v2365_v35 = vsel %vm213_vm7, %v5029_v31, 0.0 }
0x1755   :  { %5034 = vpow2.f32 %v2620_v32  ;;  %v2622_v36 = vmul.f32 1.442695, %v2619_v33  ;;  %4665 = vmatpush3.bf16.msra.mxu0 %v2250_v34  ;;  %2366 = vadd.xlane.f32.xlu0 %v2365_v35 }
0x1756   :  { %4676 = vmatprep.subr.bf16.mxu0 %v5207_v0 }
0x1757   :  { %v5031_v43 = vpop.eup %5030  ;;  %5036 = vpow2.f32 %v2622_v36 }
0x1758   :  { %v2493_v37 = vsel %vm213_vm7, %v5031_v43, 0.0 }
0x1759   :  { %v5033_v44 = vpop.eup %5032  ;;  %2494 = vadd.xlane.f32.xlu1 %v2493_v37 }
0x175a   :  { %v2496_v38 = vsel %vm213_vm7, %v5033_v44, 0.0 }
0x175b   :  { %2497 = vadd.xlane.f32.xlu0 %v2496_v38 }
0x175f   :  { %v5035_v39 = vpop.eup %5034 }
0x1760   :  { %v2624_v40 = vsel %vm213_vm7, %v5035_v39, 0.0 }
0x1761   :  { %v5037_v41 = vpop.eup %5036  ;;  %2625 = vadd.xlane.f32.xlu1 %v2624_v40 }
0x1762   :  { %v2627_v42 = vsel %vm213_vm7, %v5037_v41, 0.0 }
0x1763   :  { %2628 = vadd.xlane.f32.xlu0 %v2627_v42 }
0x176e   :  { %v2242_v45 = vpop.xlane.xlu0 %2241 }
0x176f   :  { %5038 = vrcp.f32 %v2242_v45  ;;  %v4269_v45 = vld [vmem:[#allocation5 + $0x13] ss:$0 sm:$0xff] }
0x1772   :  { %2504 = vrot.lane.b32.xlu1 %v5641_v12, %s5211_s29 }
0x1776   :  { %2635 = vrot.lane.b32.xlu1 %v5641_v12, %s5213_s5 }
0x1779   :  { %2373 = vrot.lane.b32.xlu0 %v5641_v12, %s5212_s30  ;;  %v5039_v47 = vpop.eup %5038 }
0x177a   :  { %v2246_v49 = vmul.f32 %v5039_v47, %v5691_v8 }
0x1785   :  { %v2239_v46 = vpop.xlane.xlu1 %2238 }
0x1786   :  { %5040 = vrcp.f32 %v2239_v46 }
0x1790   :  { %v5041_v48 = vpop.eup %5040 }
0x1791   :  { %v2245_v50 = vmul.f32 %v5041_v48, %v5025_v11 }
0x1793   :  { %v2247_v51 = vpack.c.bf16 %v2246_v49, %v2245_v50 }
0x1795   :  { %4667 = vmatmul.mubr.msk.bf16.vlgmr.msra.gmra.mrb[56].mxu0 %vm213_vm7, %v2247_v51 }
0x1796   :  { %4678 = vmatprep.mubr.msk.bf16.mxu0 %vm5208_vm0, %v5207_v0 }
0x17de   :  { %v2364_v13 = vpop.xlane.xlu1 %2363 }
0x17e2   :  { %v2367_v52 = vpop.xlane.xlu0 %2366 }
0x17e3   :  { %5042 = vrcp.f32 %v2367_v52 }
0x17e4   :  { %5044 = vrcp.f32 %v2364_v13 }
0x17e6   :  { %v2495_v56 = vpop.xlane.xlu1 %2494 }
0x17e8   :  { %v2498_v12 = vpop.xlane.xlu0 %2497 }
0x17e9   :  { %5046 = vrcp.f32 %v2498_v12 }
0x17ea   :  { %5048 = vrcp.f32 %v2495_v56 }
0x17ed   :  { %v5043_v57 = vpop.eup %5042 }
0x17ee   :  { %v5045_v59 = vpop.eup %5044  ;;  %v2371_v60 = vmul.f32 %v5043_v57, %v5029_v31  ;;  %v2626_v61 = vpop.xlane.xlu1 %2625 }
0x17ef   :  { %v2370_v2 = vmul.f32 %v5045_v59, %v5027_v26  ;;  %v4890_v26 = vld [vmem:[#allocation3 + $0xd0] sm:$0xff]  }
0x17f0   :  { %v2629_v58 = vpop.xlane.xlu0 %2628  ;;  %4707 = vmatpush3.bf16.msra.mxu1 %v4890_v26  ;;  %v4895_v26 = vld [vmem:[#allocation3 + $0xf8] sm:$0xff]  }
0x17f1   :  { %5050 = vrcp.f32 %v2629_v58  ;;  %v2372_v6 = vpack.c.bf16 %v2371_v60, %v2370_v2  ;;  %4708 = vmatprep.subr.bf16.mxu1 %v5207_v0 }
0x17f2   :  { %5052 = vrcp.f32 %v2626_v61  ;;  %v2505_v8 = vpop.permute.xlu1 %2504 }
0x17f3   :  { %v5047_v7 = vpop.eup %5046 }
0x17f4   :  { %v2374_v5 = vpop.permute.xlu0 %2373  ;;  %v5049_v54 = vpop.eup %5048  ;;  %v2502_v9 = vmul.f32 %v5047_v7, %v5033_v44  ;;  %4709 = vmatpush3.bf16.msra.mxu1 %v4891_v53  ;;  %v4897_v53 = vld [vmem:[#allocation3 + $0x108] sm:$0xff]  }
0x17f5   :  { %4677 = vmatpush3.bf16.msra.mxu0 %v2374_v5  ;;  %v2501_v3 = vmul.f32 %v5049_v54, %v5031_v43  ;;  %4722 = vmatprep.subr.bf16.mxu1 %v5207_v0 }
0x17f6   :  { %4688 = vmatprep.subr.bf16.mxu0 %v5207_v0  ;;  %v2636_v55 = vpop.permute.xlu1 %2635 }
0x17f7   :  { %v2503_v10 = vpack.c.bf16 %v2502_v9, %v2501_v3 }
0x17f8   :  { %4679 = vmatmul.mubr.msk.bf16.vlgmr.msra.gmra.mrb[60].mxu0 %vm213_vm7, %v2372_v6 }
0x17f9   :  { %4689 = vmatpush3.bf16.msra.mxu0 %v2505_v8  ;;  %4690 = vmatprep.mubr.msk.bf16.mxu0 %vm5208_vm0, %v5207_v0  ;;  %v4893_v8 = vld [vmem:[#allocation3 + $0xe8] sm:$0xff]  }
0x17fa   :  { %4700 = vmatprep.subr.bf16.mxu0 %v5207_v0 }
0x17fb   :  { %v5051_v11 = vpop.eup %5050 }
0x17fc   :  { %v5053_v14 = vpop.eup %5052  ;;  %v2633_v63 = vmul.f32 %v5051_v11, %v5037_v41 }
0x17fd   :  { %v2632_v15 = vmul.f32 %v5053_v14, %v5035_v39 }
0x17ff   :  { %v2634_v16 = vpack.c.bf16 %v2633_v63, %v2632_v15  ;;  %v4273_v15 = vld [vmem:[#allocation5 + $0x18] ss:$0 sm:$0xff] }
0x1800   :  { %4691 = vmatmul.mubr.msk.bf16.vlgmr.msra.gmra.mrb[64].mxu0 %vm213_vm7, %v2503_v10 }
0x1801   :  { %4701 = vmatpush3.bf16.msra.mxu0 %v2636_v55  ;;  %4702 = vmatprep.mubr.msk.bf16.mxu0 %vm5208_vm0, %v5207_v0 }
0x1802   :  { %4714 = vmatprep.subr.bf16.mxu0 %v5207_v0 }
0x1808   :  { %4703 = vmatmul.mubr.msk.bf16.vlgmr.msra.gmra.mrb[68].mxu0 %vm213_vm7, %v2634_v16 }
0x1809   :  { %4718 = vmatprep.mubr.msk.bf16.mxu0 %vm5208_vm0, %v5207_v0 }
0x1868   :  { %v2289_v17 = vpop.f32.mrb[56].mxu0 }
0x1869   :  { %2296 = vst.msk [vmem:[#allocation2] sm:$0xff] %vm165_vm2, %v2289_v17  ;;  %v4668_v20 = vpop.f32.mrb[57].mxu0 }
0x186a   :  { %v2292_v21 = vpop.f32.mrb[58].mxu0 }
0x186b   :  { %2297 = vst.msk [vmem:[#allocation2 + $0x8] sm:$0xff] %vm165_vm2, %v2292_v21  ;;  %v4669_v22 = vpop.f32.mrb[59].mxu0  ;;  %v4274_v21 = vld [vmem:[#allocation5 + $0x19] ss:$0 sm:$0xff] }
0x18cb   :  { %v2413_v23 = vpop.f32.mrb[60].mxu0 }
0x18cc   :  { %2422 = vrot.lane.b32.xlu0 %v2413_v23, %s5202_s26  ;;  %v4680_v24 = vpop.f32.mrb[61].mxu0 }
0x18cd   :  { %v2416_v25 = vpop.f32.mrb[62].mxu0 }
0x18ce   :  { %2424 = vrot.lane.b32.xlu1 %v2416_v25, %s5202_s26  ;;  %v4681_v18 = vpop.f32.mrb[63].mxu0 }
0x18cf   :  { %v4894_v18 = vld [vmem:[#allocation3 + $0xf0] sm:$0xff]  }
0x18d3   :  { %v2544_v19 = vpop.f32.mrb[64].mxu0 }
0x18d4   :  { %2553 = vrot.lane.b32.xlu0 %v2544_v19, %s5220_s11  ;;  %v4692_v27 = vpop.f32.mrb[65].mxu0  ;;  %v4896_v19 = vld [vmem:[#allocation3 + $0x100] sm:$0xff]  }
0x18d5   :  { %v2547_v29 = vpop.f32.mrb[66].mxu0  ;;  %v4275_v27 = vld [vmem:[#allocation5 + $0x14] ss:$0 sm:$0xff] }
0x18d6   :  { %2555 = vrot.lane.b32.xlu1 %v2547_v29, %s5220_s11  ;;  %v4693_v31 = vpop.f32.mrb[67].mxu0 }
0x18db   :  { %v2675_v32 = vpop.f32.mrb[68].mxu0 }
0x18dc   :  { %2684 = vrot.lane.b32.xlu0 %v2675_v32, %s5221_s12  ;;  %v4704_v33 = vpop.f32.mrb[69].mxu0 }
0x18dd   :  { %v2678_v34 = vpop.f32.mrb[70].mxu0 }
0x18de   :  { %2686 = vrot.lane.b32.xlu1 %v2678_v34, %s5221_s12  ;;  %v4705_v35 = vpop.f32.mrb[71].mxu0 }
0x193e   :  { %v2423_v36 = vpop.permute.xlu0 %2422 }
0x193f   :  { %2428 = vst.msk [vmem:[#allocation2] sm:$0xff] %vm415_vm8, %v2423_v36 }
0x1940   :  { %v2425_v43 = vpop.permute.xlu1 %2424 }
0x1941   :  { %2429 = vst.msk [vmem:[#allocation2 + $0x8] sm:$0xff] %vm415_vm8, %v2425_v43 }
0x1946   :  { %v2554_v37 = vpop.permute.xlu0 %2553 }
0x1947   :  { %2559 = vst.msk [vmem:[#allocation2] sm:$0xff] %vm547_vm9, %v2554_v37 }
0x1948   :  { %v2556_v44 = vpop.permute.xlu1 %2555 }
0x1949   :  { %2560 = vst.msk [vmem:[#allocation2 + $0x8] sm:$0xff] %vm547_vm9, %v2556_v44 }
0x194e   :  { %v2685_v38 = vpop.permute.xlu0 %2684 }
0x194f   :  { %2690 = vst.msk [vmem:[#allocation2] sm:$0xff] %vm679_vm10, %v2685_v38 }
0x1950   :  { %v2687_v39 = vpop.permute.xlu1 %2686 }
0x1951   :  { %2691 = vst.msk [vmem:[#allocation2 + $0x8] sm:$0xff] %vm679_vm10, %v2687_v39 }
0x1956   :  { %v2692_v40 = vld [vmem:[#allocation2] sm:$0xff] }
0x1958   :  { %v2693_v41 = vld [vmem:[#allocation2 + $0x8] sm:$0xff] }
0x1959   :  { %v2698_v42 = vpack.c.bf16 %v2693_v41, %v2692_v40 }
0x195b   :  { %4711 = vmatmul.mubr.msk.bf16.vlgmr.msra.gmra.mrb[68].mxu1 %vm116_vm1, %v2698_v42 }
0x195c   :  { %4730 = vmatprep.mubr.msk.bf16.mxu1 %vm5208_vm0, %v5207_v0  ;;  %4723 = vmatpush3.bf16.msra.mxu1 %v4894_v18 }
0x195d   :  { %4724 = vmatprep.subr.bf16.mxu1 %v5207_v0 }
0x1960   :  { %4725 = vmatpush3.bf16.msra.mxu1 %v4895_v26 }
0x1961   :  { %4726 = vmatprep.subr.bf16.mxu1 %v5207_v0 }
0x1964   :  { %4727 = vmatpush3.bf16.msra.mxu1 %v4896_v19 }
0x1965   :  { %4728 = vmatprep.subr.bf16.mxu1 %v5207_v0 }
0x1968   :  { %4729 = vmatpush3.bf16.msra.mxu1 %v4897_v53 }
0x1969   :  { %4750 = vmatprep.subr.bf16.mxu1 %v5207_v0 }
0x1a2e   :  { %v2753_v46 = vpop.f32.mrb[68].mxu1 }
0x1a2f   :  { %v2754_v47 = vadd.f32 %v4269_v45, %v2753_v46  ;;  %v4712_v48 = vpop.f32.mrb[69].mxu1 }
0x1a30   :  { %v2756_v49 = vpop.f32.mrb[70].mxu1 }
0x1a31   :  { %v2760_v50 = vadd.f32 %v2754_v47, %v5630_v4  ;;  %v2757_v51 = vadd.f32 %v4269_v45, %v2756_v49  ;;  %v4713_v52 = vpop.f32.mrb[71].mxu1 }
0x1a33   :  { %v2761_v13 = vadd.f32 %v2757_v51, %v5632_v1  ;;  %v2764_v12 = vsel %vm116_vm1, %v2760_v50, 0.0  ;;  %v4892_v1 = vld [vmem:[#allocation3 + $0xe0] sm:$0xff]  }
0x1a34   :  { %2765 = vadd.xlane.f32.xlu0 %v2764_v12  ;;  %4715 = vmatpush3.bf16.msra.mxu0 %v4892_v1 }
0x1a35   :  { %v2767_v56 = vsel %vm116_vm1, %v2761_v13, 0.0  ;;  %4716 = vmatprep.subr.bf16.mxu0 %v5207_v0 }
0x1a36   :  { %2768 = vadd.xlane.f32.xlu1 %v2767_v56 }
0x1a38   :  { %4717 = vmatpush3.bf16.msra.mxu0 %v4893_v8 }
0x1a39   :  { %4734 = vmatprep.subr.bf16.mxu0 %v5207_v0 }
0x1ac1   :  { %v2766_v57 = vpop.xlane.xlu0 %2765 }
0x1ac2   :  { %v2770_v58 = vmul.f32 0.03125, %v2766_v57 }
0x1ac3   :  { %v2769_v59 = vpop.xlane.xlu1 %2768 }
0x1ac4   :  { %v2772_v60 = vsub.f32 %v2760_v50, %v2770_v58  ;;  %v2771_v61 = vmul.f32 0.03125, %v2769_v59 }
0x1ac6   :  { %v2773_v2 = vsub.f32 %v2761_v13, %v2771_v61  ;;  %v2774_v5 = vmul.f32 %v2772_v60, %v2772_v60 }
0x1ac8   :  { %v2776_v6 = vsel %vm116_vm1, %v2774_v5, 0.0  ;;  %v2775_v4 = vmul.f32 %v2773_v2, %v2773_v2 }
0x1ac9   :  { %2777 = vadd.xlane.f32.xlu0 %v2776_v6 }
0x1aca   :  { %v2779_v7 = vsel %vm116_vm1, %v2775_v4, 0.0 }
0x1acd   :  { %2780 = vadd.xlane.f32.xlu0 %v2779_v7 }
0x1b56   :  { %v2778_v54 = vpop.xlane.xlu0 %2777 }
0x1b57   :  { %v2782_v9 = vmul.f32 0.03125, %v2778_v54  ;;  %v4898_v54 = vld [vmem:[#allocation3 + $0x130] sm:$0xff]  }
0x1b59   :  { %v2784_v3 = vadd.f32 1e-05, %v2782_v9 }
0x1b5a   :  { %v2781_v10 = vpop.xlane.xlu0 %2780 }
0x1b5b   :  { %5054 = vrsqrt.f32 %v2784_v3  ;;  %v2783_v11 = vmul.f32 0.03125, %v2781_v10  ;;  %v4899_v3 = vld [vmem:[#allocation3 + $0x138] sm:$0xff]   ;;  %v4279_v10 = vld [vmem:[#allocation5 + $0x15] ss:$0 sm:$0xff] }
0x1b5d   :  { %v2785_v55 = vadd.f32 1e-05, %v2783_v11 }
0x1b5f   :  { %5056 = vrsqrt.f32 %v2785_v55 }
0x1b65   :  { %v5055_v14 = vpop.eup %5054 }
0x1b66   :  { %v2788_v63 = vmul.f32 %v5055_v14, %v2772_v60 }
0x1b68   :  { %v2794_v17 = vmul.f32 %v4273_v15, %v2788_v63 }
0x1b69   :  { %v5057_v16 = vpop.eup %5056 }
0x1b6a   :  { %v2789_v20 = vmul.f32 %v5057_v16, %v2773_v2  ;;  %v5752_v23 = vadd.f32 %v4274_v21, %v2794_v17 }
0x1b6c   :  { %v2795_v22 = vmul.f32 %v4273_v15, %v2789_v20 }
0x1b6e   :  { %v5754_v24 = vadd.f32 %v4274_v21, %v2795_v22 }
0x1b70   :  { %v2806_v25 = vpack.c.bf16 %v5754_v24, %v5752_v23 }
0x1b72   :  { %4719 = vmatmul.mubr.msk.bf16.vlgmr.msra.gmra.mrb[72].mxu0 %vm116_vm1, %v2806_v25 }
0x1b73   :  { %4738 = vmatprep.mubr.msk.bf16.mxu0 %vm5208_vm0, %v5207_v0 }
0x1c45   :  { %v2861_v29 = vpop.f32.mrb[72].mxu0 }
0x1c46   :  { %v2862_v31 = vadd.f32 %v4275_v27, %v2861_v29  ;;  %v4720_v32 = vpop.f32.mrb[73].mxu0 }
0x1c47   :  { %v2864_v33 = vpop.f32.mrb[74].mxu0 }
0x1c48   :  { %v2870_v34 = vand.u32 2147483647, %v2862_v31  ;;  %v2865_v35 = vadd.f32 %v4275_v27, %v2864_v33  ;;  %v4721_v36 = vpop.f32.mrb[75].mxu0  ;;  %v2868_v57 = vmax.f32 %v2862_v31, 0.0 }
0x1c4a   :  { %v2872_v43 = vsub.f32 0.0, %v2870_v34  ;;  %v2871_v37 = vand.u32 2147483647, %v2865_v35  ;;  %v2869_v2 = vmax.f32 %v2865_v35, 0.0 }
0x1c4c   :  { %v2874_v44 = vmul.f32 1.442695, %v2872_v43  ;;  %v2873_v38 = vsub.f32 0.0, %v2871_v37 }
0x1c4e   :  { %5058 = vpow2.f32 %v2874_v44  ;;  %v2876_v39 = vmul.f32 1.442695, %v2873_v38  ;;  %v4900_v44 = vld [vmem:[#allocation3 + $0x110] sm:$0xff]   ;;  %v4901_v38 = vld [vmem:[#allocation3 + $0x118] sm:$0xff]  }
0x1c4f   :  { %4735 = vmatpush3.bf16.msra.mxu0 %v4900_v44  ;;  %v4293_v44 = vld [vmem:[#allocation5 + $0x1d] ss:$0 sm:$0xff] }
0x1c50   :  { %5060 = vpow2.f32 %v2876_v39  ;;  %4736 = vmatprep.subr.bf16.mxu0 %v5207_v0 }
0x1c53   :  { %4737 = vmatpush3.bf16.msra.mxu0 %v4901_v38 }
0x1c54   :  { %4742 = vmatprep.subr.bf16.mxu0 %v5207_v0 }
0x1c58   :  { %v5059_v40 = vpop.eup %5058 }
0x1c59   :  { %v2878_v41 = vadd.f32 1.0, %v5059_v40  ;;  %v2881_v46 = vmul.f32 -0.5, %v5059_v40  ;;  %v2884_v49 = vand.u32 2147483647, %v5059_v40 }
0x1c5a   :  { %v5061_v42 = vpop.eup %5060 }
0x1c5b   :  { %5062 = vlog2.f32 %v2878_v41  ;;  %v2887_v45 = vadd.f32 1.0, %v5061_v42  ;;  %v2890_v47 = vmul.f32 -0.5, %v5061_v42  ;;  %v2882_v48 = vadd.f32 1.0, %v2881_v46 }
0x1c5c   :  { %v2893_v52 = vand.u32 2147483647, %v5061_v42  ;;  %vm2885_vm3 = vcmp.lt.f32.partialorder %v2884_v49, 0.0004427343 }
0x1c5d   :  { %5064 = vlog2.f32 %v2887_v45  ;;  %v2891_v50 = vadd.f32 1.0, %v2890_v47  ;;  %v2883_v12 = vmul.f32 %v5059_v40, %v2882_v48  ;;  %v4285_v48 = vld [vmem:[#allocation5 + $0x1a] ss:$0 sm:$0xff] }
0x1c5e   :  { %vm2894_vm4 = vcmp.lt.f32.partialorder %v2893_v52, 0.0004427343 }
0x1c5f   :  { %v2892_v60 = vmul.f32 %v5061_v42, %v2891_v50 }
0x1c65   :  { %v5063_v51 = vpop.eup %5062 }
0x1c66   :  { %v2880_v13 = vmul.f32 0.6931472, %v5063_v51 }
0x1c67   :  { %v5065_v56 = vpop.eup %5064 }
0x1c68   :  { %v2886_v58 = vsel %vm2885_vm3, %v2883_v12, %v2880_v13  ;;  %v2889_v59 = vmul.f32 0.6931472, %v5065_v56  ;;  %v4286_v13 = vld [vmem:[#allocation5 + $0x1b] ss:$0 sm:$0xff] }
0x1c69   :  { %v2896_v61 = vadd.f32 %v2886_v58, %v2868_v57 }
0x1c6a   :  { %v2895_v5 = vsel %vm2894_vm4, %v2892_v60, %v2889_v59  ;;  %v4287_v59 = vld [vmem:[#allocation5 + $0x1c] ss:$0 sm:$0xff] }
0x1c6b   :  { %5066 = vtanh.f32 %v2896_v61  ;;  %v2897_v6 = vadd.f32 %v2895_v5, %v2869_v2 }
0x1c6d   :  { %5068 = vtanh.f32 %v2897_v6 }
0x1c75   :  { %v5067_v4 = vpop.eup %5066 }
0x1c76   :  { %v2900_v1 = vmul.f32 %v5067_v4, %v2862_v31 }
0x1c77   :  { %v5069_v7 = vpop.eup %5068 }
0x1c78   :  { %v2901_v8 = vmul.f32 %v5069_v7, %v2865_v35 }
0x1c7a   :  { %v2910_v9 = vpack.c.bf16 %v2901_v8, %v2900_v1 }
0x1c7c   :  { %4731 = vmatmul.mubr.msk.bf16.vlgmr.msra.gmra.mrb[72].mxu1 %vm931_vm13, %v2910_v9 }
0x1c7d   :  { %4751 = vmatpush3.bf16.msra.mxu1 %v4898_v54  ;;  %4754 = vmatprep.mubr.msk.bf16.mxu1 %vm5208_vm0, %v5207_v0 }
0x1c7e   :  { %4752 = vmatprep.subr.bf16.mxu1 %v5207_v0 }
0x1c81   :  { %4753 = vmatpush3.bf16.msra.mxu1 %v4899_v3 }
0x1c82   :  { %4764 = vmatprep.subr.bf16.mxu1 %v5207_v0 }
0x1c84   :  { %4755 = vmatmul.mubr.msk.bf16.vlgmr.msra.gmra.mrb[76].mxu1 %vm116_vm1, %v5626_v62  ;;  %v4297_v62 = vld [vmem:[#allocation5 + $0x1e] ss:$0 sm:$0xff] }
0x1c85   :  { %4766 = vmatprep.mubr.msk.bf16.mxu1 %vm5208_vm0, %v5207_v0 }
0x1d4f   :  { %v2977_v11 = vpop.f32.mrb[72].mxu1 }
0x1d50   :  { %v2978_v55 = vadd.f32 %v4279_v10, %v2977_v11  ;;  %v4732_v14 = vpop.f32.mrb[73].mxu1 }
0x1d51   :  { %v2980_v63 = vpop.f32.mrb[74].mxu1 }
0x1d52   :  { %v2984_v15 = vadd.f32 %v2978_v55, %v5752_v23  ;;  %v2981_v16 = vadd.f32 %v4279_v10, %v2980_v63  ;;  %v4733_v17 = vpop.f32.mrb[75].mxu1 }
0x1d54   :  { %v2985_v20 = vadd.f32 %v2981_v16, %v5754_v24  ;;  %v2988_v21 = vsel %vm116_vm1, %v2984_v15, 0.0 }
0x1d55   :  { %2989 = vadd.xlane.f32.xlu1 %v2988_v21  ;;  %v4903_v21 = vld [vmem:[#allocation3 + $0x128] sm:$0xff]  }
0x1d56   :  { %v2991_v22 = vsel %vm116_vm1, %v2985_v20, 0.0 }
0x1d57   :  { %2992 = vadd.xlane.f32.xlu0 %v2991_v22  ;;  %v3255_v25 = vpop.f32.mrb[76].mxu1 }
0x1d58   :  { %v4756_v18 = vpop.f32.mrb[77].mxu1  ;;  %v3256_v19 = vadd.f32 %v4297_v62, %v3255_v25 }
0x1d59   :  { %v3258_v26 = vpop.f32.mrb[78].mxu1 }
0x1d5a   :  { %v3259_v53 = vadd.f32 %v4297_v62, %v3258_v26  ;;  %v4757_v27 = vpop.f32.mrb[79].mxu1 }
0x1d5b   :  { %v4291_v27 = vld [vmem:[#allocation5 + $0x22] ss:$0 sm:$0xff] }
0x1d5c   :  { %v5778_v29 = vpack.c.bf16 %v3259_v53, %v3256_v19 }
0x1de2   :  { %v2990_v23 = vpop.xlane.xlu1 %2989 }
0x1de3   :  { %v2994_v31 = vmul.f32 0.03125, %v2990_v23 }
0x1de4   :  { %v2993_v32 = vpop.xlane.xlu0 %2992 }
0x1de5   :  { %v2996_v33 = vsub.f32 %v2984_v15, %v2994_v31  ;;  %v2995_v24 = vmul.f32 0.03125, %v2993_v32 }
0x1de7   :  { %v2997_v34 = vsub.f32 %v2985_v20, %v2995_v24  ;;  %v2998_v35 = vmul.f32 %v2996_v33, %v2996_v33  ;;  %v4902_v20 = vld [vmem:[#allocation3 + $0x120] sm:$0xff]   ;;  %v4292_v24 = vld [vmem:[#allocation5 + $0x23] ss:$0 sm:$0xff] }
0x1de9   :  { %v3000_v36 = vsel %vm116_vm1, %v2998_v35, 0.0  ;;  %v2999_v43 = vmul.f32 %v2997_v34, %v2997_v34 }
0x1dea   :  { %3001 = vadd.xlane.f32.xlu1 %v3000_v36 }
0x1deb   :  { %v3003_v37 = vsel %vm116_vm1, %v2999_v43, 0.0 }
0x1dec   :  { %3004 = vadd.xlane.f32.xlu0 %v3003_v37  ;;  %v3268_v37 = vsel %vm165_vm2, %v5778_v29, 0 }
0x1e77   :  { %v3002_v39 = vpop.xlane.xlu1 %3001 }
0x1e78   :  { %v3006_v40 = vmul.f32 0.03125, %v3002_v39 }
0x1e79   :  { %v3005_v41 = vpop.xlane.xlu0 %3004 }
0x1e7a   :  { %v3008_v42 = vadd.f32 1e-05, %v3006_v40  ;;  %v3007_v45 = vmul.f32 0.03125, %v3005_v41 }
0x1e7c   :  { %5070 = vrsqrt.f32 %v3008_v42  ;;  %v3009_v46 = vadd.f32 1e-05, %v3007_v45 }
0x1e7e   :  { %5072 = vrsqrt.f32 %v3009_v46 }
0x1e86   :  { %v5071_v47 = vpop.eup %5070 }
0x1e87   :  { %v3012_v49 = vmul.f32 %v5071_v47, %v2996_v33 }
0x1e88   :  { %v5073_v50 = vpop.eup %5072 }
0x1e89   :  { %v3018_v51 = vmul.f32 %v4285_v48, %v3012_v49  ;;  %v3013_v52 = vmul.f32 %v5073_v50, %v2997_v34 }
0x1e8b   :  { %v3019_v12 = vmul.f32 %v4285_v48, %v3013_v52  ;;  %v3024_v56 = vadd.f32 %v4286_v13, %v3018_v51 }
0x1e8d   :  { %v3025_v57 = vadd.f32 %v4286_v13, %v3019_v12 }
0x1e8f   :  { %v3030_v58 = vpack.c.bf16 %v3025_v57, %v3024_v56 }
0x1e91   :  { %4739 = vmatmul.mubr.msk.bf16.vlgmr.msra.gmra.mrb[76].mxu0 %vm116_vm1, %v3030_v58 }
0x1e92   :  { %4746 = vmatprep.mubr.msk.bf16.mxu0 %vm5208_vm0, %v5207_v0  ;;  %4743 = vmatpush3.bf16.msra.mxu0 %v4902_v20 }
0x1e93   :  { %4744 = vmatprep.subr.bf16.mxu0 %v5207_v0 }
0x1e96   :  { %4745 = vmatpush3.bf16.msra.mxu0 %v4903_v21 }
0x1e97   :  { %4758 = vmatprep.subr.bf16.mxu0 %v5207_v0 }
0x1f64   :  { %v3085_v60 = vpop.f32.mrb[76].mxu0 }
0x1f65   :  { %v3086_v61 = vadd.f32 %v4287_v59, %v3085_v60  ;;  %v4740_v2 = vpop.f32.mrb[77].mxu0 }
0x1f66   :  { %v3088_v5 = vpop.f32.mrb[78].mxu0 }
0x1f67   :  { %v3092_v6 = vadd.f32 %v3086_v61, %v3024_v56  ;;  %v3089_v4 = vadd.f32 %v4287_v59, %v3088_v5  ;;  %v4741_v7 = vpop.f32.mrb[79].mxu0 }
0x1f69   :  { %v3093_v1 = vadd.f32 %v3089_v4, %v3025_v57  ;;  %v3096_v8 = vsel %vm116_vm1, %v3092_v6, 0.0 }
0x1f6a   :  { %3097 = vadd.xlane.f32.xlu1 %v3096_v8 }
0x1f6b   :  { %v3099_v54 = vsel %vm116_vm1, %v3093_v1, 0.0 }
0x1f6c   :  { %3100 = vadd.xlane.f32.xlu0 %v3099_v54 }
0x1ff7   :  { %v3098_v9 = vpop.xlane.xlu1 %3097 }
0x1ff8   :  { %v3102_v3 = vmul.f32 0.03125, %v3098_v9 }
0x1ff9   :  { %v3101_v10 = vpop.xlane.xlu0 %3100 }
0x1ffa   :  { %v3104_v11 = vsub.f32 %v3092_v6, %v3102_v3  ;;  %v3103_v55 = vmul.f32 0.03125, %v3101_v10 }
0x1ffc   :  { %v3105_v14 = vsub.f32 %v3093_v1, %v3103_v55  ;;  %v3106_v63 = vmul.f32 %v3104_v11, %v3104_v11 }
0x1ffe   :  { %v3108_v15 = vsel %vm116_vm1, %v3106_v63, 0.0  ;;  %v3107_v16 = vmul.f32 %v3105_v14, %v3105_v14 }
0x1fff   :  { %3109 = vadd.xlane.f32.xlu1 %v3108_v15 }
0x2000   :  { %v3111_v17 = vsel %vm116_vm1, %v3107_v16, 0.0 }
0x2001   :  { %3112 = vadd.xlane.f32.xlu0 %v3111_v17 }
0x2010   :  { %3387 = vrot.lane.b32.xlu1 %v5778_v29, %s5209_s2 }
0x2014   :  { %3518 = vrot.lane.b32.xlu1 %v5778_v29, %s5214_s6 }
0x208c   :  { %v3110_v22 = vpop.xlane.xlu1 %3109 }
0x208d   :  { %v3114_v62 = vmul.f32 0.03125, %v3110_v22 }
0x208e   :  { %v3113_v25 = vpop.xlane.xlu0 %3112 }
0x208f   :  { %v3116_v18 = vadd.f32 1e-05, %v3114_v62  ;;  %v3115_v26 = vmul.f32 0.03125, %v3113_v25 }
0x2090   :  { %v3388_v46 = vpop.permute.xlu1 %3387 }
0x2091   :  { %5074 = vrsqrt.f32 %v3116_v18  ;;  %v3117_v19 = vadd.f32 1e-05, %v3115_v26  ;;  %v3393_v48 = vsel %vm165_vm2, %v3388_v46, 0 }
0x2093   :  { %5076 = vrsqrt.f32 %v3117_v19 }
0x2094   :  { %v3519_v49 = vpop.permute.xlu1 %3518 }
0x2095   :  { %v3524_v51 = vsel %vm165_vm2, %v3519_v49, 0 }
0x209b   :  { %v5075_v53 = vpop.eup %5074 }
0x209c   :  { %v3120_v23 = vmul.f32 %v5075_v53, %v3104_v11 }
0x209d   :  { %v5077_v31 = vpop.eup %5076 }
0x209e   :  { %v3126_v32 = vmul.f32 %v4291_v27, %v3120_v23  ;;  %v3121_v33 = vmul.f32 %v5077_v31, %v3105_v14 }
0x20a0   :  { %v3127_v34 = vmul.f32 %v4291_v27, %v3121_v33  ;;  %v5797_v35 = vadd.f32 %v4292_v24, %v3126_v32 }
0x20a2   :  { %v5799_v36 = vadd.f32 %v4292_v24, %v3127_v34 }
0x20a4   :  { %v3138_v43 = vpack.c.bf16 %v5799_v36, %v5797_v35 }
0x20a6   :  { %4747 = vmatmul.mubr.msk.bf16.vlgmr.msra.gmra.mrb[80].mxu0 %vm116_vm1, %v3138_v43 }
0x20a7   :  { %4759 = vmatpush3.bf16.xpose.msra.mxu0 %v3268_v37  ;;  %4760 = vmatprep.mubr.msk.bf16.mxu0 %vm5208_vm0, %v5207_v0 }
0x20a8   :  { %4770 = vmatprep.subr.bf16.mxu0 %v5207_v0 }
0x2179   :  { %v3193_v38 = vpop.f32.mrb[80].mxu0 }
0x217a   :  { %v4748_v39 = vpop.f32.mrb[81].mxu0  ;;  %v3194_v41 = vadd.f32 %v4293_v44, %v3193_v38 }
0x217b   :  { %v3196_v40 = vpop.f32.mrb[82].mxu0 }
0x217c   :  { %v3197_v42 = vadd.f32 %v4293_v44, %v3196_v40  ;;  %v4749_v45 = vpop.f32.mrb[83].mxu0 }
0x217e   :  { %v3262_v47 = vpack.c.bf16 %v3197_v42, %v3194_v41 }
0x2180   :  { %3516 = vrot.lane.b32.xlu1 %v3262_v47, %s5214_s6  ;;  %3385 = vrot.lane.b32.xlu0 %v3262_v47, %s5209_s2 }
0x2181   :  { %4761 = vmatmul.mubr.msk.bf16.vlgmr.msra.gmra.mrb[84].mxu0 %vm165_vm2, %v3262_v47 }
0x2182   :  { %4771 = vmatpush3.bf16.xpose.msra.mxu0 %v3393_v48  ;;  %4772 = vmatprep.mubr.msk.bf16.mxu0 %vm5208_vm0, %v5207_v0 }
0x2183   :  { %4782 = vmatprep.subr.bf16.mxu0 %v5207_v0 }
0x2184   :  { %3647 = vrot.lane.b32.xlu1 %v3262_v47, %s5215_s7  ;;  %3649 = vrot.lane.b32.xlu0 %v5778_v29, %s5215_s7 }
0x21f2   :  { %v3386_v50 = vpop.permute.xlu0 %3385  ;;  %v3517_v13 = vpop.permute.xlu1 %3516 }
0x21f3   :  { %4773 = vmatmul.mubr.msk.bf16.vlgmr.msra.gmra.mrb[88].mxu0 %vm165_vm2, %v3386_v50 }
0x21f4   :  { %4783 = vmatpush3.bf16.xpose.msra.mxu0 %v3524_v51  ;;  %4784 = vmatprep.mubr.msk.bf16.mxu0 %vm5208_vm0, %v5207_v0 }
0x21f5   :  { %4794 = vmatprep.subr.bf16.mxu0 %v5207_v0 }
0x21f6   :  { %v3650_v52 = vpop.permute.xlu0 %3649  ;;  %v3648_v56 = vpop.permute.xlu1 %3647 }
0x21f7   :  { %v3655_v12 = vsel %vm165_vm2, %v3650_v52, 0 }
0x21fb   :  { %4785 = vmatmul.mubr.msk.bf16.vlgmr.msra.gmra.mrb[92].mxu0 %vm165_vm2, %v3517_v13 }
0x21fc   :  { %4795 = vmatpush3.bf16.xpose.msra.mxu0 %v3655_v12  ;;  %4796 = vmatprep.mubr.msk.bf16.mxu0 %vm5208_vm0, %v5207_v0 }
0x21fd   :  { %4806 = vmatprep.subr.bf16.mxu0 %v5207_v0 }
0x2203   :  { %4797 = vmatmul.mubr.msk.bf16.vlgmr.msra.gmra.mrb[96].mxu0 %vm165_vm2, %v3648_v56 }
0x2204   :  { %4810 = vmatprep.mubr.msk.bf16.mxu0 %vm5208_vm0, %v5207_v0 }
0x2254   :  { %v3304_v57 = vpop.f32.mrb[84].mxu0 }
0x2255   :  { %v3305_v58 = vadd.f32 %v3304_v57, %v5345_v28  ;;  %v4762_v59 = vpop.f32.mrb[85].mxu0 }
0x2256   :  { %v3307_v60 = vpop.f32.mrb[86].mxu0 }
0x2257   :  { %v3308_v61 = vadd.f32 %v3307_v60, %v5347_v30  ;;  %v4763_v2 = vpop.f32.mrb[87].mxu0  ;;  %v3311_v5 = vsel %vm213_vm7, %v3305_v58, -inf }
0x2258   :  { %3312 = vmax.xlane.f32.xlu0 %v3311_v5 }
0x2259   :  { %v3314_v6 = vsel %vm213_vm7, %v3308_v61, -inf }
0x225a   :  { %3315 = vmax.xlane.f32.xlu1 %v3314_v6 }
0x22c6   :  { %v3429_v4 = vpop.f32.mrb[88].mxu0 }
0x22c7   :  { %v3430_v7 = vadd.f32 %v3429_v4, %v5345_v28  ;;  %v4774_v1 = vpop.f32.mrb[89].mxu0 }
0x22c8   :  { %v3432_v8 = vpop.f32.mrb[90].mxu0 }
0x22c9   :  { %v3433_v54 = vadd.f32 %v3432_v8, %v5347_v30  ;;  %v4775_v9 = vpop.f32.mrb[91].mxu0  ;;  %v3436_v3 = vsel %vm213_vm7, %v3430_v7, -inf }
0x22ca   :  { %3437 = vmax.xlane.f32.xlu0 %v3436_v3 }
0x22cb   :  { %v3439_v10 = vsel %vm213_vm7, %v3433_v54, -inf }
0x22ce   :  { %3440 = vmax.xlane.f32.xlu0 %v3439_v10  ;;  %v3560_v11 = vpop.f32.mrb[92].mxu0 }
0x22cf   :  { %v3561_v55 = vadd.f32 %v3560_v11, %v5345_v28  ;;  %v4786_v14 = vpop.f32.mrb[93].mxu0 }
0x22d0   :  { %v3563_v63 = vpop.f32.mrb[94].mxu0 }
0x22d1   :  { %v3564_v15 = vadd.f32 %v3563_v63, %v5347_v30  ;;  %v4787_v16 = vpop.f32.mrb[95].mxu0  ;;  %v3567_v17 = vsel %vm213_vm7, %v3561_v55, -inf }
0x22d2   :  { %3568 = vmax.xlane.f32.xlu1 %v3567_v17 }
0x22d3   :  { %v3570_v20 = vsel %vm213_vm7, %v3564_v15, -inf }
0x22d4   :  { %3571 = vmax.xlane.f32.xlu0 %v3570_v20 }
0x22d6   :  { %v3691_v21 = vpop.f32.mrb[96].mxu0 }
0x22d7   :  { %v3692_v22 = vadd.f32 %v3691_v21, %v5345_v28  ;;  %v4798_v62 = vpop.f32.mrb[97].mxu0 }
0x22d8   :  { %v3694_v25 = vpop.f32.mrb[98].mxu0 }
0x22d9   :  { %v3695_v18 = vadd.f32 %v3694_v25, %v5347_v30  ;;  %v4799_v26 = vpop.f32.mrb[99].mxu0  ;;  %v3698_v19 = vsel %vm213_vm7, %v3692_v22, -inf }
0x22da   :  { %3699 = vmax.xlane.f32.xlu1 %v3698_v19 }
0x22db   :  { %v3701_v53 = vsel %vm213_vm7, %v3695_v18, -inf }
0x22dc   :  { %3702 = vmax.xlane.f32.xlu0 %v3701_v53 }
0x22e5   :  { %v3313_v28 = vpop.xlane.xlu0 %3312 }
0x22e6   :  { %v3317_v33 = vsub.f32 %v3305_v58, %v3313_v28 }
0x22e7   :  { %v3316_v27 = vpop.xlane.xlu1 %3315 }
0x22e8   :  { %v3318_v23 = vsub.f32 %v3308_v61, %v3316_v27  ;;  %v3319_v24 = vmul.f32 1.442695, %v3317_v33 }
0x22ea   :  { %v3321_v31 = vmul.f32 1.442695, %v3318_v23 }
0x22eb   :  { %3335 = vrot.lane.b32.xlu1 %v5778_v29, %s5210_s25 }
0x22ec   :  { %5078 = vpow2.f32 %v3321_v31 }
0x22ed   :  { %5080 = vpow2.f32 %v3319_v24 }
0x22f6   :  { %v5850_v32 = vpop.eup %5078 }
0x22f7   :  { %v3326_v30 = vsel %vm213_vm7, %v5850_v32, 0.0  ;;  %v5081_v34 = vpop.eup %5080 }
0x22f8   :  { %3327 = vadd.xlane.f32.xlu0 %v3326_v30  ;;  %v3323_v43 = vsel %vm213_vm7, %v5081_v34, 0.0 }
0x230f   :  { %3324 = vadd.xlane.f32.xlu1 %v3323_v43 }
0x2357   :  { %v3438_v37 = vpop.xlane.xlu0 %3437 }
0x2358   :  { %v3442_v44 = vsub.f32 %v3430_v7, %v3438_v37 }
0x235a   :  { %v3444_v38 = vmul.f32 1.442695, %v3442_v44 }
0x235b   :  { %v3441_v39 = vpop.xlane.xlu0 %3440 }
0x235c   :  { %5082 = vpow2.f32 %v3444_v38  ;;  %v3443_v40 = vsub.f32 %v3433_v54, %v3441_v39 }
0x235e   :  { %v3446_v41 = vmul.f32 1.442695, %v3443_v40 }
0x235f   :  { %v3569_v42 = vpop.xlane.xlu1 %3568 }
0x2360   :  { %5084 = vpow2.f32 %v3446_v41  ;;  %v3573_v45 = vsub.f32 %v3561_v55, %v3569_v42 }
0x2361   :  { %v3572_v46 = vpop.xlane.xlu0 %3571 }
0x2362   :  { %v3575_v47 = vmul.f32 1.442695, %v3573_v45  ;;  %v3574_v48 = vsub.f32 %v3564_v15, %v3572_v46 }
0x2364   :  { %5086 = vpow2.f32 %v3575_v47  ;;  %v3577_v49 = vmul.f32 1.442695, %v3574_v48  ;;  %v4904_v47 = vld [vmem:[#allocation3 + $0x140] sm:$0xff]  }
0x2365   :  { %4807 = vmatpush3.bf16.msra.mxu0 %v4904_v47  ;;  %v4315_v47 = vld [vmem:[#allocation5 + $0x20] ss:$0 sm:$0xff] }
0x2366   :  { %v5083_v50 = vpop.eup %5082  ;;  %5088 = vpow2.f32 %v3577_v49  ;;  %v4905_v49 = vld [vmem:[#allocation3 + $0x148] sm:$0xff]   ;;  %4808 = vmatprep.subr.bf16.mxu0 %v5207_v0 }
0x2367   :  { %v3700_v51 = vpop.xlane.xlu1 %3699  ;;  %v3448_v52 = vsel %vm213_vm7, %v5083_v50, 0.0 }
0x2368   :  { %v3704_v13 = vsub.f32 %v3692_v22, %v3700_v51  ;;  %3449 = vadd.xlane.f32.xlu1 %v3448_v52 }
0x2369   :  { %v3703_v12 = vpop.xlane.xlu0 %3702  ;;  %4809 = vmatpush3.bf16.msra.mxu0 %v4905_v49 }
0x236a   :  { %v5085_v56 = vpop.eup %5084  ;;  %v3706_v57 = vmul.f32 1.442695, %v3704_v13  ;;  %v3705_v58 = vsub.f32 %v3695_v18, %v3703_v12  ;;  %4822 = vmatprep.subr.bf16.mxu0 %v5207_v0 }
0x236b   :  { %v3336_v59 = vpop.permute.xlu1 %3335  ;;  %v3451_v60 = vsel %vm213_vm7, %v5085_v56, 0.0 }
0x236c   :  { %5090 = vpow2.f32 %v3706_v57  ;;  %v3708_v61 = vmul.f32 1.442695, %v3705_v58  ;;  %4765 = vmatpush3.bf16.msra.mxu1 %v3336_v59  ;;  %3452 = vadd.xlane.f32.xlu0 %v3451_v60 }
0x236d   :  { %4776 = vmatprep.subr.bf16.mxu1 %v5207_v0 }
0x236e   :  { %v5087_v2 = vpop.eup %5086  ;;  %5092 = vpow2.f32 %v3708_v61 }
0x236f   :  { %v3579_v5 = vsel %vm213_vm7, %v5087_v2, 0.0 }
0x2370   :  { %v5089_v6 = vpop.eup %5088  ;;  %3580 = vadd.xlane.f32.xlu1 %v3579_v5 }
0x2371   :  { %v3582_v4 = vsel %vm213_vm7, %v5089_v6, 0.0 }
0x2372   :  { %3583 = vadd.xlane.f32.xlu0 %v3582_v4 }
0x2376   :  { %v5091_v7 = vpop.eup %5090 }
0x2377   :  { %v3710_v1 = vsel %vm213_vm7, %v5091_v7, 0.0 }
0x2378   :  { %v5093_v8 = vpop.eup %5092  ;;  %3711 = vadd.xlane.f32.xlu1 %v3710_v1  ;;  %v4309_v1 = vld [vmem:[#allocation5 + $0x1f] ss:$0 sm:$0xff] }
0x2379   :  { %v3713_v54 = vsel %vm213_vm7, %v5093_v8, 0.0 }
0x237a   :  { %3714 = vadd.xlane.f32.xlu0 %v3713_v54 }
0x2385   :  { %v3328_v9 = vpop.xlane.xlu0 %3327 }
0x2386   :  { %5094 = vrcp.f32 %v3328_v9 }
0x2389   :  { %3590 = vrot.lane.b32.xlu1 %v5778_v29, %s5211_s29 }
0x238d   :  { %3721 = vrot.lane.b32.xlu1 %v5778_v29, %s5213_s5 }
0x2390   :  { %3459 = vrot.lane.b32.xlu0 %v5778_v29, %s5212_s30  ;;  %v5095_v10 = vpop.eup %5094 }
0x2391   :  { %v3332_v55 = vmul.f32 %v5095_v10, %v5850_v32 }
0x239c   :  { %v3325_v3 = vpop.xlane.xlu1 %3324 }
0x239d   :  { %5096 = vrcp.f32 %v3325_v3 }
0x23a7   :  { %v5097_v11 = vpop.eup %5096 }
0x23a8   :  { %v3331_v14 = vmul.f32 %v5097_v11, %v5081_v34 }
0x23aa   :  { %v3333_v63 = vpack.c.bf16 %v3332_v55, %v3331_v14 }
0x23ac   :  { %4767 = vmatmul.mubr.msk.bf16.vlgmr.msra.gmra.mrb[80].mxu1 %vm213_vm7, %v3333_v63 }
0x23ad   :  { %4778 = vmatprep.mubr.msk.bf16.mxu1 %vm5208_vm0, %v5207_v0 }
0x23f5   :  { %v3450_v16 = vpop.xlane.xlu1 %3449 }
0x23f9   :  { %v3453_v15 = vpop.xlane.xlu0 %3452 }
0x23fa   :  { %5098 = vrcp.f32 %v3453_v15 }
0x23fb   :  { %5100 = vrcp.f32 %v3450_v16 }
0x23fd   :  { %v3581_v17 = vpop.xlane.xlu1 %3580 }
0x23ff   :  { %v3584_v29 = vpop.xlane.xlu0 %3583 }
0x2400   :  { %5102 = vrcp.f32 %v3584_v29 }
0x2401   :  { %5104 = vrcp.f32 %v3581_v17 }
0x2404   :  { %v5099_v20 = vpop.eup %5098 }
0x2405   :  { %v5101_v22 = vpop.eup %5100  ;;  %v3457_v62 = vmul.f32 %v5099_v20, %v5085_v56  ;;  %v3712_v25 = vpop.xlane.xlu1 %3711 }
0x2406   :  { %v3456_v18 = vmul.f32 %v5101_v22, %v5083_v50 }
0x2407   :  { %v3715_v21 = vpop.xlane.xlu0 %3714 }
0x2408   :  { %5106 = vrcp.f32 %v3715_v21  ;;  %v3458_v19 = vpack.c.bf16 %v3457_v62, %v3456_v18 }
0x2409   :  { %5108 = vrcp.f32 %v3712_v25  ;;  %v3591_v27 = vpop.permute.xlu1 %3590 }
0x240a   :  { %v5103_v53 = vpop.eup %5102 }
0x240b   :  { %v3460_v26 = vpop.permute.xlu0 %3459  ;;  %v5105_v23 = vpop.eup %5104  ;;  %v3588_v31 = vmul.f32 %v5103_v53, %v5089_v6 }
0x240c   :  { %4777 = vmatpush3.bf16.msra.mxu1 %v3460_v26  ;;  %v3587_v32 = vmul.f32 %v5105_v23, %v5087_v2  ;;  %v4907_v26 = vld [vmem:[#allocation3 + $0x158] sm:$0xff]  }
0x240d   :  { %4788 = vmatprep.subr.bf16.mxu1 %v5207_v0  ;;  %v3722_v33 = vpop.permute.xlu1 %3721 }
0x240e   :  { %v3589_v28 = vpack.c.bf16 %v3588_v31, %v3587_v32 }
0x240f   :  { %4779 = vmatmul.mubr.msk.bf16.vlgmr.msra.gmra.mrb[84].mxu1 %vm213_vm7, %v3458_v19 }
0x2410   :  { %4789 = vmatpush3.bf16.msra.mxu1 %v3591_v27  ;;  %4790 = vmatprep.mubr.msk.bf16.mxu1 %vm5208_vm0, %v5207_v0 }
0x2411   :  { %4800 = vmatprep.subr.bf16.mxu1 %v5207_v0 }
0x2412   :  { %v5107_v30 = vpop.eup %5106 }
0x2413   :  { %v5109_v24 = vpop.eup %5108  ;;  %v3719_v34 = vmul.f32 %v5107_v30, %v5093_v8 }
0x2414   :  { %v3718_v43 = vmul.f32 %v5109_v24, %v5091_v7 }
0x2416   :  { %v3720_v37 = vpack.c.bf16 %v3719_v34, %v3718_v43 }
0x2417   :  { %4791 = vmatmul.mubr.msk.bf16.vlgmr.msra.gmra.mrb[88].mxu1 %vm213_vm7, %v3589_v28 }
0x2418   :  { %4801 = vmatpush3.bf16.msra.mxu1 %v3722_v33  ;;  %4802 = vmatprep.mubr.msk.bf16.mxu1 %vm5208_vm0, %v5207_v0  ;;  %v4313_v33 = vld [vmem:[#allocation5 + $0x24] ss:$0 sm:$0xff] }
0x2419   :  { %4814 = vmatprep.subr.bf16.mxu1 %v5207_v0 }
0x241f   :  { %4803 = vmatmul.mubr.msk.bf16.vlgmr.msra.gmra.mrb[92].mxu1 %vm213_vm7, %v3720_v37  ;;  %v4314_v37 = vld [vmem:[#allocation5 + $0x25] ss:$0 sm:$0xff] }
0x2420   :  { %4818 = vmatprep.mubr.msk.bf16.mxu1 %vm5208_vm0, %v5207_v0 }
0x247f   :  { %v3375_v44 = vpop.f32.mrb[80].mxu1 }
0x2480   :  { %3382 = vst.msk [vmem:[#allocation2] sm:$0xff] %vm165_vm2, %v3375_v44  ;;  %v4768_v38 = vpop.f32.mrb[81].mxu1 }
0x2481   :  { %v3378_v39 = vpop.f32.mrb[82].mxu1 }
0x2482   :  { %3383 = vst.msk [vmem:[#allocation2 + $0x8] sm:$0xff] %vm165_vm2, %v3378_v39  ;;  %v4769_v40 = vpop.f32.mrb[83].mxu1 }
0x24e2   :  { %v3499_v41 = vpop.f32.mrb[84].mxu1 }
0x24e3   :  { %3508 = vrot.lane.b32.xlu0 %v3499_v41, %s5202_s26  ;;  %v4780_v42 = vpop.f32.mrb[85].mxu1  ;;  %v4908_v41 = vld [vmem:[#allocation3 + $0x160] sm:$0xff]  }
0x24e4   :  { %v3502_v45 = vpop.f32.mrb[86].mxu1  ;;  %v4909_v42 = vld [vmem:[#allocation3 + $0x168] sm:$0xff]  }
0x24e5   :  { %3510 = vrot.lane.b32.xlu1 %v3502_v45, %s5202_s26  ;;  %v4781_v46 = vpop.f32.mrb[87].mxu1  ;;  %v4910_v45 = vld [vmem:[#allocation3 + $0x170] sm:$0xff]  }
0x24e6   :  { %v4911_v46 = vld [vmem:[#allocation3 + $0x178] sm:$0xff]  }
0x24ea   :  { %v3630_v48 = vpop.f32.mrb[88].mxu1 }
0x24eb   :  { %3639 = vrot.lane.b32.xlu0 %v3630_v48, %s5220_s11  ;;  %v4792_v50 = vpop.f32.mrb[89].mxu1 }
0x24ec   :  { %v3633_v51 = vpop.f32.mrb[90].mxu1 }
0x24ed   :  { %3641 = vrot.lane.b32.xlu1 %v3633_v51, %s5220_s11  ;;  %v4793_v52 = vpop.f32.mrb[91].mxu1 }
0x24f2   :  { %v3761_v13 = vpop.f32.mrb[92].mxu1 }
0x24f3   :  { %3770 = vrot.lane.b32.xlu0 %v3761_v13, %s5221_s12  ;;  %v4804_v12 = vpop.f32.mrb[93].mxu1 }
0x24f4   :  { %v3764_v56 = vpop.f32.mrb[94].mxu1 }
0x24f5   :  { %3772 = vrot.lane.b32.xlu1 %v3764_v56, %s5221_s12  ;;  %v4805_v57 = vpop.f32.mrb[95].mxu1 }
0x2555   :  { %v3509_v58 = vpop.permute.xlu0 %3508 }
0x2556   :  { %3514 = vst.msk [vmem:[#allocation2] sm:$0xff] %vm415_vm8, %v3509_v58 }
0x2557   :  { %v3511_v59 = vpop.permute.xlu1 %3510 }
0x2558   :  { %3515 = vst.msk [vmem:[#allocation2 + $0x8] sm:$0xff] %vm415_vm8, %v3511_v59 }
0x255d   :  { %v3640_v60 = vpop.permute.xlu0 %3639 }
0x255e   :  { %3645 = vst.msk [vmem:[#allocation2] sm:$0xff] %vm547_vm9, %v3640_v60 }
0x255f   :  { %v3642_v61 = vpop.permute.xlu1 %3641 }
0x2560   :  { %3646 = vst.msk [vmem:[#allocation2 + $0x8] sm:$0xff] %vm547_vm9, %v3642_v61 }
0x2565   :  { %v3771_v2 = vpop.permute.xlu0 %3770 }
0x2566   :  { %3776 = vst.msk [vmem:[#allocation2] sm:$0xff] %vm679_vm10, %v3771_v2 }
0x2567   :  { %v3773_v5 = vpop.permute.xlu1 %3772 }
0x2568   :  { %3777 = vst.msk [vmem:[#allocation2 + $0x8] sm:$0xff] %vm679_vm10, %v3773_v5 }
0x256d   :  { %v3778_v6 = vld [vmem:[#allocation2] sm:$0xff] }
0x256f   :  { %v3779_v4 = vld [vmem:[#allocation2 + $0x8] sm:$0xff] }
0x2570   :  { %v3784_v7 = vpack.c.bf16 %v3779_v4, %v3778_v6 }
0x2572   :  { %4811 = vmatmul.mubr.msk.bf16.vlgmr.msra.gmra.mrb[100].mxu0 %vm116_vm1, %v3784_v7 }
0x2573   :  { %4830 = vmatprep.mubr.msk.bf16.mxu0 %vm5208_vm0, %v5207_v0  ;;  %4823 = vmatpush3.bf16.msra.mxu0 %v4908_v41 }
0x2574   :  { %4824 = vmatprep.subr.bf16.mxu0 %v5207_v0 }
0x2577   :  { %4825 = vmatpush3.bf16.msra.mxu0 %v4909_v42 }
0x2578   :  { %4826 = vmatprep.subr.bf16.mxu0 %v5207_v0 }
0x257b   :  { %4827 = vmatpush3.bf16.msra.mxu0 %v4910_v45 }
0x257c   :  { %4828 = vmatprep.subr.bf16.mxu0 %v5207_v0 }
0x257f   :  { %4829 = vmatpush3.bf16.msra.mxu0 %v4911_v46  ;;  %v4913_v46 = vld [vmem:[#allocation3 + $0x188] sm:$0xff]  }
0x2645   :  { %v3839_v8 = vpop.f32.mrb[100].mxu0 }
0x2646   :  { %v3840_v54 = vadd.f32 %v4309_v1, %v3839_v8  ;;  %v4812_v9 = vpop.f32.mrb[101].mxu0 }
0x2647   :  { %v3842_v3 = vpop.f32.mrb[102].mxu0 }
0x2648   :  { %v3846_v10 = vadd.f32 %v3840_v54, %v5797_v35  ;;  %v3843_v11 = vadd.f32 %v4309_v1, %v3842_v3  ;;  %v4813_v55 = vpop.f32.mrb[103].mxu0 }
0x264a   :  { %v3847_v14 = vadd.f32 %v3843_v11, %v5799_v36  ;;  %v3850_v63 = vsel %vm116_vm1, %v3846_v10, 0.0  ;;  %v4906_v36 = vld [vmem:[#allocation3 + $0x150] sm:$0xff]  }
0x264b   :  { %3851 = vadd.xlane.f32.xlu0 %v3850_v63  ;;  %4815 = vmatpush3.bf16.msra.mxu1 %v4906_v36  ;;  %v4319_v36 = vld [vmem:[#allocation5 + $0x21] ss:$0 sm:$0xff] }
0x264c   :  { %v3853_v15 = vsel %vm116_vm1, %v3847_v14, 0.0  ;;  %4816 = vmatprep.subr.bf16.mxu1 %v5207_v0 }
0x264d   :  { %3854 = vadd.xlane.f32.xlu1 %v3853_v15 }
0x264f   :  { %4817 = vmatpush3.bf16.msra.mxu1 %v4907_v26 }
0x2650   :  { %4834 = vmatprep.subr.bf16.mxu1 %v5207_v0 }
0x26d8   :  { %v3852_v16 = vpop.xlane.xlu0 %3851 }
0x26d9   :  { %v3856_v29 = vmul.f32 0.03125, %v3852_v16 }
0x26da   :  { %v3855_v17 = vpop.xlane.xlu1 %3854 }
0x26db   :  { %v3858_v20 = vsub.f32 %v3846_v10, %v3856_v29  ;;  %v3857_v21 = vmul.f32 0.03125, %v3855_v17 }
0x26dd   :  { %v3859_v22 = vsub.f32 %v3847_v14, %v3857_v21  ;;  %v3860_v62 = vmul.f32 %v3858_v20, %v3858_v20 }
0x26df   :  { %v3862_v25 = vsel %vm116_vm1, %v3860_v62, 0.0  ;;  %v3861_v35 = vmul.f32 %v3859_v22, %v3859_v22 }
0x26e0   :  { %3863 = vadd.xlane.f32.xlu0 %v3862_v25 }
0x26e1   :  { %v3865_v18 = vsel %vm116_vm1, %v3861_v35, 0.0 }
0x26e4   :  { %3866 = vadd.xlane.f32.xlu0 %v3865_v18 }
0x276d   :  { %v3864_v19 = vpop.xlane.xlu0 %3863 }
0x276e   :  { %v3868_v53 = vmul.f32 0.03125, %v3864_v19 }
0x2770   :  { %v3870_v27 = vadd.f32 1e-05, %v3868_v53 }
0x2771   :  { %v3867_v23 = vpop.xlane.xlu0 %3866 }
0x2772   :  { %5110 = vrsqrt.f32 %v3870_v27  ;;  %v3869_v31 = vmul.f32 0.03125, %v3867_v23 }
0x2774   :  { %v3871_v32 = vadd.f32 1e-05, %v3869_v31 }
0x2776   :  { %5112 = vrsqrt.f32 %v3871_v32 }
0x277c   :  { %v5111_v28 = vpop.eup %5110 }
0x277d   :  { %v3874_v30 = vmul.f32 %v5111_v28, %v3858_v20 }
0x277f   :  { %v3880_v34 = vmul.f32 %v4313_v33, %v3874_v30 }
0x2780   :  { %v5113_v24 = vpop.eup %5112 }
0x2781   :  { %v3875_v43 = vmul.f32 %v5113_v24, %v3859_v22  ;;  %v5911_v38 = vadd.f32 %v4314_v37, %v3880_v34 }
0x2783   :  { %v3881_v44 = vmul.f32 %v4313_v33, %v3875_v43 }
0x2785   :  { %v5913_v39 = vadd.f32 %v4314_v37, %v3881_v44 }
0x2787   :  { %v3892_v40 = vpack.c.bf16 %v5913_v39, %v5911_v38 }
0x2789   :  { %4819 = vmatmul.mubr.msk.bf16.vlgmr.msra.gmra.mrb[96].mxu1 %vm116_vm1, %v3892_v40 }
0x278a   :  { %4838 = vmatprep.mubr.msk.bf16.mxu1 %vm5208_vm0, %v5207_v0 }
0x285c   :  { %v3947_v48 = vpop.f32.mrb[96].mxu1 }
0x285d   :  { %v3948_v49 = vadd.f32 %v4315_v47, %v3947_v48  ;;  %v4820_v50 = vpop.f32.mrb[97].mxu1 }
0x285e   :  { %v3950_v51 = vpop.f32.mrb[98].mxu1 }
0x285f   :  { %v3956_v52 = vand.u32 2147483647, %v3948_v49  ;;  %v3951_v13 = vadd.f32 %v4315_v47, %v3950_v51  ;;  %v4821_v12 = vpop.f32.mrb[99].mxu1  ;;  %v3954_v14 = vmax.f32 %v3948_v49, 0.0 }
0x2860   :  { %v4325_v12 = vld [vmem:[#allocation5 + $0x26] ss:$0 sm:$0xff] }
0x2861   :  { %v3958_v56 = vsub.f32 0.0, %v3956_v52  ;;  %v3957_v57 = vand.u32 2147483647, %v3951_v13  ;;  %v3955_v17 = vmax.f32 %v3951_v13, 0.0 }
0x2863   :  { %v3960_v58 = vmul.f32 1.442695, %v3958_v56  ;;  %v3959_v59 = vsub.f32 0.0, %v3957_v57 }
0x2865   :  { %5114 = vpow2.f32 %v3960_v58  ;;  %v3962_v60 = vmul.f32 1.442695, %v3959_v59 }
0x2867   :  { %5116 = vpow2.f32 %v3962_v60  ;;  %v4326_v60 = vld [vmem:[#allocation5 + $0x27] ss:$0 sm:$0xff] }
0x286f   :  { %v5115_v61 = vpop.eup %5114 }
0x2870   :  { %v3964_v2 = vadd.f32 1.0, %v5115_v61  ;;  %v3967_v4 = vmul.f32 -0.5, %v5115_v61  ;;  %v3970_v8 = vand.u32 2147483647, %v5115_v61 }
0x2871   :  { %v5117_v5 = vpop.eup %5116 }
0x2872   :  { %5118 = vlog2.f32 %v3964_v2  ;;  %v3973_v6 = vadd.f32 1.0, %v5117_v5  ;;  %v3976_v7 = vmul.f32 -0.5, %v5117_v5  ;;  %v3968_v1 = vadd.f32 1.0, %v3967_v4 }
0x2873   :  { %v3979_v3 = vand.u32 2147483647, %v5117_v5  ;;  %vm3971_vm0 = vcmp.lt.f32.partialorder %v3970_v8, 0.0004427343 }
0x2874   :  { %5120 = vlog2.f32 %v3973_v6  ;;  %v3977_v54 = vadd.f32 1.0, %v3976_v7  ;;  %v3969_v11 = vmul.f32 %v5115_v61, %v3968_v1  ;;  %v4327_v6 = vld [vmem:[#allocation5 + $0x28] ss:$0 sm:$0xff] }
0x2875   :  { %vm3980_vm2 = vcmp.lt.f32.partialorder %v3979_v3, 0.0004427343 }
0x2876   :  { %v3978_v16 = vmul.f32 %v5117_v5, %v3977_v54 }
0x287c   :  { %v5119_v9 = vpop.eup %5118 }
0x287d   :  { %v3966_v10 = vmul.f32 0.6931472, %v5119_v9 }
0x287e   :  { %v5121_v55 = vpop.eup %5120 }
0x287f   :  { %v3972_v63 = vsel %vm3971_vm0, %v3969_v11, %v3966_v10  ;;  %v3975_v15 = vmul.f32 0.6931472, %v5121_v55 }
0x2880   :  { %v3982_v29 = vadd.f32 %v3972_v63, %v3954_v14 }
0x2881   :  { %v3981_v20 = vsel %vm3980_vm2, %v3978_v16, %v3975_v15 }
0x2882   :  { %5122 = vtanh.f32 %v3982_v29  ;;  %v3983_v21 = vadd.f32 %v3981_v20, %v3955_v17 }
0x2884   :  { %5124 = vtanh.f32 %v3983_v21 }
0x288c   :  { %v5123_v22 = vpop.eup %5122 }
0x288d   :  { %v3986_v25 = vmul.f32 %v5123_v22, %v3948_v49 }
0x288e   :  { %v5125_v62 = vpop.eup %5124 }
0x288f   :  { %v3987_v35 = vmul.f32 %v5125_v62, %v3951_v13 }
0x2891   :  { %v3996_v18 = vpack.c.bf16 %v3987_v35, %v3986_v25 }
0x2893   :  { %4831 = vmatmul.mubr.msk.bf16.vlgmr.msra.gmra.mrb[104].mxu0 %vm931_vm13, %v3996_v18 }
0x2966   :  { %v4063_v26 = vpop.f32.mrb[104].mxu0 }
0x2967   :  { %v4064_v19 = vadd.f32 %v4319_v36, %v4063_v26  ;;  %v4832_v53 = vpop.f32.mrb[105].mxu0 }
0x2968   :  { %v4066_v27 = vpop.f32.mrb[106].mxu0 }
0x2969   :  { %v4070_v23 = vadd.f32 %v4064_v19, %v5911_v38  ;;  %v4067_v31 = vadd.f32 %v4319_v36, %v4066_v27  ;;  %v4833_v32 = vpop.f32.mrb[107].mxu0 }
0x296b   :  { %v4071_v28 = vadd.f32 %v4067_v31, %v5913_v39  ;;  %v4074_v30 = vsel %vm116_vm1, %v4070_v23, 0.0  ;;  %v4912_v39 = vld [vmem:[#allocation3 + $0x180] sm:$0xff]  }
0x296c   :  { %4075 = vadd.xlane.f32.xlu1 %v4074_v30  ;;  %4835 = vmatpush3.bf16.msra.mxu1 %v4912_v39 }
0x296d   :  { %v4077_v33 = vsel %vm116_vm1, %v4071_v28, 0.0  ;;  %4836 = vmatprep.subr.bf16.mxu1 %v5207_v0 }
0x296e   :  { %4078 = vadd.xlane.f32.xlu0 %v4077_v33 }
0x2970   :  { %4837 = vmatpush3.bf16.msra.mxu1 %v4913_v46 }
0x29f9   :  { %v4076_v24 = vpop.xlane.xlu1 %4075 }
0x29fa   :  { %v4080_v34 = vmul.f32 0.03125, %v4076_v24 }
0x29fb   :  { %v4079_v43 = vpop.xlane.xlu0 %4078 }
0x29fc   :  { %v4082_v37 = vsub.f32 %v4070_v23, %v4080_v34  ;;  %v4081_v44 = vmul.f32 0.03125, %v4079_v43 }
0x29fe   :  { %v4083_v40 = vsub.f32 %v4071_v28, %v4081_v44  ;;  %v4084_v41 = vmul.f32 %v4082_v37, %v4082_v37 }
0x2a00   :  { %v4086_v42 = vsel %vm116_vm1, %v4084_v41, 0.0  ;;  %v4085_v38 = vmul.f32 %v4083_v40, %v4083_v40 }
0x2a01   :  { %4087 = vadd.xlane.f32.xlu1 %v4086_v42 }
0x2a02   :  { %v4089_v45 = vsel %vm116_vm1, %v4085_v38, 0.0 }
0x2a03   :  { %4090 = vadd.xlane.f32.xlu0 %v4089_v45 }
0x2a8e   :  { %v4088_v47 = vpop.xlane.xlu1 %4087 }
0x2a8f   :  { %v4092_v48 = vmul.f32 0.03125, %v4088_v47 }
0x2a90   :  { %v4091_v49 = vpop.xlane.xlu0 %4090 }
0x2a91   :  { %v4094_v50 = vadd.f32 1e-05, %v4092_v48  ;;  %v4093_v51 = vmul.f32 0.03125, %v4091_v49 }
0x2a93   :  { %5126 = vrsqrt.f32 %v4094_v50  ;;  %v4095_v52 = vadd.f32 1e-05, %v4093_v51 }
0x2a95   :  { %5128 = vrsqrt.f32 %v4095_v52 }
0x2a9d   :  { %v5127_v13 = vpop.eup %5126 }
0x2a9e   :  { %v4098_v56 = vmul.f32 %v5127_v13, %v4082_v37 }
0x2a9f   :  { %v5129_v57 = vpop.eup %5128 }
0x2aa0   :  { %v4104_v58 = vmul.f32 %v4325_v12, %v4098_v56  ;;  %v4099_v59 = vmul.f32 %v5129_v57, %v4083_v40 }
0x2aa2   :  { %v4105_v61 = vmul.f32 %v4325_v12, %v4099_v59  ;;  %v4110_v2 = vadd.f32 %v4326_v60, %v4104_v58 }
0x2aa4   :  { %v4111_v5 = vadd.f32 %v4326_v60, %v4105_v61 }
0x2aa6   :  { %v4116_v0 = vpack.c.bf16 %v4111_v5, %v4110_v2 }
0x2aa8   :  { %4839 = vmatmul.mubr.msk.bf16.vlgmr.msra.gmra.mrb[100].mxu1 %vm116_vm1, %v4116_v0 }
0x2b7b   :  { %v4171_v4 = vpop.f32.mrb[100].mxu1 }
0x2b7c   :  { %v4172_v7 = vadd.f32 %v4327_v6, %v4171_v4  ;;  %v4840_v1 = vpop.f32.mrb[101].mxu1 }
0x2b7d   :  { %v4174_v8 = vpop.f32.mrb[102].mxu1 }
0x2b7e   :  { %4179 = vst.msk [vmem:[%s5942_s4] sm:$0xff] %vm4178_vm5, %v4172_v7  ;;  %v4175_v54 = vadd.f32 %v4327_v6, %v4174_v8  ;;  %v4841_v9 = vpop.f32.mrb[103].mxu1 }
0x2b80   :  { %4180 = vst.msk [vmem:[%s5942_s4 + $0x8] sm:$0xff] %vm4178_vm5, %v4175_v54 }
0x2b81   :  { %4185 = vsyncpa [#allocation4], 1 }
0x2b82   :  { %4186 = vsyncpa [#allocation6], 1 }

</bundles_post_ra>
